<compile_context>
chip_gen: v5e
topology: v5e:2x2
jax: 0.10.0
libtpu: 0.0.40
codegen_flags: <defaults>
</compile_context>

<pallas_src>
import jax
import jax.numpy as jnp
from jax.experimental import pallas as pl
from jax.experimental.pallas import tpu as pltpu


def _make_kernel(T, B, H):
    def lstm_cell(g, c):
        # g: (B, 4H) pre-activations, PyTorch gate order i, f, g, o.
        sig = jax.nn.sigmoid(g)                     # one full-width EUP op
        i_g = sig[:, 0:H]
        f_g = sig[:, H:2 * H]
        o_g = sig[:, 3 * H:4 * H]
        g_g = jnp.tanh(g[:, 2 * H:3 * H])
        c_new = f_g * c + i_g * g_g
        h_new = o_g * jnp.tanh(c_new)
        return h_new, c_new

    def kernel(emb_ref,                                  # (T*B, 2E) time-major rows
               wih0f_ref, whh0f_ref, b0f_ref,            # layer0 forward
               wih0b_ref, whh0b_ref, b0b_ref,            # layer0 backward
               wih1f_ref, whh1f_ref, b1f_ref,            # layer1 forward
               wih1b_ref, whh1b_ref, b1b_ref,            # layer1 backward
               fcw_ref, fcb_ref,                         # (2H, O), (1, O)
               out_ref,                                  # (B, O)
               out0_scr):                                # (T*B, 2H) layer-0 outputs
        f32 = jnp.float32

        def run_layer(gin_f, gin_b, whh_f, whh_b, store_outputs):
            h_f = jnp.zeros((B, H), f32)
            c_f = jnp.zeros((B, H), f32)
            h_b = jnp.zeros((B, H), f32)
            c_b = jnp.zeros((B, H), f32)
            # Fully-unrolled fused bidirectional recurrence (T static & small):
            # the two directions are independent, giving the VLIW scheduler
            # work to overlap with each chain's MXU/EUP latency.
            for i in range(T):
                t_f = i
                t_b = T - 1 - i
                g_f = gin_f[t_f * B:(t_f + 1) * B, :] + jnp.dot(
                    h_f, whh_f, preferred_element_type=f32)
                g_b = gin_b[t_b * B:(t_b + 1) * B, :] + jnp.dot(
                    h_b, whh_b, preferred_element_type=f32)
                h_f, c_f = lstm_cell(g_f, c_f)
                h_b, c_b = lstm_cell(g_b, c_b)
                if store_outputs:
                    out0_scr[t_f * B:(t_f + 1) * B, 0:H] = h_f
                    out0_scr[t_b * B:(t_b + 1) * B, H:2 * H] = h_b
            return h_f, h_b

        # ---- layer 0: hoisted input projection (one batched matmul / dir) ----
        emb = emb_ref[...]                               # (T*B, 2E)
        gin0f = jnp.dot(emb, wih0f_ref[...],
                        preferred_element_type=f32) + b0f_ref[...]
        gin0b = jnp.dot(emb, wih0b_ref[...],
                        preferred_element_type=f32) + b0b_ref[...]
        run_layer(gin0f, gin0b, whh0f_ref[...], whh0b_ref[...],
                  store_outputs=True)

        # ---- layer 1: input is the contiguous (T*B, 2H) layer-0 output ----
        x1 = out0_scr[...]
        gin1f = jnp.dot(x1, wih1f_ref[...],
                        preferred_element_type=f32) + b1f_ref[...]
        gin1b = jnp.dot(x1, wih1b_ref[...],
                        preferred_element_type=f32) + b1b_ref[...]
        h_f, h_b = run_layer(gin1f, gin1b, whh1f_ref[...], whh1b_ref[...],
                             store_outputs=False)

        # hidden[-2] = last-layer forward final h, hidden[-1] = backward final.
        # FC split over the two halves of fc_w avoids a lane concat.
        out_ref[...] = (
            jnp.dot(h_f, fcw_ref[0:H, :], preferred_element_type=f32)
            + jnp.dot(h_b, fcw_ref[H:2 * H, :], preferred_element_type=f32)
            + fcb_ref[...])

    return kernel


def birnn_text_glove_forward(words, params, *, hidden_dim, num_layers=2):
    assert num_layers == 2, "kernel is specialized for num_layers=2"
    # Embedding lookups + concat along feature dim (glue: gather).
    emb = jnp.concatenate([params["embedding"][words],
                           params["constant_embedding"][words]], axis=2)
    # TODO(synk): nn.Dropout is identity in eval mode; stochastic training-mode
    # dropout is omitted.
    emb = jnp.transpose(emb, (1, 0, 2)).astype(jnp.float32)      # (T, B, 2E)
    T, B, in0 = emb.shape
    emb2d = emb.reshape(T * B, in0)                              # time-major rows

    flat = []
    for layer in range(num_layers):
        for d in range(2):
            flat.extend(params["lstm"][layer][d])                # (wih_t, whh_t, b)
    fcw_t = params["fc_w"].T.astype(jnp.float32)                 # (2H, O)
    fcb = params["fc_b"].reshape(1, -1).astype(jnp.float32)      # (1, O)
    O = fcw_t.shape[1]

    kernel = _make_kernel(T, B, hidden_dim)
    n_in = 1 + len(flat) + 2
    vmem = lambda: pl.BlockSpec(memory_space=pltpu.MemorySpace.VMEM)
    # TODO(synk): for v7x one could additionally split the two directions over
    # the two TensorCores (core_map); at these toy shapes one core suffices,
    # and bf16 matmul casting is skipped to keep f32 parity with the reference.
    return pl.pallas_call(
        kernel,
        out_shape=jax.ShapeDtypeStruct((B, O), jnp.float32),
        in_specs=[vmem() for _ in range(n_in)],
        out_specs=vmem(),
        scratch_shapes=[pltpu.VMEM((T * B, 2 * hidden_dim), jnp.float32)],
        compiler_params=pltpu.CompilerParams(
            vmem_limit_bytes=32 * 1024 * 1024),
    )(emb2d, *flat, fcw_t, fcb)


def init_params(key, vocab_size, embedding_dim, output_dim, hidden_dim,
                num_layers=2):
    def nxt():
        nonlocal key
        key, sub = jax.random.split(key)
        return sub

    params = {
        "embedding": jax.random.normal(nxt(), (vocab_size, embedding_dim),
                                       jnp.float32),
        "constant_embedding": jax.random.normal(nxt(),
                                                (vocab_size, embedding_dim),
                                                jnp.float32),
    }
    bound = 1.0 / (hidden_dim ** 0.5)
    lstm = []
    for layer in range(num_layers):
        in_sz = 2 * embedding_dim if layer == 0 else 2 * hidden_dim
        dirs = []
        for _d in range(2):
            wih = jax.random.uniform(nxt(), (4 * hidden_dim, in_sz),
                                     jnp.float32, -bound, bound)
            whh = jax.random.uniform(nxt(), (4 * hidden_dim, hidden_dim),
                                     jnp.float32, -bound, bound)
            bih = jax.random.uniform(nxt(), (4 * hidden_dim,), jnp.float32,
                                     -bound, bound)
            bhh = jax.random.uniform(nxt(), (4 * hidden_dim,), jnp.float32,
                                     -bound, bound)
            # pre-transpose + fuse the two biases (kernel-friendly layout)
            dirs.append((wih.T, whh.T, (bih + bhh).reshape(1, -1)))
        lstm.append(dirs)
    params["lstm"] = lstm
    fb = 1.0 / ((2 * hidden_dim) ** 0.5)
    params["fc_w"] = jax.random.uniform(nxt(), (output_dim, 2 * hidden_dim),
                                        jnp.float32, -fb, fb)
    params["fc_b"] = jax.random.uniform(nxt(), (output_dim,), jnp.float32,
                                        -fb, fb)
    return params


def reference_forward(words, params, hidden_dim, num_layers=2):
    """Pure-JAX reference mirroring PyTorch nn.LSTM (eval-mode dropout)."""
    H = hidden_dim
    x = jnp.concatenate([params["embedding"][words],
                         params["constant_embedding"][words]],
                        axis=2).astype(jnp.float32)              # (B, T, 2E)
    B, T, _ = x.shape
    last_finals = None
    for layer in range(num_layers):
        outs, finals = [], []
        for d in range(2):
            wih_t, whh_t, b = params["lstm"][layer][d]
            h = jnp.zeros((B, H), jnp.float32)
            c = jnp.zeros((B, H), jnp.float32)
            seq = [None] * T
            ts = range(T) if d == 0 else range(T - 1, -1, -1)
            for t in ts:
                g = x[:, t, :] @ wih_t + h @ whh_t + b
                i_g = jax.nn.sigmoid(g[:, :H])
                f_g = jax.nn.sigmoid(g[:, H:2 * H])
                g_g = jnp.tanh(g[:, 2 * H:3 * H])
                o_g = jax.nn.sigmoid(g[:, 3 * H:])
                c = f_g * c + i_g * g_g
                h = o_g * jnp.tanh(c)
                seq[t] = h
            finals.append(h)
            outs.append(jnp.stack(seq, axis=1))
        x = jnp.concatenate(outs, axis=-1)
        last_finals = finals
    hidden = jnp.concatenate(last_finals, axis=1)                # (B, 2H)
    return hidden @ params["fc_w"].T + params["fc_b"]


if __name__ == "__main__":
    vocab_size, embedding_dim, output_dim, hidden_dim = 50, 16, 4, 32
    B, T = 2, 8

    key = jax.random.PRNGKey(0)
    kp, kw = jax.random.split(key)
    params = init_params(kp, vocab_size, embedding_dim, output_dim, hidden_dim)
    words = jax.random.randint(kw, (B, T), 0, vocab_size, dtype=jnp.int32)

    pred = birnn_text_glove_forward(words, params, hidden_dim=hidden_dim)
    pred = jax.block_until_ready(pred)

    ref = reference_forward(words, params, hidden_dim)
    assert pred.shape == (B, output_dim)
    assert jnp.allclose(pred, ref, atol=1e-4, rtol=1e-4), (pred, ref)
    print("KERNEL_OK")
</pallas_src>

<mosaic_0001>
module attributes {stable_mosaic.version = 11 : i64} {
  func.func @kernel(%arg0: memref<16x32xf32, #tpu.memory_space<vmem>>, %arg1: memref<32x128xf32, #tpu.memory_space<vmem>>, %arg2: memref<32x128xf32, #tpu.memory_space<vmem>>, %arg3: memref<1x128xf32, #tpu.memory_space<vmem>>, %arg4: memref<32x128xf32, #tpu.memory_space<vmem>>, %arg5: memref<32x128xf32, #tpu.memory_space<vmem>>, %arg6: memref<1x128xf32, #tpu.memory_space<vmem>>, %arg7: memref<64x128xf32, #tpu.memory_space<vmem>>, %arg8: memref<32x128xf32, #tpu.memory_space<vmem>>, %arg9: memref<1x128xf32, #tpu.memory_space<vmem>>, %arg10: memref<64x128xf32, #tpu.memory_space<vmem>>, %arg11: memref<32x128xf32, #tpu.memory_space<vmem>>, %arg12: memref<1x128xf32, #tpu.memory_space<vmem>>, %arg13: memref<64x4xf32, #tpu.memory_space<vmem>>, %arg14: memref<1x4xf32, #tpu.memory_space<vmem>>, %arg15: memref<2x4xf32, #tpu.memory_space<vmem>>, %arg16: memref<16x64xf32, #tpu.memory_space<vmem>>) attributes {dimension_semantics = [], scalar_prefetch = 0 : i64, scratch_operands = 1 : i64, tpu.core_type = #tpu.core_type<tc>} {
    %c0 = arith.constant 0 : index
    %c0_0 = arith.constant 0 : index
    %0 = vector.load %arg0[%c0, %c0_0] : memref<16x32xf32, #tpu.memory_space<vmem>>, vector<16x32xf32>
    %c0_1 = arith.constant 0 : index
    %c0_2 = arith.constant 0 : index
    %1 = vector.load %arg1[%c0_1, %c0_2] : memref<32x128xf32, #tpu.memory_space<vmem>>, vector<32x128xf32>
    %cst = arith.constant dense<0.000000e+00> : vector<16x128xf32>
    %2 = tpu.matmul %0, %1, %cst {dimension_numbers = #tpu.dot_dimension_numbers<[1], [0], [0], [1], [0, 0, 1, 1], [], []>} : vector<16x32xf32>, vector<32x128xf32>, vector<16x128xf32> -> vector<16x128xf32>
    %c0_3 = arith.constant 0 : index
    %c0_4 = arith.constant 0 : index
    %3 = vector.load %arg3[%c0_3, %c0_4] : memref<1x128xf32, #tpu.memory_space<vmem>>, vector<1x128xf32>
    %4 = vector.broadcast %3 : vector<1x128xf32> to vector<16x128xf32>
    %5 = arith.addf %2, %4 : vector<16x128xf32>
    %c0_5 = arith.constant 0 : index
    %c0_6 = arith.constant 0 : index
    %6 = vector.load %arg4[%c0_5, %c0_6] : memref<32x128xf32, #tpu.memory_space<vmem>>, vector<32x128xf32>
    %cst_7 = arith.constant dense<0.000000e+00> : vector<16x128xf32>
    %7 = tpu.matmul %0, %6, %cst_7 {dimension_numbers = #tpu.dot_dimension_numbers<[1], [0], [0], [1], [0, 0, 1, 1], [], []>} : vector<16x32xf32>, vector<32x128xf32>, vector<16x128xf32> -> vector<16x128xf32>
    %c0_8 = arith.constant 0 : index
    %c0_9 = arith.constant 0 : index
    %8 = vector.load %arg6[%c0_8, %c0_9] : memref<1x128xf32, #tpu.memory_space<vmem>>, vector<1x128xf32>
    %9 = vector.broadcast %8 : vector<1x128xf32> to vector<16x128xf32>
    %10 = arith.addf %7, %9 : vector<16x128xf32>
    %c0_10 = arith.constant 0 : index
    %c0_11 = arith.constant 0 : index
    %11 = vector.load %arg2[%c0_10, %c0_11] : memref<32x128xf32, #tpu.memory_space<vmem>>, vector<32x128xf32>
    %c0_12 = arith.constant 0 : index
    %c0_13 = arith.constant 0 : index
    %12 = vector.load %arg5[%c0_12, %c0_13] : memref<32x128xf32, #tpu.memory_space<vmem>>, vector<32x128xf32>
    %cst_14 = arith.constant 0.000000e+00 : f32
    %13 = vector.broadcast %cst_14 : f32 to vector<2x32xf32>
    %cst_15 = arith.constant 0.000000e+00 : f32
    %14 = vector.broadcast %cst_15 : f32 to vector<2x32xf32>
    %cst_16 = arith.constant 0.000000e+00 : f32
    %15 = vector.broadcast %cst_16 : f32 to vector<2x32xf32>
    %cst_17 = arith.constant 0.000000e+00 : f32
    %16 = vector.broadcast %cst_17 : f32 to vector<2x32xf32>
    %17 = vector.extract_strided_slice %5 {offsets = [0, 0], sizes = [2, 128], strides = [1, 1]} : vector<16x128xf32> to vector<2x128xf32>
    %cst_18 = arith.constant dense<0.000000e+00> : vector<2x128xf32>
    %18 = tpu.matmul %13, %11, %cst_18 {dimension_numbers = #tpu.dot_dimension_numbers<[1], [0], [0], [1], [0, 0, 1, 1], [], []>} : vector<2x32xf32>, vector<32x128xf32>, vector<2x128xf32> -> vector<2x128xf32>
    %19 = arith.addf %17, %18 : vector<2x128xf32>
    %20 = vector.extract_strided_slice %10 {offsets = [14, 0], sizes = [2, 128], strides = [1, 1]} : vector<16x128xf32> to vector<2x128xf32>
    %cst_19 = arith.constant dense<0.000000e+00> : vector<2x128xf32>
    %21 = tpu.matmul %15, %12, %cst_19 {dimension_numbers = #tpu.dot_dimension_numbers<[1], [0], [0], [1], [0, 0, 1, 1], [], []>} : vector<2x32xf32>, vector<32x128xf32>, vector<2x128xf32> -> vector<2x128xf32>
    %22 = arith.addf %20, %21 : vector<2x128xf32>
    %23 = arith.negf %19 : vector<2x128xf32>
    %24 = math.exp %23 : vector<2x128xf32>
    %cst_20 = arith.constant 1.000000e+00 : f32
    %25 = vector.broadcast %cst_20 : f32 to vector<2x128xf32>
    %26 = arith.addf %25, %24 : vector<2x128xf32>
    %27 = arith.divf %25, %26 : vector<2x128xf32>
    %28 = vector.extract_strided_slice %27 {offsets = [0, 0], sizes = [2, 32], strides = [1, 1]} : vector<2x128xf32> to vector<2x32xf32>
    %29 = vector.extract_strided_slice %27 {offsets = [0, 32], sizes = [2, 32], strides = [1, 1]} : vector<2x128xf32> to vector<2x32xf32>
    %30 = vector.extract_strided_slice %27 {offsets = [0, 96], sizes = [2, 32], strides = [1, 1]} : vector<2x128xf32> to vector<2x32xf32>
    %31 = vector.extract_strided_slice %19 {offsets = [0, 64], sizes = [2, 32], strides = [1, 1]} : vector<2x128xf32> to vector<2x32xf32>
    %32 = math.tanh %31 : vector<2x32xf32>
    %33 = arith.mulf %29, %14 : vector<2x32xf32>
    %34 = arith.mulf %28, %32 : vector<2x32xf32>
    %35 = arith.addf %33, %34 : vector<2x32xf32>
    %36 = math.tanh %35 : vector<2x32xf32>
    %37 = arith.mulf %30, %36 : vector<2x32xf32>
    %38 = arith.negf %22 : vector<2x128xf32>
    %39 = math.exp %38 : vector<2x128xf32>
    %cst_21 = arith.constant 1.000000e+00 : f32
    %40 = vector.broadcast %cst_21 : f32 to vector<2x128xf32>
    %41 = arith.addf %40, %39 : vector<2x128xf32>
    %42 = arith.divf %40, %41 : vector<2x128xf32>
    %43 = vector.extract_strided_slice %42 {offsets = [0, 0], sizes = [2, 32], strides = [1, 1]} : vector<2x128xf32> to vector<2x32xf32>
    %44 = vector.extract_strided_slice %42 {offsets = [0, 32], sizes = [2, 32], strides = [1, 1]} : vector<2x128xf32> to vector<2x32xf32>
    %45 = vector.extract_strided_slice %42 {offsets = [0, 96], sizes = [2, 32], strides = [1, 1]} : vector<2x128xf32> to vector<2x32xf32>
    %46 = vector.extract_strided_slice %22 {offsets = [0, 64], sizes = [2, 32], strides = [1, 1]} : vector<2x128xf32> to vector<2x32xf32>
    %47 = math.tanh %46 : vector<2x32xf32>
    %48 = arith.mulf %44, %16 : vector<2x32xf32>
    %49 = arith.mulf %43, %47 : vector<2x32xf32>
    %50 = arith.addf %48, %49 : vector<2x32xf32>
    %51 = math.tanh %50 : vector<2x32xf32>
    %52 = arith.mulf %45, %51 : vector<2x32xf32>
    %c0_22 = arith.constant 0 : index
    %c0_23 = arith.constant 0 : index
    %53 = vector.load %arg16[%c0_22, %c0_23] : memref<16x64xf32, #tpu.memory_space<vmem>>, vector<2x32xf32>
    tpu.vector_store %arg16[%c0_22, %c0_23], %37 {strides = array<i32>} : memref<16x64xf32, #tpu.memory_space<vmem>>, vector<2x32xf32>,
    %c14 = arith.constant 14 : index
    %c32 = arith.constant 32 : index
    %54 = vector.load %arg16[%c14, %c32] : memref<16x64xf32, #tpu.memory_space<vmem>>, vector<2x32xf32>
    tpu.vector_store %arg16[%c14, %c32], %52 {strides = array<i32>} : memref<16x64xf32, #tpu.memory_space<vmem>>, vector<2x32xf32>,
    %55 = vector.extract_strided_slice %5 {offsets = [2, 0], sizes = [2, 128], strides = [1, 1]} : vector<16x128xf32> to vector<2x128xf32>
    %cst_24 = arith.constant dense<0.000000e+00> : vector<2x128xf32>
    %56 = tpu.matmul %37, %11, %cst_24 {dimension_numbers = #tpu.dot_dimension_numbers<[1], [0], [0], [1], [0, 0, 1, 1], [], []>} : vector<2x32xf32>, vector<32x128xf32>, vector<2x128xf32> -> vector<2x128xf32>
    %57 = arith.addf %55, %56 : vector<2x128xf32>
    %58 = vector.extract_strided_slice %10 {offsets = [12, 0], sizes = [2, 128], strides = [1, 1]} : vector<16x128xf32> to vector<2x128xf32>
    %cst_25 = arith.constant dense<0.000000e+00> : vector<2x128xf32>
    %59 = tpu.matmul %52, %12, %cst_25 {dimension_numbers = #tpu.dot_dimension_numbers<[1], [0], [0], [1], [0, 0, 1, 1], [], []>} : vector<2x32xf32>, vector<32x128xf32>, vector<2x128xf32> -> vector<2x128xf32>
    %60 = arith.addf %58, %59 : vector<2x128xf32>
    %61 = arith.negf %57 : vector<2x128xf32>
    %62 = math.exp %61 : vector<2x128xf32>
    %cst_26 = arith.constant 1.000000e+00 : f32
    %63 = vector.broadcast %cst_26 : f32 to vector<2x128xf32>
    %64 = arith.addf %63, %62 : vector<2x128xf32>
    %65 = arith.divf %63, %64 : vector<2x128xf32>
    %66 = vector.extract_strided_slice %65 {offsets = [0, 0], sizes = [2, 32], strides = [1, 1]} : vector<2x128xf32> to vector<2x32xf32>
    %67 = vector.extract_strided_slice %65 {offsets = [0, 32], sizes = [2, 32], strides = [1, 1]} : vector<2x128xf32> to vector<2x32xf32>
    %68 = vector.extract_strided_slice %65 {offsets = [0, 96], sizes = [2, 32], strides = [1, 1]} : vector<2x128xf32> to vector<2x32xf32>
    %69 = vector.extract_strided_slice %57 {offsets = [0, 64], sizes = [2, 32], strides = [1, 1]} : vector<2x128xf32> to vector<2x32xf32>
    %70 = math.tanh %69 : vector<2x32xf32>
    %71 = arith.mulf %67, %35 : vector<2x32xf32>
    %72 = arith.mulf %66, %70 : vector<2x32xf32>
    %73 = arith.addf %71, %72 : vector<2x32xf32>
    %74 = math.tanh %73 : vector<2x32xf32>
    %75 = arith.mulf %68, %74 : vector<2x32xf32>
    %76 = arith.negf %60 : vector<2x128xf32>
    %77 = math.exp %76 : vector<2x128xf32>
    %cst_27 = arith.constant 1.000000e+00 : f32
    %78 = vector.broadcast %cst_27 : f32 to vector<2x128xf32>
    %79 = arith.addf %78, %77 : vector<2x128xf32>
    %80 = arith.divf %78, %79 : vector<2x128xf32>
    %81 = vector.extract_strided_slice %80 {offsets = [0, 0], sizes = [2, 32], strides = [1, 1]} : vector<2x128xf32> to vector<2x32xf32>
    %82 = vector.extract_strided_slice %80 {offsets = [0, 32], sizes = [2, 32], strides = [1, 1]} : vector<2x128xf32> to vector<2x32xf32>
    %83 = vector.extract_strided_slice %80 {offsets = [0, 96], sizes = [2, 32], strides = [1, 1]} : vector<2x128xf32> to vector<2x32xf32>
    %84 = vector.extract_strided_slice %60 {offsets = [0, 64], sizes = [2, 32], strides = [1, 1]} : vector<2x128xf32> to vector<2x32xf32>
    %85 = math.tanh %84 : vector<2x32xf32>
    %86 = arith.mulf %82, %50 : vector<2x32xf32>
    %87 = arith.mulf %81, %85 : vector<2x32xf32>
    %88 = arith.addf %86, %87 : vector<2x32xf32>
    %89 = math.tanh %88 : vector<2x32xf32>
    %90 = arith.mulf %83, %89 : vector<2x32xf32>
    %c2 = arith.constant 2 : index
    %c0_28 = arith.constant 0 : index
    %91 = vector.load %arg16[%c2, %c0_28] : memref<16x64xf32, #tpu.memory_space<vmem>>, vector<2x32xf32>
    tpu.vector_store %arg16[%c2, %c0_28], %75 {strides = array<i32>} : memref<16x64xf32, #tpu.memory_space<vmem>>, vector<2x32xf32>,
    %c12 = arith.constant 12 : index
    %c32_29 = arith.constant 32 : index
    %92 = vector.load %arg16[%c12, %c32_29] : memref<16x64xf32, #tpu.memory_space<vmem>>, vector<2x32xf32>
    tpu.vector_store %arg16[%c12, %c32_29], %90 {strides = array<i32>} : memref<16x64xf32, #tpu.memory_space<vmem>>, vector<2x32xf32>,
    %93 = vector.extract_strided_slice %5 {offsets = [4, 0], sizes = [2, 128], strides = [1, 1]} : vector<16x128xf32> to vector<2x128xf32>
    %cst_30 = arith.constant dense<0.000000e+00> : vector<2x128xf32>
    %94 = tpu.matmul %75, %11, %cst_30 {dimension_numbers = #tpu.dot_dimension_numbers<[1], [0], [0], [1], [0, 0, 1, 1], [], []>} : vector<2x32xf32>, vector<32x128xf32>, vector<2x128xf32> -> vector<2x128xf32>
    %95 = arith.addf %93, %94 : vector<2x128xf32>
    %96 = vector.extract_strided_slice %10 {offsets = [10, 0], sizes = [2, 128], strides = [1, 1]} : vector<16x128xf32> to vector<2x128xf32>
    %cst_31 = arith.constant dense<0.000000e+00> : vector<2x128xf32>
    %97 = tpu.matmul %90, %12, %cst_31 {dimension_numbers = #tpu.dot_dimension_numbers<[1], [0], [0], [1], [0, 0, 1, 1], [], []>} : vector<2x32xf32>, vector<32x128xf32>, vector<2x128xf32> -> vector<2x128xf32>
    %98 = arith.addf %96, %97 : vector<2x128xf32>
    %99 = arith.negf %95 : vector<2x128xf32>
    %100 = math.exp %99 : vector<2x128xf32>
    %cst_32 = arith.constant 1.000000e+00 : f32
    %101 = vector.broadcast %cst_32 : f32 to vector<2x128xf32>
    %102 = arith.addf %101, %100 : vector<2x128xf32>
    %103 = arith.divf %101, %102 : vector<2x128xf32>
    %104 = vector.extract_strided_slice %103 {offsets = [0, 0], sizes = [2, 32], strides = [1, 1]} : vector<2x128xf32> to vector<2x32xf32>
    %105 = vector.extract_strided_slice %103 {offsets = [0, 32], sizes = [2, 32], strides = [1, 1]} : vector<2x128xf32> to vector<2x32xf32>
    %106 = vector.extract_strided_slice %103 {offsets = [0, 96], sizes = [2, 32], strides = [1, 1]} : vector<2x128xf32> to vector<2x32xf32>
    %107 = vector.extract_strided_slice %95 {offsets = [0, 64], sizes = [2, 32], strides = [1, 1]} : vector<2x128xf32> to vector<2x32xf32>
    %108 = math.tanh %107 : vector<2x32xf32>
    %109 = arith.mulf %105, %73 : vector<2x32xf32>
    %110 = arith.mulf %104, %108 : vector<2x32xf32>
    %111 = arith.addf %109, %110 : vector<2x32xf32>
    %112 = math.tanh %111 : vector<2x32xf32>
    %113 = arith.mulf %106, %112 : vector<2x32xf32>
    %114 = arith.negf %98 : vector<2x128xf32>
    %115 = math.exp %114 : vector<2x128xf32>
    %cst_33 = arith.constant 1.000000e+00 : f32
    %116 = vector.broadcast %cst_33 : f32 to vector<2x128xf32>
    %117 = arith.addf %116, %115 : vector<2x128xf32>
    %118 = arith.divf %116, %117 : vector<2x128xf32>
    %119 = vector.extract_strided_slice %118 {offsets = [0, 0], sizes = [2, 32], strides = [1, 1]} : vector<2x128xf32> to vector<2x32xf32>
    %120 = vector.extract_strided_slice %118 {offsets = [0, 32], sizes = [2, 32], strides = [1, 1]} : vector<2x128xf32> to vector<2x32xf32>
    %121 = vector.extract_strided_slice %118 {offsets = [0, 96], sizes = [2, 32], strides = [1, 1]} : vector<2x128xf32> to vector<2x32xf32>
    %122 = vector.extract_strided_slice %98 {offsets = [0, 64], sizes = [2, 32], strides = [1, 1]} : vector<2x128xf32> to vector<2x32xf32>
    %123 = math.tanh %122 : vector<2x32xf32>
    %124 = arith.mulf %120, %88 : vector<2x32xf32>
    %125 = arith.mulf %119, %123 : vector<2x32xf32>
    %126 = arith.addf %124, %125 : vector<2x32xf32>
    %127 = math.tanh %126 : vector<2x32xf32>
    %128 = arith.mulf %121, %127 : vector<2x32xf32>
    %c4 = arith.constant 4 : index
    %c0_34 = arith.constant 0 : index
    %129 = vector.load %arg16[%c4, %c0_34] : memref<16x64xf32, #tpu.memory_space<vmem>>, vector<2x32xf32>
    tpu.vector_store %arg16[%c4, %c0_34], %113 {strides = array<i32>} : memref<16x64xf32, #tpu.memory_space<vmem>>, vector<2x32xf32>,
    %c10 = arith.constant 10 : index
    %c32_35 = arith.constant 32 : index
    %130 = vector.load %arg16[%c10, %c32_35] : memref<16x64xf32, #tpu.memory_space<vmem>>, vector<2x32xf32>
    tpu.vector_store %arg16[%c10, %c32_35], %128 {strides = array<i32>} : memref<16x64xf32, #tpu.memory_space<vmem>>, vector<2x32xf32>,
    %131 = vector.extract_strided_slice %5 {offsets = [6, 0], sizes = [2, 128], strides = [1, 1]} : vector<16x128xf32> to vector<2x128xf32>
    %cst_36 = arith.constant dense<0.000000e+00> : vector<2x128xf32>
    %132 = tpu.matmul %113, %11, %cst_36 {dimension_numbers = #tpu.dot_dimension_numbers<[1], [0], [0], [1], [0, 0, 1, 1], [], []>} : vector<2x32xf32>, vector<32x128xf32>, vector<2x128xf32> -> vector<2x128xf32>
    %133 = arith.addf %131, %132 : vector<2x128xf32>
    %134 = vector.extract_strided_slice %10 {offsets = [8, 0], sizes = [2, 128], strides = [1, 1]} : vector<16x128xf32> to vector<2x128xf32>
    %cst_37 = arith.constant dense<0.000000e+00> : vector<2x128xf32>
    %135 = tpu.matmul %128, %12, %cst_37 {dimension_numbers = #tpu.dot_dimension_numbers<[1], [0], [0], [1], [0, 0, 1, 1], [], []>} : vector<2x32xf32>, vector<32x128xf32>, vector<2x128xf32> -> vector<2x128xf32>
    %136 = arith.addf %134, %135 : vector<2x128xf32>
    %137 = arith.negf %133 : vector<2x128xf32>
    %138 = math.exp %137 : vector<2x128xf32>
    %cst_38 = arith.constant 1.000000e+00 : f32
    %139 = vector.broadcast %cst_38 : f32 to vector<2x128xf32>
    %140 = arith.addf %139, %138 : vector<2x128xf32>
    %141 = arith.divf %139, %140 : vector<2x128xf32>
    %142 = vector.extract_strided_slice %141 {offsets = [0, 0], sizes = [2, 32], strides = [1, 1]} : vector<2x128xf32> to vector<2x32xf32>
    %143 = vector.extract_strided_slice %141 {offsets = [0, 32], sizes = [2, 32], strides = [1, 1]} : vector<2x128xf32> to vector<2x32xf32>
    %144 = vector.extract_strided_slice %141 {offsets = [0, 96], sizes = [2, 32], strides = [1, 1]} : vector<2x128xf32> to vector<2x32xf32>
    %145 = vector.extract_strided_slice %133 {offsets = [0, 64], sizes = [2, 32], strides = [1, 1]} : vector<2x128xf32> to vector<2x32xf32>
    %146 = math.tanh %145 : vector<2x32xf32>
    %147 = arith.mulf %143, %111 : vector<2x32xf32>
    %148 = arith.mulf %142, %146 : vector<2x32xf32>
    %149 = arith.addf %147, %148 : vector<2x32xf32>
    %150 = math.tanh %149 : vector<2x32xf32>
    %151 = arith.mulf %144, %150 : vector<2x32xf32>
    %152 = arith.negf %136 : vector<2x128xf32>
    %153 = math.exp %152 : vector<2x128xf32>
    %cst_39 = arith.constant 1.000000e+00 : f32
    %154 = vector.broadcast %cst_39 : f32 to vector<2x128xf32>
    %155 = arith.addf %154, %153 : vector<2x128xf32>
    %156 = arith.divf %154, %155 : vector<2x128xf32>
    %157 = vector.extract_strided_slice %156 {offsets = [0, 0], sizes = [2, 32], strides = [1, 1]} : vector<2x128xf32> to vector<2x32xf32>
    %158 = vector.extract_strided_slice %156 {offsets = [0, 32], sizes = [2, 32], strides = [1, 1]} : vector<2x128xf32> to vector<2x32xf32>
    %159 = vector.extract_strided_slice %156 {offsets = [0, 96], sizes = [2, 32], strides = [1, 1]} : vector<2x128xf32> to vector<2x32xf32>
    %160 = vector.extract_strided_slice %136 {offsets = [0, 64], sizes = [2, 32], strides = [1, 1]} : vector<2x128xf32> to vector<2x32xf32>
    %161 = math.tanh %160 : vector<2x32xf32>
    %162 = arith.mulf %158, %126 : vector<2x32xf32>
    %163 = arith.mulf %157, %161 : vector<2x32xf32>
    %164 = arith.addf %162, %163 : vector<2x32xf32>
    %165 = math.tanh %164 : vector<2x32xf32>
    %166 = arith.mulf %159, %165 : vector<2x32xf32>
    %c6 = arith.constant 6 : index
    %c0_40 = arith.constant 0 : index
    %167 = vector.load %arg16[%c6, %c0_40] : memref<16x64xf32, #tpu.memory_space<vmem>>, vector<2x32xf32>
    tpu.vector_store %arg16[%c6, %c0_40], %151 {strides = array<i32>} : memref<16x64xf32, #tpu.memory_space<vmem>>, vector<2x32xf32>,
    %c8 = arith.constant 8 : index
    %c32_41 = arith.constant 32 : index
    %168 = vector.load %arg16[%c8, %c32_41] : memref<16x64xf32, #tpu.memory_space<vmem>>, vector<2x32xf32>
    tpu.vector_store %arg16[%c8, %c32_41], %166 {strides = array<i32>} : memref<16x64xf32, #tpu.memory_space<vmem>>, vector<2x32xf32>,
    %169 = vector.extract_strided_slice %5 {offsets = [8, 0], sizes = [2, 128], strides = [1, 1]} : vector<16x128xf32> to vector<2x128xf32>
    %cst_42 = arith.constant dense<0.000000e+00> : vector<2x128xf32>
    %170 = tpu.matmul %151, %11, %cst_42 {dimension_numbers = #tpu.dot_dimension_numbers<[1], [0], [0], [1], [0, 0, 1, 1], [], []>} : vector<2x32xf32>, vector<32x128xf32>, vector<2x128xf32> -> vector<2x128xf32>
    %171 = arith.addf %169, %170 : vector<2x128xf32>
    %172 = vector.extract_strided_slice %10 {offsets = [6, 0], sizes = [2, 128], strides = [1, 1]} : vector<16x128xf32> to vector<2x128xf32>
    %cst_43 = arith.constant dense<0.000000e+00> : vector<2x128xf32>
    %173 = tpu.matmul %166, %12, %cst_43 {dimension_numbers = #tpu.dot_dimension_numbers<[1], [0], [0], [1], [0, 0, 1, 1], [], []>} : vector<2x32xf32>, vector<32x128xf32>, vector<2x128xf32> -> vector<2x128xf32>
    %174 = arith.addf %172, %173 : vector<2x128xf32>
    %175 = arith.negf %171 : vector<2x128xf32>
    %176 = math.exp %175 : vector<2x128xf32>
    %cst_44 = arith.constant 1.000000e+00 : f32
    %177 = vector.broadcast %cst_44 : f32 to vector<2x128xf32>
    %178 = arith.addf %177, %176 : vector<2x128xf32>
    %179 = arith.divf %177, %178 : vector<2x128xf32>
    %180 = vector.extract_strided_slice %179 {offsets = [0, 0], sizes = [2, 32], strides = [1, 1]} : vector<2x128xf32> to vector<2x32xf32>
    %181 = vector.extract_strided_slice %179 {offsets = [0, 32], sizes = [2, 32], strides = [1, 1]} : vector<2x128xf32> to vector<2x32xf32>
    %182 = vector.extract_strided_slice %179 {offsets = [0, 96], sizes = [2, 32], strides = [1, 1]} : vector<2x128xf32> to vector<2x32xf32>
    %183 = vector.extract_strided_slice %171 {offsets = [0, 64], sizes = [2, 32], strides = [1, 1]} : vector<2x128xf32> to vector<2x32xf32>
    %184 = math.tanh %183 : vector<2x32xf32>
    %185 = arith.mulf %181, %149 : vector<2x32xf32>
    %186 = arith.mulf %180, %184 : vector<2x32xf32>
    %187 = arith.addf %185, %186 : vector<2x32xf32>
    %188 = math.tanh %187 : vector<2x32xf32>
    %189 = arith.mulf %182, %188 : vector<2x32xf32>
    %190 = arith.negf %174 : vector<2x128xf32>
    %191 = math.exp %190 : vector<2x128xf32>
    %cst_45 = arith.constant 1.000000e+00 : f32
    %192 = vector.broadcast %cst_45 : f32 to vector<2x128xf32>
    %193 = arith.addf %192, %191 : vector<2x128xf32>
    %194 = arith.divf %192, %193 : vector<2x128xf32>
    %195 = vector.extract_strided_slice %194 {offsets = [0, 0], sizes = [2, 32], strides = [1, 1]} : vector<2x128xf32> to vector<2x32xf32>
    %196 = vector.extract_strided_slice %194 {offsets = [0, 32], sizes = [2, 32], strides = [1, 1]} : vector<2x128xf32> to vector<2x32xf32>
    %197 = vector.extract_strided_slice %194 {offsets = [0, 96], sizes = [2, 32], strides = [1, 1]} : vector<2x128xf32> to vector<2x32xf32>
    %198 = vector.extract_strided_slice %174 {offsets = [0, 64], sizes = [2, 32], strides = [1, 1]} : vector<2x128xf32> to vector<2x32xf32>
    %199 = math.tanh %198 : vector<2x32xf32>
    %200 = arith.mulf %196, %164 : vector<2x32xf32>
    %201 = arith.mulf %195, %199 : vector<2x32xf32>
    %202 = arith.addf %200, %201 : vector<2x32xf32>
    %203 = math.tanh %202 : vector<2x32xf32>
    %204 = arith.mulf %197, %203 : vector<2x32xf32>
    %c8_46 = arith.constant 8 : index
    %c0_47 = arith.constant 0 : index
    %205 = vector.load %arg16[%c8_46, %c0_47] : memref<16x64xf32, #tpu.memory_space<vmem>>, vector<2x32xf32>
    tpu.vector_store %arg16[%c8_46, %c0_47], %189 {strides = array<i32>} : memref<16x64xf32, #tpu.memory_space<vmem>>, vector<2x32xf32>,
    %c6_48 = arith.constant 6 : index
    %c32_49 = arith.constant 32 : index
    %206 = vector.load %arg16[%c6_48, %c32_49] : memref<16x64xf32, #tpu.memory_space<vmem>>, vector<2x32xf32>
    tpu.vector_store %arg16[%c6_48, %c32_49], %204 {strides = array<i32>} : memref<16x64xf32, #tpu.memory_space<vmem>>, vector<2x32xf32>,
    %207 = vector.extract_strided_slice %5 {offsets = [10, 0], sizes = [2, 128], strides = [1, 1]} : vector<16x128xf32> to vector<2x128xf32>
    %cst_50 = arith.constant dense<0.000000e+00> : vector<2x128xf32>
    %208 = tpu.matmul %189, %11, %cst_50 {dimension_numbers = #tpu.dot_dimension_numbers<[1], [0], [0], [1], [0, 0, 1, 1], [], []>} : vector<2x32xf32>, vector<32x128xf32>, vector<2x128xf32> -> vector<2x128xf32>
    %209 = arith.addf %207, %208 : vector<2x128xf32>
    %210 = vector.extract_strided_slice %10 {offsets = [4, 0], sizes = [2, 128], strides = [1, 1]} : vector<16x128xf32> to vector<2x128xf32>
    %cst_51 = arith.constant dense<0.000000e+00> : vector<2x128xf32>
    %211 = tpu.matmul %204, %12, %cst_51 {dimension_numbers = #tpu.dot_dimension_numbers<[1], [0], [0], [1], [0, 0, 1, 1], [], []>} : vector<2x32xf32>, vector<32x128xf32>, vector<2x128xf32> -> vector<2x128xf32>
    %212 = arith.addf %210, %211 : vector<2x128xf32>
    %213 = arith.negf %209 : vector<2x128xf32>
    %214 = math.exp %213 : vector<2x128xf32>
    %cst_52 = arith.constant 1.000000e+00 : f32
    %215 = vector.broadcast %cst_52 : f32 to vector<2x128xf32>
    %216 = arith.addf %215, %214 : vector<2x128xf32>
    %217 = arith.divf %215, %216 : vector<2x128xf32>
    %218 = vector.extract_strided_slice %217 {offsets = [0, 0], sizes = [2, 32], strides = [1, 1]} : vector<2x128xf32> to vector<2x32xf32>
    %219 = vector.extract_strided_slice %217 {offsets = [0, 32], sizes = [2, 32], strides = [1, 1]} : vector<2x128xf32> to vector<2x32xf32>
    %220 = vector.extract_strided_slice %217 {offsets = [0, 96], sizes = [2, 32], strides = [1, 1]} : vector<2x128xf32> to vector<2x32xf32>
    %221 = vector.extract_strided_slice %209 {offsets = [0, 64], sizes = [2, 32], strides = [1, 1]} : vector<2x128xf32> to vector<2x32xf32>
    %222 = math.tanh %221 : vector<2x32xf32>
    %223 = arith.mulf %219, %187 : vector<2x32xf32>
    %224 = arith.mulf %218, %222 : vector<2x32xf32>
    %225 = arith.addf %223, %224 : vector<2x32xf32>
    %226 = math.tanh %225 : vector<2x32xf32>
    %227 = arith.mulf %220, %226 : vector<2x32xf32>
    %228 = arith.negf %212 : vector<2x128xf32>
    %229 = math.exp %228 : vector<2x128xf32>
    %cst_53 = arith.constant 1.000000e+00 : f32
    %230 = vector.broadcast %cst_53 : f32 to vector<2x128xf32>
    %231 = arith.addf %230, %229 : vector<2x128xf32>
    %232 = arith.divf %230, %231 : vector<2x128xf32>
    %233 = vector.extract_strided_slice %232 {offsets = [0, 0], sizes = [2, 32], strides = [1, 1]} : vector<2x128xf32> to vector<2x32xf32>
    %234 = vector.extract_strided_slice %232 {offsets = [0, 32], sizes = [2, 32], strides = [1, 1]} : vector<2x128xf32> to vector<2x32xf32>
    %235 = vector.extract_strided_slice %232 {offsets = [0, 96], sizes = [2, 32], strides = [1, 1]} : vector<2x128xf32> to vector<2x32xf32>
    %236 = vector.extract_strided_slice %212 {offsets = [0, 64], sizes = [2, 32], strides = [1, 1]} : vector<2x128xf32> to vector<2x32xf32>
    %237 = math.tanh %236 : vector<2x32xf32>
    %238 = arith.mulf %234, %202 : vector<2x32xf32>
    %239 = arith.mulf %233, %237 : vector<2x32xf32>
    %240 = arith.addf %238, %239 : vector<2x32xf32>
    %241 = math.tanh %240 : vector<2x32xf32>
    %242 = arith.mulf %235, %241 : vector<2x32xf32>
    %c10_54 = arith.constant 10 : index
    %c0_55 = arith.constant 0 : index
    %243 = vector.load %arg16[%c10_54, %c0_55] : memref<16x64xf32, #tpu.memory_space<vmem>>, vector<2x32xf32>
    tpu.vector_store %arg16[%c10_54, %c0_55], %227 {strides = array<i32>} : memref<16x64xf32, #tpu.memory_space<vmem>>, vector<2x32xf32>,
    %c4_56 = arith.constant 4 : index
    %c32_57 = arith.constant 32 : index
    %244 = vector.load %arg16[%c4_56, %c32_57] : memref<16x64xf32, #tpu.memory_space<vmem>>, vector<2x32xf32>
    tpu.vector_store %arg16[%c4_56, %c32_57], %242 {strides = array<i32>} : memref<16x64xf32, #tpu.memory_space<vmem>>, vector<2x32xf32>,
    %245 = vector.extract_strided_slice %5 {offsets = [12, 0], sizes = [2, 128], strides = [1, 1]} : vector<16x128xf32> to vector<2x128xf32>
    %cst_58 = arith.constant dense<0.000000e+00> : vector<2x128xf32>
    %246 = tpu.matmul %227, %11, %cst_58 {dimension_numbers = #tpu.dot_dimension_numbers<[1], [0], [0], [1], [0, 0, 1, 1], [], []>} : vector<2x32xf32>, vector<32x128xf32>, vector<2x128xf32> -> vector<2x128xf32>
    %247 = arith.addf %245, %246 : vector<2x128xf32>
    %248 = vector.extract_strided_slice %10 {offsets = [2, 0], sizes = [2, 128], strides = [1, 1]} : vector<16x128xf32> to vector<2x128xf32>
    %cst_59 = arith.constant dense<0.000000e+00> : vector<2x128xf32>
    %249 = tpu.matmul %242, %12, %cst_59 {dimension_numbers = #tpu.dot_dimension_numbers<[1], [0], [0], [1], [0, 0, 1, 1], [], []>} : vector<2x32xf32>, vector<32x128xf32>, vector<2x128xf32> -> vector<2x128xf32>
    %250 = arith.addf %248, %249 : vector<2x128xf32>
    %251 = arith.negf %247 : vector<2x128xf32>
    %252 = math.exp %251 : vector<2x128xf32>
    %cst_60 = arith.constant 1.000000e+00 : f32
    %253 = vector.broadcast %cst_60 : f32 to vector<2x128xf32>
    %254 = arith.addf %253, %252 : vector<2x128xf32>
    %255 = arith.divf %253, %254 : vector<2x128xf32>
    %256 = vector.extract_strided_slice %255 {offsets = [0, 0], sizes = [2, 32], strides = [1, 1]} : vector<2x128xf32> to vector<2x32xf32>
    %257 = vector.extract_strided_slice %255 {offsets = [0, 32], sizes = [2, 32], strides = [1, 1]} : vector<2x128xf32> to vector<2x32xf32>
    %258 = vector.extract_strided_slice %255 {offsets = [0, 96], sizes = [2, 32], strides = [1, 1]} : vector<2x128xf32> to vector<2x32xf32>
    %259 = vector.extract_strided_slice %247 {offsets = [0, 64], sizes = [2, 32], strides = [1, 1]} : vector<2x128xf32> to vector<2x32xf32>
    %260 = math.tanh %259 : vector<2x32xf32>
    %261 = arith.mulf %257, %225 : vector<2x32xf32>
    %262 = arith.mulf %256, %260 : vector<2x32xf32>
    %263 = arith.addf %261, %262 : vector<2x32xf32>
    %264 = math.tanh %263 : vector<2x32xf32>
    %265 = arith.mulf %258, %264 : vector<2x32xf32>
    %266 = arith.negf %250 : vector<2x128xf32>
    %267 = math.exp %266 : vector<2x128xf32>
    %cst_61 = arith.constant 1.000000e+00 : f32
    %268 = vector.broadcast %cst_61 : f32 to vector<2x128xf32>
    %269 = arith.addf %268, %267 : vector<2x128xf32>
    %270 = arith.divf %268, %269 : vector<2x128xf32>
    %271 = vector.extract_strided_slice %270 {offsets = [0, 0], sizes = [2, 32], strides = [1, 1]} : vector<2x128xf32> to vector<2x32xf32>
    %272 = vector.extract_strided_slice %270 {offsets = [0, 32], sizes = [2, 32], strides = [1, 1]} : vector<2x128xf32> to vector<2x32xf32>
    %273 = vector.extract_strided_slice %270 {offsets = [0, 96], sizes = [2, 32], strides = [1, 1]} : vector<2x128xf32> to vector<2x32xf32>
    %274 = vector.extract_strided_slice %250 {offsets = [0, 64], sizes = [2, 32], strides = [1, 1]} : vector<2x128xf32> to vector<2x32xf32>
    %275 = math.tanh %274 : vector<2x32xf32>
    %276 = arith.mulf %272, %240 : vector<2x32xf32>
    %277 = arith.mulf %271, %275 : vector<2x32xf32>
    %278 = arith.addf %276, %277 : vector<2x32xf32>
    %279 = math.tanh %278 : vector<2x32xf32>
    %280 = arith.mulf %273, %279 : vector<2x32xf32>
    %c12_62 = arith.constant 12 : index
    %c0_63 = arith.constant 0 : index
    %281 = vector.load %arg16[%c12_62, %c0_63] : memref<16x64xf32, #tpu.memory_space<vmem>>, vector<2x32xf32>
    tpu.vector_store %arg16[%c12_62, %c0_63], %265 {strides = array<i32>} : memref<16x64xf32, #tpu.memory_space<vmem>>, vector<2x32xf32>,
    %c2_64 = arith.constant 2 : index
    %c32_65 = arith.constant 32 : index
    %282 = vector.load %arg16[%c2_64, %c32_65] : memref<16x64xf32, #tpu.memory_space<vmem>>, vector<2x32xf32>
    tpu.vector_store %arg16[%c2_64, %c32_65], %280 {strides = array<i32>} : memref<16x64xf32, #tpu.memory_space<vmem>>, vector<2x32xf32>,
    %283 = vector.extract_strided_slice %5 {offsets = [14, 0], sizes = [2, 128], strides = [1, 1]} : vector<16x128xf32> to vector<2x128xf32>
    %cst_66 = arith.constant dense<0.000000e+00> : vector<2x128xf32>
    %284 = tpu.matmul %265, %11, %cst_66 {dimension_numbers = #tpu.dot_dimension_numbers<[1], [0], [0], [1], [0, 0, 1, 1], [], []>} : vector<2x32xf32>, vector<32x128xf32>, vector<2x128xf32> -> vector<2x128xf32>
    %285 = arith.addf %283, %284 : vector<2x128xf32>
    %286 = vector.extract_strided_slice %10 {offsets = [0, 0], sizes = [2, 128], strides = [1, 1]} : vector<16x128xf32> to vector<2x128xf32>
    %cst_67 = arith.constant dense<0.000000e+00> : vector<2x128xf32>
    %287 = tpu.matmul %280, %12, %cst_67 {dimension_numbers = #tpu.dot_dimension_numbers<[1], [0], [0], [1], [0, 0, 1, 1], [], []>} : vector<2x32xf32>, vector<32x128xf32>, vector<2x128xf32> -> vector<2x128xf32>
    %288 = arith.addf %286, %287 : vector<2x128xf32>
    %289 = arith.negf %285 : vector<2x128xf32>
    %290 = math.exp %289 : vector<2x128xf32>
    %cst_68 = arith.constant 1.000000e+00 : f32
    %291 = vector.broadcast %cst_68 : f32 to vector<2x128xf32>
    %292 = arith.addf %291, %290 : vector<2x128xf32>
    %293 = arith.divf %291, %292 : vector<2x128xf32>
    %294 = vector.extract_strided_slice %293 {offsets = [0, 0], sizes = [2, 32], strides = [1, 1]} : vector<2x128xf32> to vector<2x32xf32>
    %295 = vector.extract_strided_slice %293 {offsets = [0, 32], sizes = [2, 32], strides = [1, 1]} : vector<2x128xf32> to vector<2x32xf32>
    %296 = vector.extract_strided_slice %293 {offsets = [0, 96], sizes = [2, 32], strides = [1, 1]} : vector<2x128xf32> to vector<2x32xf32>
    %297 = vector.extract_strided_slice %285 {offsets = [0, 64], sizes = [2, 32], strides = [1, 1]} : vector<2x128xf32> to vector<2x32xf32>
    %298 = math.tanh %297 : vector<2x32xf32>
    %299 = arith.mulf %295, %263 : vector<2x32xf32>
    %300 = arith.mulf %294, %298 : vector<2x32xf32>
    %301 = arith.addf %299, %300 : vector<2x32xf32>
    %302 = math.tanh %301 : vector<2x32xf32>
    %303 = arith.mulf %296, %302 : vector<2x32xf32>
    %304 = arith.negf %288 : vector<2x128xf32>
    %305 = math.exp %304 : vector<2x128xf32>
    %cst_69 = arith.constant 1.000000e+00 : f32
    %306 = vector.broadcast %cst_69 : f32 to vector<2x128xf32>
    %307 = arith.addf %306, %305 : vector<2x128xf32>
    %308 = arith.divf %306, %307 : vector<2x128xf32>
    %309 = vector.extract_strided_slice %308 {offsets = [0, 0], sizes = [2, 32], strides = [1, 1]} : vector<2x128xf32> to vector<2x32xf32>
    %310 = vector.extract_strided_slice %308 {offsets = [0, 32], sizes = [2, 32], strides = [1, 1]} : vector<2x128xf32> to vector<2x32xf32>
    %311 = vector.extract_strided_slice %308 {offsets = [0, 96], sizes = [2, 32], strides = [1, 1]} : vector<2x128xf32> to vector<2x32xf32>
    %312 = vector.extract_strided_slice %288 {offsets = [0, 64], sizes = [2, 32], strides = [1, 1]} : vector<2x128xf32> to vector<2x32xf32>
    %313 = math.tanh %312 : vector<2x32xf32>
    %314 = arith.mulf %310, %278 : vector<2x32xf32>
    %315 = arith.mulf %309, %313 : vector<2x32xf32>
    %316 = arith.addf %314, %315 : vector<2x32xf32>
    %317 = math.tanh %316 : vector<2x32xf32>
    %318 = arith.mulf %311, %317 : vector<2x32xf32>
    %c14_70 = arith.constant 14 : index
    %c0_71 = arith.constant 0 : index
    %319 = vector.load %arg16[%c14_70, %c0_71] : memref<16x64xf32, #tpu.memory_space<vmem>>, vector<2x32xf32>
    tpu.vector_store %arg16[%c14_70, %c0_71], %303 {strides = array<i32>} : memref<16x64xf32, #tpu.memory_space<vmem>>, vector<2x32xf32>,
    %c0_72 = arith.constant 0 : index
    %c32_73 = arith.constant 32 : index
    %320 = vector.load %arg16[%c0_72, %c32_73] : memref<16x64xf32, #tpu.memory_space<vmem>>, vector<2x32xf32>
    tpu.vector_store %arg16[%c0_72, %c32_73], %318 {strides = array<i32>} : memref<16x64xf32, #tpu.memory_space<vmem>>, vector<2x32xf32>,
    %c0_74 = arith.constant 0 : index
    %c0_75 = arith.constant 0 : index
    %321 = vector.load %arg16[%c0_74, %c0_75] : memref<16x64xf32, #tpu.memory_space<vmem>>, vector<16x64xf32>
    %c0_76 = arith.constant 0 : index
    %c0_77 = arith.constant 0 : index
    %322 = vector.load %arg7[%c0_76, %c0_77] : memref<64x128xf32, #tpu.memory_space<vmem>>, vector<64x128xf32>
    %cst_78 = arith.constant dense<0.000000e+00> : vector<16x128xf32>
    %323 = tpu.matmul %321, %322, %cst_78 {dimension_numbers = #tpu.dot_dimension_numbers<[1], [0], [0], [1], [0, 0, 1, 1], [], []>} : vector<16x64xf32>, vector<64x128xf32>, vector<16x128xf32> -> vector<16x128xf32>
    %c0_79 = arith.constant 0 : index
    %c0_80 = arith.constant 0 : index
    %324 = vector.load %arg9[%c0_79, %c0_80] : memref<1x128xf32, #tpu.memory_space<vmem>>, vector<1x128xf32>
    %325 = vector.broadcast %324 : vector<1x128xf32> to vector<16x128xf32>
    %326 = arith.addf %323, %325 : vector<16x128xf32>
    %c0_81 = arith.constant 0 : index
    %c0_82 = arith.constant 0 : index
    %327 = vector.load %arg10[%c0_81, %c0_82] : memref<64x128xf32, #tpu.memory_space<vmem>>, vector<64x128xf32>
    %cst_83 = arith.constant dense<0.000000e+00> : vector<16x128xf32>
    %328 = tpu.matmul %321, %327, %cst_83 {dimension_numbers = #tpu.dot_dimension_numbers<[1], [0], [0], [1], [0, 0, 1, 1], [], []>} : vector<16x64xf32>, vector<64x128xf32>, vector<16x128xf32> -> vector<16x128xf32>
    %c0_84 = arith.constant 0 : index
    %c0_85 = arith.constant 0 : index
    %329 = vector.load %arg12[%c0_84, %c0_85] : memref<1x128xf32, #tpu.memory_space<vmem>>, vector<1x128xf32>
    %330 = vector.broadcast %329 : vector<1x128xf32> to vector<16x128xf32>
    %331 = arith.addf %328, %330 : vector<16x128xf32>
    %c0_86 = arith.constant 0 : index
    %c0_87 = arith.constant 0 : index
    %332 = vector.load %arg8[%c0_86, %c0_87] : memref<32x128xf32, #tpu.memory_space<vmem>>, vector<32x128xf32>
    %c0_88 = arith.constant 0 : index
    %c0_89 = arith.constant 0 : index
    %333 = vector.load %arg11[%c0_88, %c0_89] : memref<32x128xf32, #tpu.memory_space<vmem>>, vector<32x128xf32>
    %cst_90 = arith.constant 0.000000e+00 : f32
    %334 = vector.broadcast %cst_90 : f32 to vector<2x32xf32>
    %cst_91 = arith.constant 0.000000e+00 : f32
    %335 = vector.broadcast %cst_91 : f32 to vector<2x32xf32>
    %cst_92 = arith.constant 0.000000e+00 : f32
    %336 = vector.broadcast %cst_92 : f32 to vector<2x32xf32>
    %cst_93 = arith.constant 0.000000e+00 : f32
    %337 = vector.broadcast %cst_93 : f32 to vector<2x32xf32>
    %338 = vector.extract_strided_slice %326 {offsets = [0, 0], sizes = [2, 128], strides = [1, 1]} : vector<16x128xf32> to vector<2x128xf32>
    %cst_94 = arith.constant dense<0.000000e+00> : vector<2x128xf32>
    %339 = tpu.matmul %334, %332, %cst_94 {dimension_numbers = #tpu.dot_dimension_numbers<[1], [0], [0], [1], [0, 0, 1, 1], [], []>} : vector<2x32xf32>, vector<32x128xf32>, vector<2x128xf32> -> vector<2x128xf32>
    %340 = arith.addf %338, %339 : vector<2x128xf32>
    %341 = vector.extract_strided_slice %331 {offsets = [14, 0], sizes = [2, 128], strides = [1, 1]} : vector<16x128xf32> to vector<2x128xf32>
    %cst_95 = arith.constant dense<0.000000e+00> : vector<2x128xf32>
    %342 = tpu.matmul %336, %333, %cst_95 {dimension_numbers = #tpu.dot_dimension_numbers<[1], [0], [0], [1], [0, 0, 1, 1], [], []>} : vector<2x32xf32>, vector<32x128xf32>, vector<2x128xf32> -> vector<2x128xf32>
    %343 = arith.addf %341, %342 : vector<2x128xf32>
    %344 = arith.negf %340 : vector<2x128xf32>
    %345 = math.exp %344 : vector<2x128xf32>
    %cst_96 = arith.constant 1.000000e+00 : f32
    %346 = vector.broadcast %cst_96 : f32 to vector<2x128xf32>
    %347 = arith.addf %346, %345 : vector<2x128xf32>
    %348 = arith.divf %346, %347 : vector<2x128xf32>
    %349 = vector.extract_strided_slice %348 {offsets = [0, 0], sizes = [2, 32], strides = [1, 1]} : vector<2x128xf32> to vector<2x32xf32>
    %350 = vector.extract_strided_slice %348 {offsets = [0, 32], sizes = [2, 32], strides = [1, 1]} : vector<2x128xf32> to vector<2x32xf32>
    %351 = vector.extract_strided_slice %348 {offsets = [0, 96], sizes = [2, 32], strides = [1, 1]} : vector<2x128xf32> to vector<2x32xf32>
    %352 = vector.extract_strided_slice %340 {offsets = [0, 64], sizes = [2, 32], strides = [1, 1]} : vector<2x128xf32> to vector<2x32xf32>
    %353 = math.tanh %352 : vector<2x32xf32>
    %354 = arith.mulf %350, %335 : vector<2x32xf32>
    %355 = arith.mulf %349, %353 : vector<2x32xf32>
    %356 = arith.addf %354, %355 : vector<2x32xf32>
    %357 = math.tanh %356 : vector<2x32xf32>
    %358 = arith.mulf %351, %357 : vector<2x32xf32>
    %359 = arith.negf %343 : vector<2x128xf32>
    %360 = math.exp %359 : vector<2x128xf32>
    %cst_97 = arith.constant 1.000000e+00 : f32
    %361 = vector.broadcast %cst_97 : f32 to vector<2x128xf32>
    %362 = arith.addf %361, %360 : vector<2x128xf32>
    %363 = arith.divf %361, %362 : vector<2x128xf32>
    %364 = vector.extract_strided_slice %363 {offsets = [0, 0], sizes = [2, 32], strides = [1, 1]} : vector<2x128xf32> to vector<2x32xf32>
    %365 = vector.extract_strided_slice %363 {offsets = [0, 32], sizes = [2, 32], strides = [1, 1]} : vector<2x128xf32> to vector<2x32xf32>
    %366 = vector.extract_strided_slice %363 {offsets = [0, 96], sizes = [2, 32], strides = [1, 1]} : vector<2x128xf32> to vector<2x32xf32>
    %367 = vector.extract_strided_slice %343 {offsets = [0, 64], sizes = [2, 32], strides = [1, 1]} : vector<2x128xf32> to vector<2x32xf32>
    %368 = math.tanh %367 : vector<2x32xf32>
    %369 = arith.mulf %365, %337 : vector<2x32xf32>
    %370 = arith.mulf %364, %368 : vector<2x32xf32>
    %371 = arith.addf %369, %370 : vector<2x32xf32>
    %372 = math.tanh %371 : vector<2x32xf32>
    %373 = arith.mulf %366, %372 : vector<2x32xf32>
    %374 = vector.extract_strided_slice %326 {offsets = [2, 0], sizes = [2, 128], strides = [1, 1]} : vector<16x128xf32> to vector<2x128xf32>
    %cst_98 = arith.constant dense<0.000000e+00> : vector<2x128xf32>
    %375 = tpu.matmul %358, %332, %cst_98 {dimension_numbers = #tpu.dot_dimension_numbers<[1], [0], [0], [1], [0, 0, 1, 1], [], []>} : vector<2x32xf32>, vector<32x128xf32>, vector<2x128xf32> -> vector<2x128xf32>
    %376 = arith.addf %374, %375 : vector<2x128xf32>
    %377 = vector.extract_strided_slice %331 {offsets = [12, 0], sizes = [2, 128], strides = [1, 1]} : vector<16x128xf32> to vector<2x128xf32>
    %cst_99 = arith.constant dense<0.000000e+00> : vector<2x128xf32>
    %378 = tpu.matmul %373, %333, %cst_99 {dimension_numbers = #tpu.dot_dimension_numbers<[1], [0], [0], [1], [0, 0, 1, 1], [], []>} : vector<2x32xf32>, vector<32x128xf32>, vector<2x128xf32> -> vector<2x128xf32>
    %379 = arith.addf %377, %378 : vector<2x128xf32>
    %380 = arith.negf %376 : vector<2x128xf32>
    %381 = math.exp %380 : vector<2x128xf32>
    %cst_100 = arith.constant 1.000000e+00 : f32
    %382 = vector.broadcast %cst_100 : f32 to vector<2x128xf32>
    %383 = arith.addf %382, %381 : vector<2x128xf32>
    %384 = arith.divf %382, %383 : vector<2x128xf32>
    %385 = vector.extract_strided_slice %384 {offsets = [0, 0], sizes = [2, 32], strides = [1, 1]} : vector<2x128xf32> to vector<2x32xf32>
    %386 = vector.extract_strided_slice %384 {offsets = [0, 32], sizes = [2, 32], strides = [1, 1]} : vector<2x128xf32> to vector<2x32xf32>
    %387 = vector.extract_strided_slice %384 {offsets = [0, 96], sizes = [2, 32], strides = [1, 1]} : vector<2x128xf32> to vector<2x32xf32>
    %388 = vector.extract_strided_slice %376 {offsets = [0, 64], sizes = [2, 32], strides = [1, 1]} : vector<2x128xf32> to vector<2x32xf32>
    %389 = math.tanh %388 : vector<2x32xf32>
    %390 = arith.mulf %386, %356 : vector<2x32xf32>
    %391 = arith.mulf %385, %389 : vector<2x32xf32>
    %392 = arith.addf %390, %391 : vector<2x32xf32>
    %393 = math.tanh %392 : vector<2x32xf32>
    %394 = arith.mulf %387, %393 : vector<2x32xf32>
    %395 = arith.negf %379 : vector<2x128xf32>
    %396 = math.exp %395 : vector<2x128xf32>
    %cst_101 = arith.constant 1.000000e+00 : f32
    %397 = vector.broadcast %cst_101 : f32 to vector<2x128xf32>
    %398 = arith.addf %397, %396 : vector<2x128xf32>
    %399 = arith.divf %397, %398 : vector<2x128xf32>
    %400 = vector.extract_strided_slice %399 {offsets = [0, 0], sizes = [2, 32], strides = [1, 1]} : vector<2x128xf32> to vector<2x32xf32>
    %401 = vector.extract_strided_slice %399 {offsets = [0, 32], sizes = [2, 32], strides = [1, 1]} : vector<2x128xf32> to vector<2x32xf32>
    %402 = vector.extract_strided_slice %399 {offsets = [0, 96], sizes = [2, 32], strides = [1, 1]} : vector<2x128xf32> to vector<2x32xf32>
    %403 = vector.extract_strided_slice %379 {offsets = [0, 64], sizes = [2, 32], strides = [1, 1]} : vector<2x128xf32> to vector<2x32xf32>
    %404 = math.tanh %403 : vector<2x32xf32>
    %405 = arith.mulf %401, %371 : vector<2x32xf32>
    %406 = arith.mulf %400, %404 : vector<2x32xf32>
    %407 = arith.addf %405, %406 : vector<2x32xf32>
    %408 = math.tanh %407 : vector<2x32xf32>
    %409 = arith.mulf %402, %408 : vector<2x32xf32>
    %410 = vector.extract_strided_slice %326 {offsets = [4, 0], sizes = [2, 128], strides = [1, 1]} : vector<16x128xf32> to vector<2x128xf32>
    %cst_102 = arith.constant dense<0.000000e+00> : vector<2x128xf32>
    %411 = tpu.matmul %394, %332, %cst_102 {dimension_numbers = #tpu.dot_dimension_numbers<[1], [0], [0], [1], [0, 0, 1, 1], [], []>} : vector<2x32xf32>, vector<32x128xf32>, vector<2x128xf32> -> vector<2x128xf32>
    %412 = arith.addf %410, %411 : vector<2x128xf32>
    %413 = vector.extract_strided_slice %331 {offsets = [10, 0], sizes = [2, 128], strides = [1, 1]} : vector<16x128xf32> to vector<2x128xf32>
    %cst_103 = arith.constant dense<0.000000e+00> : vector<2x128xf32>
    %414 = tpu.matmul %409, %333, %cst_103 {dimension_numbers = #tpu.dot_dimension_numbers<[1], [0], [0], [1], [0, 0, 1, 1], [], []>} : vector<2x32xf32>, vector<32x128xf32>, vector<2x128xf32> -> vector<2x128xf32>
    %415 = arith.addf %413, %414 : vector<2x128xf32>
    %416 = arith.negf %412 : vector<2x128xf32>
    %417 = math.exp %416 : vector<2x128xf32>
    %cst_104 = arith.constant 1.000000e+00 : f32
    %418 = vector.broadcast %cst_104 : f32 to vector<2x128xf32>
    %419 = arith.addf %418, %417 : vector<2x128xf32>
    %420 = arith.divf %418, %419 : vector<2x128xf32>
    %421 = vector.extract_strided_slice %420 {offsets = [0, 0], sizes = [2, 32], strides = [1, 1]} : vector<2x128xf32> to vector<2x32xf32>
    %422 = vector.extract_strided_slice %420 {offsets = [0, 32], sizes = [2, 32], strides = [1, 1]} : vector<2x128xf32> to vector<2x32xf32>
    %423 = vector.extract_strided_slice %420 {offsets = [0, 96], sizes = [2, 32], strides = [1, 1]} : vector<2x128xf32> to vector<2x32xf32>
    %424 = vector.extract_strided_slice %412 {offsets = [0, 64], sizes = [2, 32], strides = [1, 1]} : vector<2x128xf32> to vector<2x32xf32>
    %425 = math.tanh %424 : vector<2x32xf32>
    %426 = arith.mulf %422, %392 : vector<2x32xf32>
    %427 = arith.mulf %421, %425 : vector<2x32xf32>
    %428 = arith.addf %426, %427 : vector<2x32xf32>
    %429 = math.tanh %428 : vector<2x32xf32>
    %430 = arith.mulf %423, %429 : vector<2x32xf32>
    %431 = arith.negf %415 : vector<2x128xf32>
    %432 = math.exp %431 : vector<2x128xf32>
    %cst_105 = arith.constant 1.000000e+00 : f32
    %433 = vector.broadcast %cst_105 : f32 to vector<2x128xf32>
    %434 = arith.addf %433, %432 : vector<2x128xf32>
    %435 = arith.divf %433, %434 : vector<2x128xf32>
    %436 = vector.extract_strided_slice %435 {offsets = [0, 0], sizes = [2, 32], strides = [1, 1]} : vector<2x128xf32> to vector<2x32xf32>
    %437 = vector.extract_strided_slice %435 {offsets = [0, 32], sizes = [2, 32], strides = [1, 1]} : vector<2x128xf32> to vector<2x32xf32>
    %438 = vector.extract_strided_slice %435 {offsets = [0, 96], sizes = [2, 32], strides = [1, 1]} : vector<2x128xf32> to vector<2x32xf32>
    %439 = vector.extract_strided_slice %415 {offsets = [0, 64], sizes = [2, 32], strides = [1, 1]} : vector<2x128xf32> to vector<2x32xf32>
    %440 = math.tanh %439 : vector<2x32xf32>
    %441 = arith.mulf %437, %407 : vector<2x32xf32>
    %442 = arith.mulf %436, %440 : vector<2x32xf32>
    %443 = arith.addf %441, %442 : vector<2x32xf32>
    %444 = math.tanh %443 : vector<2x32xf32>
    %445 = arith.mulf %438, %444 : vector<2x32xf32>
    %446 = vector.extract_strided_slice %326 {offsets = [6, 0], sizes = [2, 128], strides = [1, 1]} : vector<16x128xf32> to vector<2x128xf32>
    %cst_106 = arith.constant dense<0.000000e+00> : vector<2x128xf32>
    %447 = tpu.matmul %430, %332, %cst_106 {dimension_numbers = #tpu.dot_dimension_numbers<[1], [0], [0], [1], [0, 0, 1, 1], [], []>} : vector<2x32xf32>, vector<32x128xf32>, vector<2x128xf32> -> vector<2x128xf32>
    %448 = arith.addf %446, %447 : vector<2x128xf32>
    %449 = vector.extract_strided_slice %331 {offsets = [8, 0], sizes = [2, 128], strides = [1, 1]} : vector<16x128xf32> to vector<2x128xf32>
    %cst_107 = arith.constant dense<0.000000e+00> : vector<2x128xf32>
    %450 = tpu.matmul %445, %333, %cst_107 {dimension_numbers = #tpu.dot_dimension_numbers<[1], [0], [0], [1], [0, 0, 1, 1], [], []>} : vector<2x32xf32>, vector<32x128xf32>, vector<2x128xf32> -> vector<2x128xf32>
    %451 = arith.addf %449, %450 : vector<2x128xf32>
    %452 = arith.negf %448 : vector<2x128xf32>
    %453 = math.exp %452 : vector<2x128xf32>
    %cst_108 = arith.constant 1.000000e+00 : f32
    %454 = vector.broadcast %cst_108 : f32 to vector<2x128xf32>
    %455 = arith.addf %454, %453 : vector<2x128xf32>
    %456 = arith.divf %454, %455 : vector<2x128xf32>
    %457 = vector.extract_strided_slice %456 {offsets = [0, 0], sizes = [2, 32], strides = [1, 1]} : vector<2x128xf32> to vector<2x32xf32>
    %458 = vector.extract_strided_slice %456 {offsets = [0, 32], sizes = [2, 32], strides = [1, 1]} : vector<2x128xf32> to vector<2x32xf32>
    %459 = vector.extract_strided_slice %456 {offsets = [0, 96], sizes = [2, 32], strides = [1, 1]} : vector<2x128xf32> to vector<2x32xf32>
    %460 = vector.extract_strided_slice %448 {offsets = [0, 64], sizes = [2, 32], strides = [1, 1]} : vector<2x128xf32> to vector<2x32xf32>
    %461 = math.tanh %460 : vector<2x32xf32>
    %462 = arith.mulf %458, %428 : vector<2x32xf32>
    %463 = arith.mulf %457, %461 : vector<2x32xf32>
    %464 = arith.addf %462, %463 : vector<2x32xf32>
    %465 = math.tanh %464 : vector<2x32xf32>
    %466 = arith.mulf %459, %465 : vector<2x32xf32>
    %467 = arith.negf %451 : vector<2x128xf32>
    %468 = math.exp %467 : vector<2x128xf32>
    %cst_109 = arith.constant 1.000000e+00 : f32
    %469 = vector.broadcast %cst_109 : f32 to vector<2x128xf32>
    %470 = arith.addf %469, %468 : vector<2x128xf32>
    %471 = arith.divf %469, %470 : vector<2x128xf32>
    %472 = vector.extract_strided_slice %471 {offsets = [0, 0], sizes = [2, 32], strides = [1, 1]} : vector<2x128xf32> to vector<2x32xf32>
    %473 = vector.extract_strided_slice %471 {offsets = [0, 32], sizes = [2, 32], strides = [1, 1]} : vector<2x128xf32> to vector<2x32xf32>
    %474 = vector.extract_strided_slice %471 {offsets = [0, 96], sizes = [2, 32], strides = [1, 1]} : vector<2x128xf32> to vector<2x32xf32>
    %475 = vector.extract_strided_slice %451 {offsets = [0, 64], sizes = [2, 32], strides = [1, 1]} : vector<2x128xf32> to vector<2x32xf32>
    %476 = math.tanh %475 : vector<2x32xf32>
    %477 = arith.mulf %473, %443 : vector<2x32xf32>
    %478 = arith.mulf %472, %476 : vector<2x32xf32>
    %479 = arith.addf %477, %478 : vector<2x32xf32>
    %480 = math.tanh %479 : vector<2x32xf32>
    %481 = arith.mulf %474, %480 : vector<2x32xf32>
    %482 = vector.extract_strided_slice %326 {offsets = [8, 0], sizes = [2, 128], strides = [1, 1]} : vector<16x128xf32> to vector<2x128xf32>
    %cst_110 = arith.constant dense<0.000000e+00> : vector<2x128xf32>
    %483 = tpu.matmul %466, %332, %cst_110 {dimension_numbers = #tpu.dot_dimension_numbers<[1], [0], [0], [1], [0, 0, 1, 1], [], []>} : vector<2x32xf32>, vector<32x128xf32>, vector<2x128xf32> -> vector<2x128xf32>
    %484 = arith.addf %482, %483 : vector<2x128xf32>
    %485 = vector.extract_strided_slice %331 {offsets = [6, 0], sizes = [2, 128], strides = [1, 1]} : vector<16x128xf32> to vector<2x128xf32>
    %cst_111 = arith.constant dense<0.000000e+00> : vector<2x128xf32>
    %486 = tpu.matmul %481, %333, %cst_111 {dimension_numbers = #tpu.dot_dimension_numbers<[1], [0], [0], [1], [0, 0, 1, 1], [], []>} : vector<2x32xf32>, vector<32x128xf32>, vector<2x128xf32> -> vector<2x128xf32>
    %487 = arith.addf %485, %486 : vector<2x128xf32>
    %488 = arith.negf %484 : vector<2x128xf32>
    %489 = math.exp %488 : vector<2x128xf32>
    %cst_112 = arith.constant 1.000000e+00 : f32
    %490 = vector.broadcast %cst_112 : f32 to vector<2x128xf32>
    %491 = arith.addf %490, %489 : vector<2x128xf32>
    %492 = arith.divf %490, %491 : vector<2x128xf32>
    %493 = vector.extract_strided_slice %492 {offsets = [0, 0], sizes = [2, 32], strides = [1, 1]} : vector<2x128xf32> to vector<2x32xf32>
    %494 = vector.extract_strided_slice %492 {offsets = [0, 32], sizes = [2, 32], strides = [1, 1]} : vector<2x128xf32> to vector<2x32xf32>
    %495 = vector.extract_strided_slice %492 {offsets = [0, 96], sizes = [2, 32], strides = [1, 1]} : vector<2x128xf32> to vector<2x32xf32>
    %496 = vector.extract_strided_slice %484 {offsets = [0, 64], sizes = [2, 32], strides = [1, 1]} : vector<2x128xf32> to vector<2x32xf32>
    %497 = math.tanh %496 : vector<2x32xf32>
    %498 = arith.mulf %494, %464 : vector<2x32xf32>
    %499 = arith.mulf %493, %497 : vector<2x32xf32>
    %500 = arith.addf %498, %499 : vector<2x32xf32>
    %501 = math.tanh %500 : vector<2x32xf32>
    %502 = arith.mulf %495, %501 : vector<2x32xf32>
    %503 = arith.negf %487 : vector<2x128xf32>
    %504 = math.exp %503 : vector<2x128xf32>
    %cst_113 = arith.constant 1.000000e+00 : f32
    %505 = vector.broadcast %cst_113 : f32 to vector<2x128xf32>
    %506 = arith.addf %505, %504 : vector<2x128xf32>
    %507 = arith.divf %505, %506 : vector<2x128xf32>
    %508 = vector.extract_strided_slice %507 {offsets = [0, 0], sizes = [2, 32], strides = [1, 1]} : vector<2x128xf32> to vector<2x32xf32>
    %509 = vector.extract_strided_slice %507 {offsets = [0, 32], sizes = [2, 32], strides = [1, 1]} : vector<2x128xf32> to vector<2x32xf32>
    %510 = vector.extract_strided_slice %507 {offsets = [0, 96], sizes = [2, 32], strides = [1, 1]} : vector<2x128xf32> to vector<2x32xf32>
    %511 = vector.extract_strided_slice %487 {offsets = [0, 64], sizes = [2, 32], strides = [1, 1]} : vector<2x128xf32> to vector<2x32xf32>
    %512 = math.tanh %511 : vector<2x32xf32>
    %513 = arith.mulf %509, %479 : vector<2x32xf32>
    %514 = arith.mulf %508, %512 : vector<2x32xf32>
    %515 = arith.addf %513, %514 : vector<2x32xf32>
    %516 = math.tanh %515 : vector<2x32xf32>
    %517 = arith.mulf %510, %516 : vector<2x32xf32>
    %518 = vector.extract_strided_slice %326 {offsets = [10, 0], sizes = [2, 128], strides = [1, 1]} : vector<16x128xf32> to vector<2x128xf32>
    %cst_114 = arith.constant dense<0.000000e+00> : vector<2x128xf32>
    %519 = tpu.matmul %502, %332, %cst_114 {dimension_numbers = #tpu.dot_dimension_numbers<[1], [0], [0], [1], [0, 0, 1, 1], [], []>} : vector<2x32xf32>, vector<32x128xf32>, vector<2x128xf32> -> vector<2x128xf32>
    %520 = arith.addf %518, %519 : vector<2x128xf32>
    %521 = vector.extract_strided_slice %331 {offsets = [4, 0], sizes = [2, 128], strides = [1, 1]} : vector<16x128xf32> to vector<2x128xf32>
    %cst_115 = arith.constant dense<0.000000e+00> : vector<2x128xf32>
    %522 = tpu.matmul %517, %333, %cst_115 {dimension_numbers = #tpu.dot_dimension_numbers<[1], [0], [0], [1], [0, 0, 1, 1], [], []>} : vector<2x32xf32>, vector<32x128xf32>, vector<2x128xf32> -> vector<2x128xf32>
    %523 = arith.addf %521, %522 : vector<2x128xf32>
    %524 = arith.negf %520 : vector<2x128xf32>
    %525 = math.exp %524 : vector<2x128xf32>
    %cst_116 = arith.constant 1.000000e+00 : f32
    %526 = vector.broadcast %cst_116 : f32 to vector<2x128xf32>
    %527 = arith.addf %526, %525 : vector<2x128xf32>
    %528 = arith.divf %526, %527 : vector<2x128xf32>
    %529 = vector.extract_strided_slice %528 {offsets = [0, 0], sizes = [2, 32], strides = [1, 1]} : vector<2x128xf32> to vector<2x32xf32>
    %530 = vector.extract_strided_slice %528 {offsets = [0, 32], sizes = [2, 32], strides = [1, 1]} : vector<2x128xf32> to vector<2x32xf32>
    %531 = vector.extract_strided_slice %528 {offsets = [0, 96], sizes = [2, 32], strides = [1, 1]} : vector<2x128xf32> to vector<2x32xf32>
    %532 = vector.extract_strided_slice %520 {offsets = [0, 64], sizes = [2, 32], strides = [1, 1]} : vector<2x128xf32> to vector<2x32xf32>
    %533 = math.tanh %532 : vector<2x32xf32>
    %534 = arith.mulf %530, %500 : vector<2x32xf32>
    %535 = arith.mulf %529, %533 : vector<2x32xf32>
    %536 = arith.addf %534, %535 : vector<2x32xf32>
    %537 = math.tanh %536 : vector<2x32xf32>
    %538 = arith.mulf %531, %537 : vector<2x32xf32>
    %539 = arith.negf %523 : vector<2x128xf32>
    %540 = math.exp %539 : vector<2x128xf32>
    %cst_117 = arith.constant 1.000000e+00 : f32
    %541 = vector.broadcast %cst_117 : f32 to vector<2x128xf32>
    %542 = arith.addf %541, %540 : vector<2x128xf32>
    %543 = arith.divf %541, %542 : vector<2x128xf32>
    %544 = vector.extract_strided_slice %543 {offsets = [0, 0], sizes = [2, 32], strides = [1, 1]} : vector<2x128xf32> to vector<2x32xf32>
    %545 = vector.extract_strided_slice %543 {offsets = [0, 32], sizes = [2, 32], strides = [1, 1]} : vector<2x128xf32> to vector<2x32xf32>
    %546 = vector.extract_strided_slice %543 {offsets = [0, 96], sizes = [2, 32], strides = [1, 1]} : vector<2x128xf32> to vector<2x32xf32>
    %547 = vector.extract_strided_slice %523 {offsets = [0, 64], sizes = [2, 32], strides = [1, 1]} : vector<2x128xf32> to vector<2x32xf32>
    %548 = math.tanh %547 : vector<2x32xf32>
    %549 = arith.mulf %545, %515 : vector<2x32xf32>
    %550 = arith.mulf %544, %548 : vector<2x32xf32>
    %551 = arith.addf %549, %550 : vector<2x32xf32>
    %552 = math.tanh %551 : vector<2x32xf32>
    %553 = arith.mulf %546, %552 : vector<2x32xf32>
    %554 = vector.extract_strided_slice %326 {offsets = [12, 0], sizes = [2, 128], strides = [1, 1]} : vector<16x128xf32> to vector<2x128xf32>
    %cst_118 = arith.constant dense<0.000000e+00> : vector<2x128xf32>
    %555 = tpu.matmul %538, %332, %cst_118 {dimension_numbers = #tpu.dot_dimension_numbers<[1], [0], [0], [1], [0, 0, 1, 1], [], []>} : vector<2x32xf32>, vector<32x128xf32>, vector<2x128xf32> -> vector<2x128xf32>
    %556 = arith.addf %554, %555 : vector<2x128xf32>
    %557 = vector.extract_strided_slice %331 {offsets = [2, 0], sizes = [2, 128], strides = [1, 1]} : vector<16x128xf32> to vector<2x128xf32>
    %cst_119 = arith.constant dense<0.000000e+00> : vector<2x128xf32>
    %558 = tpu.matmul %553, %333, %cst_119 {dimension_numbers = #tpu.dot_dimension_numbers<[1], [0], [0], [1], [0, 0, 1, 1], [], []>} : vector<2x32xf32>, vector<32x128xf32>, vector<2x128xf32> -> vector<2x128xf32>
    %559 = arith.addf %557, %558 : vector<2x128xf32>
    %560 = arith.negf %556 : vector<2x128xf32>
    %561 = math.exp %560 : vector<2x128xf32>
    %cst_120 = arith.constant 1.000000e+00 : f32
    %562 = vector.broadcast %cst_120 : f32 to vector<2x128xf32>
    %563 = arith.addf %562, %561 : vector<2x128xf32>
    %564 = arith.divf %562, %563 : vector<2x128xf32>
    %565 = vector.extract_strided_slice %564 {offsets = [0, 0], sizes = [2, 32], strides = [1, 1]} : vector<2x128xf32> to vector<2x32xf32>
    %566 = vector.extract_strided_slice %564 {offsets = [0, 32], sizes = [2, 32], strides = [1, 1]} : vector<2x128xf32> to vector<2x32xf32>
    %567 = vector.extract_strided_slice %564 {offsets = [0, 96], sizes = [2, 32], strides = [1, 1]} : vector<2x128xf32> to vector<2x32xf32>
    %568 = vector.extract_strided_slice %556 {offsets = [0, 64], sizes = [2, 32], strides = [1, 1]} : vector<2x128xf32> to vector<2x32xf32>
    %569 = math.tanh %568 : vector<2x32xf32>
    %570 = arith.mulf %566, %536 : vector<2x32xf32>
    %571 = arith.mulf %565, %569 : vector<2x32xf32>
    %572 = arith.addf %570, %571 : vector<2x32xf32>
    %573 = math.tanh %572 : vector<2x32xf32>
    %574 = arith.mulf %567, %573 : vector<2x32xf32>
    %575 = arith.negf %559 : vector<2x128xf32>
    %576 = math.exp %575 : vector<2x128xf32>
    %cst_121 = arith.constant 1.000000e+00 : f32
    %577 = vector.broadcast %cst_121 : f32 to vector<2x128xf32>
    %578 = arith.addf %577, %576 : vector<2x128xf32>
    %579 = arith.divf %577, %578 : vector<2x128xf32>
    %580 = vector.extract_strided_slice %579 {offsets = [0, 0], sizes = [2, 32], strides = [1, 1]} : vector<2x128xf32> to vector<2x32xf32>
    %581 = vector.extract_strided_slice %579 {offsets = [0, 32], sizes = [2, 32], strides = [1, 1]} : vector<2x128xf32> to vector<2x32xf32>
    %582 = vector.extract_strided_slice %579 {offsets = [0, 96], sizes = [2, 32], strides = [1, 1]} : vector<2x128xf32> to vector<2x32xf32>
    %583 = vector.extract_strided_slice %559 {offsets = [0, 64], sizes = [2, 32], strides = [1, 1]} : vector<2x128xf32> to vector<2x32xf32>
    %584 = math.tanh %583 : vector<2x32xf32>
    %585 = arith.mulf %581, %551 : vector<2x32xf32>
    %586 = arith.mulf %580, %584 : vector<2x32xf32>
    %587 = arith.addf %585, %586 : vector<2x32xf32>
    %588 = math.tanh %587 : vector<2x32xf32>
    %589 = arith.mulf %582, %588 : vector<2x32xf32>
    %590 = vector.extract_strided_slice %326 {offsets = [14, 0], sizes = [2, 128], strides = [1, 1]} : vector<16x128xf32> to vector<2x128xf32>
    %cst_122 = arith.constant dense<0.000000e+00> : vector<2x128xf32>
    %591 = tpu.matmul %574, %332, %cst_122 {dimension_numbers = #tpu.dot_dimension_numbers<[1], [0], [0], [1], [0, 0, 1, 1], [], []>} : vector<2x32xf32>, vector<32x128xf32>, vector<2x128xf32> -> vector<2x128xf32>
    %592 = arith.addf %590, %591 : vector<2x128xf32>
    %593 = vector.extract_strided_slice %331 {offsets = [0, 0], sizes = [2, 128], strides = [1, 1]} : vector<16x128xf32> to vector<2x128xf32>
    %cst_123 = arith.constant dense<0.000000e+00> : vector<2x128xf32>
    %594 = tpu.matmul %589, %333, %cst_123 {dimension_numbers = #tpu.dot_dimension_numbers<[1], [0], [0], [1], [0, 0, 1, 1], [], []>} : vector<2x32xf32>, vector<32x128xf32>, vector<2x128xf32> -> vector<2x128xf32>
    %595 = arith.addf %593, %594 : vector<2x128xf32>
    %596 = arith.negf %592 : vector<2x128xf32>
    %597 = math.exp %596 : vector<2x128xf32>
    %cst_124 = arith.constant 1.000000e+00 : f32
    %598 = vector.broadcast %cst_124 : f32 to vector<2x128xf32>
    %599 = arith.addf %598, %597 : vector<2x128xf32>
    %600 = arith.divf %598, %599 : vector<2x128xf32>
    %601 = vector.extract_strided_slice %600 {offsets = [0, 0], sizes = [2, 32], strides = [1, 1]} : vector<2x128xf32> to vector<2x32xf32>
    %602 = vector.extract_strided_slice %600 {offsets = [0, 32], sizes = [2, 32], strides = [1, 1]} : vector<2x128xf32> to vector<2x32xf32>
    %603 = vector.extract_strided_slice %600 {offsets = [0, 96], sizes = [2, 32], strides = [1, 1]} : vector<2x128xf32> to vector<2x32xf32>
    %604 = vector.extract_strided_slice %592 {offsets = [0, 64], sizes = [2, 32], strides = [1, 1]} : vector<2x128xf32> to vector<2x32xf32>
    %605 = math.tanh %604 : vector<2x32xf32>
    %606 = arith.mulf %602, %572 : vector<2x32xf32>
    %607 = arith.mulf %601, %605 : vector<2x32xf32>
    %608 = arith.addf %606, %607 : vector<2x32xf32>
    %609 = math.tanh %608 : vector<2x32xf32>
    %610 = arith.mulf %603, %609 : vector<2x32xf32>
    %611 = arith.negf %595 : vector<2x128xf32>
    %612 = math.exp %611 : vector<2x128xf32>
    %cst_125 = arith.constant 1.000000e+00 : f32
    %613 = vector.broadcast %cst_125 : f32 to vector<2x128xf32>
    %614 = arith.addf %613, %612 : vector<2x128xf32>
    %615 = arith.divf %613, %614 : vector<2x128xf32>
    %616 = vector.extract_strided_slice %615 {offsets = [0, 0], sizes = [2, 32], strides = [1, 1]} : vector<2x128xf32> to vector<2x32xf32>
    %617 = vector.extract_strided_slice %615 {offsets = [0, 32], sizes = [2, 32], strides = [1, 1]} : vector<2x128xf32> to vector<2x32xf32>
    %618 = vector.extract_strided_slice %615 {offsets = [0, 96], sizes = [2, 32], strides = [1, 1]} : vector<2x128xf32> to vector<2x32xf32>
    %619 = vector.extract_strided_slice %595 {offsets = [0, 64], sizes = [2, 32], strides = [1, 1]} : vector<2x128xf32> to vector<2x32xf32>
    %620 = math.tanh %619 : vector<2x32xf32>
    %621 = arith.mulf %617, %587 : vector<2x32xf32>
    %622 = arith.mulf %616, %620 : vector<2x32xf32>
    %623 = arith.addf %621, %622 : vector<2x32xf32>
    %624 = math.tanh %623 : vector<2x32xf32>
    %625 = arith.mulf %618, %624 : vector<2x32xf32>
    %c0_126 = arith.constant 0 : index
    %c0_127 = arith.constant 0 : index
    %626 = vector.load %arg13[%c0_126, %c0_127] : memref<64x4xf32, #tpu.memory_space<vmem>>, vector<32x4xf32>
    %cst_128 = arith.constant dense<0.000000e+00> : vector<2x4xf32>
    %627 = tpu.matmul %610, %626, %cst_128 {dimension_numbers = #tpu.dot_dimension_numbers<[1], [0], [0], [1], [0, 0, 1, 1], [], []>} : vector<2x32xf32>, vector<32x4xf32>, vector<2x4xf32> -> vector<2x4xf32>
    %c32_129 = arith.constant 32 : index
    %c0_130 = arith.constant 0 : index
    %628 = vector.load %arg13[%c32_129, %c0_130] : memref<64x4xf32, #tpu.memory_space<vmem>>, vector<32x4xf32>
    %cst_131 = arith.constant dense<0.000000e+00> : vector<2x4xf32>
    %629 = tpu.matmul %625, %628, %cst_131 {dimension_numbers = #tpu.dot_dimension_numbers<[1], [0], [0], [1], [0, 0, 1, 1], [], []>} : vector<2x32xf32>, vector<32x4xf32>, vector<2x4xf32> -> vector<2x4xf32>
    %630 = arith.addf %627, %629 : vector<2x4xf32>
    %c0_132 = arith.constant 0 : index
    %c0_133 = arith.constant 0 : index
    %631 = vector.load %arg14[%c0_132, %c0_133] : memref<1x4xf32, #tpu.memory_space<vmem>>, vector<1x4xf32>
    %632 = vector.broadcast %631 : vector<1x4xf32> to vector<2x4xf32>
    %633 = arith.addf %630, %632 : vector<2x4xf32>
    %c0_134 = arith.constant 0 : index
    %c0_135 = arith.constant 0 : index
    %634 = vector.load %arg15[%c0_134, %c0_135] : memref<2x4xf32, #tpu.memory_space<vmem>>, vector<2x4xf32>
    tpu.vector_store %arg15[%c0_134, %c0_135], %633 {strides = array<i32>} : memref<2x4xf32, #tpu.memory_space<vmem>>, vector<2x4xf32>,
    return
  }
}

</mosaic_0001>

<bundles_post_ra>
// kernel: tpu_custom_call.1
= control target key start
LH: loop header
LB: loop body
LE: loop exit
PB: predicated region body
PF: predicated region fallthrough
CT: control target
= control target key end

     0   :  { %20 = vsyncpa [#allocation4], 0  ;;  %s4039_s0 = inlined_call_operand.hbm [shape: f32[16,32], index: 0, kind: input, shape index: {}]   ;;  %s4040_s1 = inlined_call_operand.hbm [shape: f32[32,128], index: 1, kind: input, shape index: {}]   ;;  %s4041_s2 = inlined_call_operand.hbm [shape: f32[32,128], index: 2, kind: input, shape index: {}]   ;;  %s4042_s3 = inlined_call_operand.vmem [shape: f32[1,128], index: 3, kind: input, shape index: {}]   ;;  %s4043_s4 = inlined_call_operand.hbm [shape: f32[32,128], index: 4, kind: input, shape index: {}]   ;;  %s4044_s5 = inlined_call_operand.hbm [shape: f32[32,128], index: 5, kind: input, shape index: {}]   ;;  %s4045_s6 = inlined_call_operand.vmem [shape: f32[1,128], index: 6, kind: input, shape index: {}]   ;;  %s4046_s7 = inlined_call_operand.vmem [shape: f32[64,128], index: 7, kind: input, shape index: {}]   ;;  %s4047_s8 = inlined_call_operand.hbm [shape: f32[32,128], index: 8, kind: input, shape index: {}]   ;;  %s4048_s9 = inlined_call_operand.vmem [shape: f32[1,128], index: 9, kind: input, shape index: {}]   ;;  %s4049_s10 = inlined_call_operand.hbm [shape: f32[64,128], index: 10, kind: input, shape index: {}]   ;;  %s4050_s11 = inlined_call_operand.hbm [shape: f32[32,128], index: 11, kind: input, shape index: {}]   ;;  %s4051_s12 = inlined_call_operand.vmem [shape: f32[1,128], index: 12, kind: input, shape index: {}]   ;;  %s4052_s13 = inlined_call_operand.vmem [shape: f32[64,4], index: 13, kind: input, shape index: {}]   ;;  %s4053_s14 = inlined_call_operand.vmem [shape: f32[1,4], index: 14, kind: input, shape index: {}]   ;;  %s4054_s15 = inlined_call_operand.hbm [shape: f32[2,4], index: 15, kind: output, shape index: {}]  }
   0x1   :  { %21 = vsyncpa [#allocation7], 0 }
   0x2   :  { %22 = vsyncpa [#allocation10], 0 }
   0x3   :  { %23 = vsyncpa [#allocation13], 0 }
   0x4   :  { %24 = vsyncpa [#allocation16], 0 }
   0x5   :  { %25 = vsyncpa [#allocation5], 0  ;;  %s43_s20 = sshll.u32 %s4040_s1, 4  ;;  %s3249_s21 = smov [#allocation6]   ;;  %s44_s20 = int_to_ptr.hbm [resolvable:$true] %s43_s20 }
   0x6   :  { %s45_s22 = sshll.u32 %s3249_s21, 4  ;;  %s71_s25 = sshll.u32 %s4043_s4, 4  ;;  %s46_s22 = int_to_ptr.vmem [resolvable:$true] %s45_s22  ;;  %s72_s25 = int_to_ptr.hbm [resolvable:$true] %s71_s25 }
   0x7   :  { %s3250_s26 = smov 128   ;;  %s3251_s27 = smov 8  }
   0x8   :  { %51 = dma.hbm_to_vmem [thread:$0]  %s44_s20, 512, %s46_s22, [#allocation7], %s3250_s26, %s3250_s26, %s3251_s27  }
   0x9   :  { %s3252_s28 = smov [#allocation9]   ;;  %s101_s1 = sshll.u32 %s4047_s8, 4  ;;  %s102_s1 = int_to_ptr.hbm [resolvable:$true] %s101_s1 }
   0xa   :  { %s73_s29 = sshll.u32 %s3252_s28, 4  ;;  %s30_s18 = sshll.u32 %s4039_s0, 4  ;;  %s74_s29 = int_to_ptr.vmem [resolvable:$true] %s73_s29  ;;  %s31_s18 = int_to_ptr.hbm [resolvable:$true] %s30_s18 }
   0xb   :  { %79 = dma.hbm_to_vmem [thread:$0]  %s72_s25, 512, %s74_s29, [#allocation10], %s3250_s26, %s3250_s26, %s3251_s27  }
   0xc   :  { %s3253_s19 = smov [#allocation12]   ;;  %s3254_s20 = smov [#allocation3]  }
   0xd   :  { %s103_s21 = sshll.u32 %s3253_s19, 4  ;;  %s32_s8 = sshll.u32 %s3254_s20, 4  ;;  %s104_s21 = int_to_ptr.vmem [resolvable:$true] %s103_s21  ;;  %s33_s8 = int_to_ptr.vmem [resolvable:$true] %s32_s8 }
   0xe   :  { %109 = dma.hbm_to_vmem [thread:$0]  %s102_s1, 512, %s104_s21, [#allocation13], %s3250_s26, %s3250_s26, %s3251_s27  }
   0xf   :  { %s56_s24 = sshll.u32 %s4041_s2, 4  ;;  %s84_s28 = sshll.u32 %s4044_s5, 4  ;;  %s57_s24 = int_to_ptr.hbm [resolvable:$true] %s56_s24  ;;  %s85_s28 = int_to_ptr.hbm [resolvable:$true] %s84_s28 }
  0x10   :  { %38 = dma.hbm_to_vmem [thread:$0]  %s31_s18, 256, %s33_s8, [#allocation4], %s3250_s26, %s3250_s26, %s3251_s27  }
  0x11   :  { %s3255_s29 = smov [#allocation8]   ;;  %s3256_s16 = smov [#allocation11]  }
  0x12   :  { %s58_s30 = sshll.u32 %s3255_s29, 4  ;;  %s86_s2 = sshll.u32 %s3256_s16, 4  ;;  %s59_s30 = int_to_ptr.vmem [resolvable:$true] %s58_s30  ;;  %s87_s2 = int_to_ptr.vmem [resolvable:$true] %s86_s2 }
  0x13   :  { %64 = dma.hbm_to_vmem [thread:$0]  %s57_s24, 512, %s59_s30, [#allocation7], %s3250_s26, %s3250_s26, %s3251_s27  }
  0x14   :  { %s116_s17 = sshll.u32 %s4049_s10, 4  ;;  %s129_s19 = sshll.u32 %s4050_s11, 4  ;;  %s117_s17 = int_to_ptr.hbm [resolvable:$true] %s116_s17  ;;  %s130_s19 = int_to_ptr.hbm [resolvable:$true] %s129_s19 }
  0x15   :  { %92 = dma.hbm_to_vmem [thread:$0]  %s85_s28, 512, %s87_s2, [#allocation10], %s3250_s26, %s3250_s26, %s3251_s27  }
  0x16   :  { %s3257_s21 = smov [#allocation14]   ;;  %s3258_s8 = smov [#allocation15]  }
  0x17   :  { %s118_s20 = sshll.u32 %s3257_s21, 4  ;;  %s131_s10 = sshll.u32 %s3258_s8, 4  ;;  %s119_s20 = int_to_ptr.vmem [resolvable:$true] %s118_s20  ;;  %s132_s10 = int_to_ptr.vmem [resolvable:$true] %s131_s10 }
  0x18   :  { %124 = dma.hbm_to_vmem [thread:$0]  %s117_s17, 1024, %s119_s20, [#allocation13], %s3250_s26, %s3250_s26, %s3251_s27  }
  0x19   :  { %137 = dma.hbm_to_vmem [thread:$0]  %s130_s19, 512, %s132_s10, [#allocation16], %s3250_s26, %s3250_s26, %s3251_s27  }
  0x1a   :  { %3237 = dma.done.wait [#allocation4], 256  }
  0x1b   :  { %3238 = vsyncadd [#allocation4], 4294967040 }
  0x1c   :  { %3239 = dma.done.wait [#allocation7], 1024  }
  0x1d   :  { %3240 = vsyncadd [#allocation7], 4294966272 }
  0x1e   :  { %3241 = dma.done.wait [#allocation10], 1024  }
  0x1f   :  { %3242 = vsyncadd [#allocation10], 4294966272 }
  0x20   :  { %3243 = dma.done.wait [#allocation13], 1536  }
  0x21   :  { %3244 = vsyncadd [#allocation13], 4294965760 }
  0x22   :  { %3245 = dma.done.wait [#allocation16], 512  }
  0x23   :  { %3246 = vsyncadd [#allocation16], 4294966784  ;;  %v219_v0 = vld [vmem:[#allocation9 + $0x18] sm:$0xff]  ;;  %v218_v2 = vld [vmem:[#allocation9 + $0x10] sm:$0xff]  ;;  %vm186_vm0 = vcmask 261120   ;;  %v3259_v17 = vmov 0.0  }
  0x24   :  { %v3391_v1 = vld [vmem:[#allocation8 + $0x18] sm:$0xff]  ;;  %236 = vmatpush.msra.mxu1 %v219_v0  ;;  %v3394_v3 = vld [vmem:[#allocation8 + $0x10] sm:$0xff]  ;;  %v217_v6 = vld [vmem:[#allocation9 + $0x8] sm:$0xff]  ;;  %vm381_vm9 = vcmask 254976   ;;  %s3262_s4 = smov [#allocation17]  }
  0x25   :  { %270 = vmatpush.msra.mxu2 %v3391_v1  ;;  %v3396_v4 = vld [vmem:[#allocation11 + $0x18] sm:$0xff]  ;;  %v3399_v7 = vld [vmem:[#allocation8 + $0x8] sm:$0xff]  ;;  %v3401_v8 = vld [vmem:[#allocation11 + $0x10] sm:$0xff]  ;;  %s2660_s17 = sshll.u32 %s3262_s4, 4  ;;  %s2661_s17 = int_to_ptr.vmem [resolvable:$true] %s2660_s17 }
  0x26   :  { %v181_v5 = vld [vmem:[#allocation6 + $0x18] sm:$0xff]  ;;  %291 = vmatpush.msra.mxu3 %v3396_v4  ;;  %237 = vmatpush.msra.mxu1 %v218_v2  ;;  %v180_v9 = vld [vmem:[#allocation6 + $0x10] sm:$0xff]  ;;  %v216_v10 = vld [vmem:[#allocation9] sm:$0xff] }
  0x27   :  { %205 = vmatpush.msra.mxu0 %v181_v5  ;;  %271 = vmatpush.msra.mxu2 %v3394_v3  ;;  %v3405_v11 = vld [vmem:[#allocation8] sm:$0xff]  ;;  %v3407_v12 = vld [vmem:[#allocation11 + $0x8] sm:$0xff]  ;;  %v176_v14 = vld [vmem:[#allocation3] sm:$0xff] }
  0x28   :  { %292 = vmatpush.msra.mxu3 %v3401_v8  ;;  %v179_v13 = vld [vmem:[#allocation6 + $0x8] sm:$0xff]  ;;  %238 = vmatpush.msra.mxu1 %v217_v6  ;;  %v3410_v15 = vld [vmem:[#allocation11] sm:$0xff]  ;;  %v177_v18 = vld [vmem:[#allocation3 + $0x8] sm:$0xff] }
  0x29   :  { %206 = vmatpush.msra.mxu0 %v180_v9  ;;  %272 = vmatpush.msra.mxu2 %v3399_v7  ;;  %v178_v16 = vld [vmem:[#allocation6] sm:$0xff] }
  0x2a   :  { %293 = vmatpush.msra.mxu3 %v3407_v12  ;;  %239 = vmatpush.msra.mxu1 %v216_v10  ;;  %v2760_v19 = vld [vmem:[%s4045_s6] ss:$0 sm:$0xff]  ;;  %s3260_s6 = smov 64  }
  0x2b   :  { %207 = vmatpush.msra.mxu0 %v179_v13  ;;  %273 = vmatpush.msra.mxu2 %v3405_v11  ;;  %v3461_v24 = vld [vmem:[%s4042_s3] ss:$0 sm:$0xff]  ;;  %s3261_s3 = smov 32  }
  0x2c   :  { %2678 = vmatmul.msk.f32.vlgmr.msra.gmra.mxu1 %vm186_vm0, %v176_v14  ;;  %274 = vmatmul.f32.vlgmr.msra.gmra.mxu2 %v3259_v17 }
  0x2d   :  { %294 = vmatpush.msra.mxu3 %v3410_v15  ;;  %208 = vmatpush.msra.mxu0 %v178_v16 }
  0x2e   :  { %295 = vmatmul.f32.vlgmr.msra.gmra.mxu3 %v3259_v17  ;;  %2676 = vmatmul.msk.f32.vlgmr.msra.gmra.mxu0 %vm186_vm0, %v176_v14 }
  0x2f   :  { %432 = vmatpush.msrb.mxu3 %v3396_v4  ;;  %403 = vmatpush.msrb.mxu2 %v3391_v1 }
  0x30   :  { %582 = vmatpush.msrb.mxu1 %v3396_v4  ;;  %553 = vmatpush.msrb.mxu0 %v3391_v1 }
  0x31   :  { %433 = vmatpush.msrb.mxu3 %v3401_v8  ;;  %404 = vmatpush.msrb.mxu2 %v3394_v3 }
  0x32   :  { %583 = vmatpush.msrb.mxu1 %v3401_v8  ;;  %554 = vmatpush.msrb.mxu0 %v3394_v3 }
  0x33   :  { %434 = vmatpush.msrb.mxu3 %v3407_v12  ;;  %405 = vmatpush.msrb.mxu2 %v3399_v7 }
  0x34   :  { %2679 = vmatmul.msk.f32.gmra.mxu1 %vm186_vm0, %v177_v18  ;;  %555 = vmatpush.msrb.mxu0 %v3399_v7 }
  0x35   :  { %435 = vmatpush.msrb.mxu3 %v3410_v15  ;;  %406 = vmatpush.msrb.mxu2 %v3405_v11 }
  0x36   :  { %584 = vmatpush.msrb.mxu1 %v3407_v12  ;;  %2677 = vmatmul.msk.f32.gmra.mxu0 %vm186_vm0, %v177_v18 }
  0x37   :  { %556 = vmatpush.msrb.mxu0 %v3405_v11  ;;  %732 = vmatpush.msra.mxu3 %v3396_v4 }
  0x38   :  { %585 = vmatpush.msrb.mxu1 %v3410_v15  ;;  %703 = vmatpush.msra.mxu2 %v3391_v1 }
  0x39   :  { %733 = vmatpush.msra.mxu3 %v3401_v8  ;;  %850 = vmatpush.msra.mxu0 %v3391_v1 }
  0x3a   :  { %875 = vmatpush.msra.mxu1 %v3396_v4  ;;  %704 = vmatpush.msra.mxu2 %v3394_v3 }
  0x3b   :  { %734 = vmatpush.msra.mxu3 %v3407_v12  ;;  %851 = vmatpush.msra.mxu0 %v3394_v3 }
  0x3c   :  { %876 = vmatpush.msra.mxu1 %v3401_v8  ;;  %705 = vmatpush.msra.mxu2 %v3399_v7 }
  0x3d   :  { %735 = vmatpush.msra.mxu3 %v3410_v15  ;;  %852 = vmatpush.msra.mxu0 %v3399_v7 }
  0x3e   :  { %877 = vmatpush.msra.mxu1 %v3407_v12  ;;  %706 = vmatpush.msra.mxu2 %v3405_v11 }
  0x3f   :  { %853 = vmatpush.msra.mxu0 %v3405_v11 }
  0x40   :  { %878 = vmatpush.msra.mxu1 %v3410_v15 }
  0xa9   :  { %v241_v20 = vpop.f32.mrf.mxu1 }
  0xaa   :  { %v3456_v21 = vadd.f32 %v2760_v19, %v241_v20 }
  0xab   :  { %v210_v27 = vpop.f32.mrf.mxu0 }
  0xac   :  { %v3467_v29 = vadd.f32 %v3461_v24, %v210_v27 }
  0xaf   :  { %v275_v30 = vpop.f32.mrf.mxu2 }
  0xb0   :  { %v278_v31 = vadd.f32 %v275_v30, %v3467_v29 }
  0xb1   :  { %v244_v22 = vpop.f32.mrf.mxu1  ;;  %v296_v23 = vpop.f32.mrf.mxu3 }
  0xb2   :  { %v3463_v25 = vadd.f32 %v2760_v19, %v244_v22  ;;  %v300_v26 = vrot.slane %v296_v23, 2  ;;  %v2680_v35 = vmul.f32 -1.442695, %v278_v31 }
  0xb4   :  { %v302_v28 = vadd.f32 %v300_v26, %v3463_v25 }
  0xb6   :  { %2765 = vtanh.f32 %v302_v28  ;;  %v2681_v34 = vmul.f32 -1.442695, %v302_v28 }
  0xb7   :  { %2767 = vtanh.f32 %v278_v31 }
  0xb8   :  { %2769 = vpow2.f32 %v2681_v34 }
  0xb9   :  { %2771 = vpow2.f32 %v2680_v35 }
  0xbc   :  { %v2766_v32 = vpop.eup %2765 }
  0xbd   :  { %362 = vrot.lane.b32.xlu0 %v2766_v32, %s3260_s6  ;;  %v2768_v33 = vpop.eup %2767 }
  0xbe   :  { %v2770_v36 = vpop.eup %2769 }
  0xbf   :  { %v343_v37 = vadd.f32 1.0, %v2770_v36  ;;  %v2772_v38 = vpop.eup %2771 }
  0xc0   :  { %v306_v39 = vadd.f32 1.0, %v2772_v38 }
  0xc1   :  { %2773 = vrcp.f32 %v343_v37  ;;  %v355_v48 = vand.u32 2147483648, %v343_v37  ;;  %vm349_vm2 = vweird.f32 %v343_v37  ;;  %v353_v49 = vand.u32 2147483647, %v343_v37 }
  0xc2   :  { %2775 = vrcp.f32 %v306_v39  ;;  %vm312_vm5 = vweird.f32 %v306_v39  ;;  %v318_v55 = vand.u32 2147483648, %v306_v39  ;;  %v316_v58 = vand.u32 2147483647, %v306_v39 }
  0xc3   :  { %v356_v52 = vor.u32 1.1754944e-38, %v355_v48  ;;  %vm354_vm4 = vcmp.eq.f32.partialorder %v353_v49, 8.507059e+37 }
  0xc4   :  { %v319_v59 = vor.u32 1.1754944e-38, %v318_v55  ;;  %vm317_vm8 = vcmp.eq.f32.partialorder %v316_v58, 8.507059e+37 }
  0xc5   :  { %325 = vrot.lane.b32.xlu0 %v2768_v33, %s3260_s6 }
  0xc7   :  { %v2774_v40 = vpop.eup %2773 }
  0xc8   :  { %v345_v41 = vmul.f32 %v2774_v40, %v343_v37  ;;  %v2776_v43 = vpop.eup %2775  ;;  %vm350_vm1 = vweird.f32 %v2774_v40 }
  0xc9   :  { %v308_v45 = vmul.f32 %v2776_v43, %v306_v39  ;;  %vm351_vm3 = vmor %vm349_vm2, %vm350_vm1  ;;  %vm313_vm6 = vweird.f32 %v2776_v43 }
  0xca   :  { %v346_v42 = vsub.f32 1.0, %v345_v41  ;;  %vm314_vm7 = vmor %vm312_vm5, %vm313_vm6 }
  0xcb   :  { %v309_v47 = vsub.f32 1.0, %v308_v45 }
  0xcc   :  { %v347_v44 = vmul.f32 %v2774_v40, %v346_v42 }
  0xcd   :  { %v310_v51 = vmul.f32 %v2776_v43, %v309_v47 }
  0xce   :  { %v348_v46 = vadd.f32 %v2774_v40, %v347_v44 }
  0xcf   :  { %v311_v57 = vadd.f32 %v2776_v43, %v310_v51 }
  0xd0   :  { %v352_v50 = vsel %vm351_vm3, %v2774_v40, %v348_v46 }
  0xd1   :  { %v357_v54 = vsel %vm354_vm4, %v356_v52, %v352_v50  ;;  %v315_v60 = vsel %vm314_vm7, %v2776_v43, %v311_v57 }
  0xd2   :  { %v320_v62 = vsel %vm317_vm8, %v319_v59, %v315_v60  ;;  %v360_v0 = vmul.f32 0.0, %v357_v54 }
  0xd3   :  { %v323_v6 = vmul.f32 0.0, %v320_v62 }
 0x12f   :  { %v363_v53 = vpop.permute.xlu0 %362 }
 0x130   :  { %v365_v56 = vmul.f32 %v363_v53, %v357_v54 }
 0x132   :  { %367 = vrot.lane.b32.xlu1 %v365_v56, %s3261_s3 }
 0x137   :  { %v326_v61 = vpop.permute.xlu0 %325 }
 0x138   :  { %v328_v63 = vmul.f32 %v326_v61, %v320_v62 }
 0x13a   :  { %330 = vrot.lane.b32.xlu1 %v328_v63, %s3261_s3 }
 0x1a4   :  { %v368_v2 = vpop.permute.xlu1 %367 }
 0x1a5   :  { %v3474_v5 = vadd.f32 %v368_v2, %v360_v0 }
 0x1a7   :  { %2777 = vtanh.f32 %v3474_v5 }
 0x1ac   :  { %v331_v9 = vpop.permute.xlu1 %330 }
 0x1ad   :  { %v2778_v10 = vpop.eup %2777  ;;  %v3477_v13 = vadd.f32 %v331_v9, %v323_v6  ;;  %v505_v6 = vrot.slane %v3474_v5, 2 }
 0x1ae   :  { %373 = vrot.lane.b32.xlu2 %v2778_v10, %s3260_s6 }
 0x1af   :  { %2779 = vtanh.f32 %v3477_v13 }
 0x1b5   :  { %v2780_v14 = vpop.eup %2779 }
 0x1b6   :  { %336 = vrot.lane.b32.xlu2 %v2780_v14, %s3260_s6 }
 0x208   :  { %v374_v16 = vpop.permute.xlu2 %373 }
 0x209   :  { %v3482_v18 = vmul.f32 %v374_v16, %v357_v54  ;;  %v465_v16 = vrot.slane %v3477_v13, 6 }
 0x20b   :  { %v415_v19 = vrot.slane %v3482_v18, 6 }
 0x20d   :  { %416 = vrot.lane.b32.xlu0 %v415_v19, %s3261_s3 }
 0x210   :  { %v337_v20 = vpop.permute.xlu2 %336 }
 0x211   :  { %v339_v22 = vmul.f32 %v337_v20, %v320_v62 }
 0x213   :  { %378 = vrot.lane.b32.xlu1 %v339_v22, %s3261_s3 }
 0x27f   :  { %v417_v23 = vpop.permute.xlu0 %416 }
 0x280   :  { %2683 = vmatmul.msk.f32.vlgmr.msrb.gmra.mxu3 %vm186_vm0, %v417_v23 }
 0x281   :  { %1020 = vmatpush.msrb.mxu3 %v3396_v4 }
 0x283   :  { %1021 = vmatpush.msrb.mxu3 %v3401_v8 }
 0x285   :  { %v379_v26 = vpop.permute.xlu1 %378  ;;  %1022 = vmatpush.msrb.mxu3 %v3407_v12 }
 0x286   :  { %382 = vst.msk [vmem:[#allocation2] sm:$0x3] %vm381_vm9, %v379_v26  ;;  %2682 = vmatmul.msk.f32.vlgmr.msrb.gmra.mxu2 %vm186_vm0, %v379_v26 }
 0x287   :  { %1023 = vmatpush.msrb.mxu3 %v3410_v15  ;;  %991 = vmatpush.msrb.mxu2 %v3391_v1 }
 0x289   :  { %992 = vmatpush.msrb.mxu2 %v3394_v3 }
 0x28b   :  { %993 = vmatpush.msrb.mxu2 %v3399_v7 }
 0x28d   :  { %994 = vmatpush.msrb.mxu2 %v3405_v11 }
 0x303   :  { %v437_v27 = vpop.f32.mrf.mxu3 }
 0x304   :  { %v441_v28 = vrot.slane %v437_v27, 4 }
 0x306   :  { %v443_v30 = vadd.f32 %v441_v28, %v3463_v25 }
 0x308   :  { %2781 = vtanh.f32 %v443_v30  ;;  %v2685_v36 = vmul.f32 -1.442695, %v443_v30 }
 0x309   :  { %v408_v31 = vpop.f32.mrf.mxu2 }
 0x30a   :  { %v412_v32 = vrot.slane %v408_v31, 6 }
 0x30c   :  { %v414_v33 = vadd.f32 %v412_v32, %v3467_v29 }
 0x30e   :  { %v2782_v34 = vpop.eup %2781  ;;  %2783 = vtanh.f32 %v414_v33  ;;  %v2684_v41 = vmul.f32 -1.442695, %v414_v33 }
 0x30f   :  { %509 = vrot.lane.b32.xlu2 %v2782_v34, %s3260_s6  ;;  %2785 = vpow2.f32 %v2685_v36 }
 0x314   :  { %v2784_v35 = vpop.eup %2783 }
 0x315   :  { %469 = vrot.lane.b32.xlu0 %v2784_v35, %s3260_s6  ;;  %v2786_v37 = vpop.eup %2785 }
 0x316   :  { %v487_v38 = vadd.f32 1.0, %v2786_v37 }
 0x318   :  { %2787 = vrcp.f32 %v487_v38  ;;  %v499_v45 = vand.u32 2147483648, %v487_v38  ;;  %vm493_vm11 = vweird.f32 %v487_v38  ;;  %v497_v47 = vand.u32 2147483647, %v487_v38 }
 0x319   :  { %2789 = vpow2.f32 %v2684_v41 }
 0x31a   :  { %v500_v50 = vor.u32 1.1754944e-38, %v499_v45  ;;  %vm498_vm13 = vcmp.eq.f32.partialorder %v497_v47, 8.507059e+37 }
 0x31e   :  { %v2788_v39 = vpop.eup %2787 }
 0x31f   :  { %v489_v40 = vmul.f32 %v2788_v39, %v487_v38  ;;  %vm494_vm10 = vweird.f32 %v2788_v39  ;;  %v2790_v46 = vpop.eup %2789  ;;  %v3534_v38 = vpop.f32.mrf.mxu0 }
 0x320   :  { %vm495_vm12 = vmor %vm493_vm11, %vm494_vm10  ;;  %v447_v49 = vadd.f32 1.0, %v2790_v46 }
 0x321   :  { %v490_v42 = vsub.f32 1.0, %v489_v40 }
 0x322   :  { %2791 = vrcp.f32 %v447_v49  ;;  %v459_v59 = vand.u32 2147483648, %v447_v49  ;;  %vm453_vm15 = vweird.f32 %v447_v49  ;;  %v457_v60 = vand.u32 2147483647, %v447_v49 }
 0x323   :  { %v491_v43 = vmul.f32 %v2788_v39, %v490_v42 }
 0x324   :  { %v460_v62 = vor.u32 1.1754944e-38, %v459_v59  ;;  %vm458_vm2 = vcmp.eq.f32.partialorder %v457_v60, 8.507059e+37 }
 0x325   :  { %v492_v44 = vadd.f32 %v2788_v39, %v491_v43 }
 0x327   :  { %v496_v48 = vsel %vm495_vm12, %v2788_v39, %v492_v44 }
 0x328   :  { %v501_v51 = vsel %vm498_vm13, %v500_v50, %v496_v48  ;;  %v2792_v54 = vpop.eup %2791 }
 0x329   :  { %v449_v55 = vmul.f32 %v2792_v54, %v447_v49  ;;  %vm454_vm14 = vweird.f32 %v2792_v54  ;;  %v507_v9 = vmul.f32 %v505_v6, %v501_v51 }
 0x32a   :  { %vm455_vm1 = vmor %vm453_vm15, %vm454_vm14 }
 0x32b   :  { %v450_v56 = vsub.f32 1.0, %v449_v55 }
 0x32d   :  { %v451_v57 = vmul.f32 %v2792_v54, %v450_v56 }
 0x32f   :  { %v452_v58 = vadd.f32 %v2792_v54, %v451_v57 }
 0x331   :  { %v456_v61 = vsel %vm455_vm1, %v2792_v54, %v452_v58 }
 0x332   :  { %v461_v0 = vsel %vm458_vm2, %v460_v62, %v456_v61 }
 0x333   :  { %v467_v19 = vmul.f32 %v465_v16, %v461_v0 }
 0x369   :  { %v510_v52 = vpop.permute.xlu2 %509 }
 0x36a   :  { %v512_v53 = vmul.f32 %v510_v52, %v501_v51 }
 0x36c   :  { %514 = vrot.lane.b32.xlu1 %v512_v53, %s3261_s3 }
 0x387   :  { %v470_v63 = vpop.permute.xlu0 %469 }
 0x388   :  { %v472_v2 = vmul.f32 %v470_v63, %v461_v0 }
 0x38a   :  { %474 = vrot.lane.b32.xlu2 %v472_v2, %s3261_s3 }
 0x3de   :  { %v515_v10 = vpop.permute.xlu1 %514 }
 0x3df   :  { %v3505_v14 = vadd.f32 %v515_v10, %v507_v9 }
 0x3e1   :  { %2793 = vtanh.f32 %v3505_v14 }
 0x3e4   :  { %v475_v20 = vpop.permute.xlu2 %474 }
 0x3e5   :  { %v3509_v22 = vadd.f32 %v475_v20, %v467_v19 }
 0x3e7   :  { %v2794_v23 = vpop.eup %2793  ;;  %2795 = vtanh.f32 %v3509_v22 }
 0x3e8   :  { %520 = vrot.lane.b32.xlu0 %v2794_v23, %s3260_s6 }
 0x3ed   :  { %v2796_v26 = vpop.eup %2795 }
 0x3ee   :  { %480 = vrot.lane.b32.xlu1 %v2796_v26, %s3260_s6  ;;  %v655_v26 = vrot.slane %v3505_v14, 2 }
 0x45a   :  { %v521_v5 = vpop.permute.xlu0 %520 }
 0x45b   :  { %v3514_v27 = vmul.f32 %v521_v5, %v501_v51 }
 0x45d   :  { %v565_v28 = vrot.slane %v3514_v27, 4 }
 0x45f   :  { %566 = vrot.lane.b32.xlu2 %v565_v28, %s3261_s3 }
 0x460   :  { %v481_v13 = vpop.permute.xlu1 %480 }
 0x461   :  { %v3518_v30 = vmul.f32 %v481_v13, %v461_v0 }
 0x463   :  { %v536_v31 = vrot.slane %v3518_v30, 2 }
 0x465   :  { %537 = vrot.lane.b32.xlu0 %v536_v31, %s3261_s3  ;;  %v615_v31 = vrot.slane %v3509_v22, 6 }
 0x4b9   :  { %v567_v32 = vpop.permute.xlu2 %566 }
 0x4ba   :  { %2687 = vmatmul.msk.f32.vlgmr.msrb.gmra.mxu1 %vm186_vm0, %v567_v32 }
 0x4bb   :  { %1168 = vmatpush.msrb.mxu1 %v3396_v4 }
 0x4bd   :  { %1169 = vmatpush.msrb.mxu1 %v3401_v8 }
 0x4bf   :  { %1170 = vmatpush.msrb.mxu1 %v3407_v12 }
 0x4c1   :  { %1171 = vmatpush.msrb.mxu1 %v3410_v15 }
 0x4d7   :  { %v538_v33 = vpop.permute.xlu0 %537 }
 0x4d8   :  { %2686 = vmatmul.msk.f32.vlgmr.msrb.gmra.mxu0 %vm186_vm0, %v538_v33 }
 0x4d9   :  { %1139 = vmatpush.msrb.mxu0 %v3391_v1 }
 0x4db   :  { %1140 = vmatpush.msrb.mxu0 %v3394_v3 }
 0x4dd   :  { %1141 = vmatpush.msrb.mxu0 %v3399_v7 }
 0x4df   :  { %1142 = vmatpush.msrb.mxu0 %v3405_v11 }
 0x537   :  { %v587_v34 = vpop.f32.mrf.mxu1 }
 0x538   :  { %v591_v35 = vrot.slane %v587_v34, 6 }
 0x53a   :  { %v593_v36 = vadd.f32 %v591_v35, %v3463_v25 }
 0x53c   :  { %2797 = vtanh.f32 %v593_v36  ;;  %v2689_v43 = vmul.f32 -1.442695, %v593_v36 }
 0x542   :  { %v2798_v37 = vpop.eup %2797 }
 0x543   :  { %659 = vrot.lane.b32.xlu1 %v2798_v37, %s3260_s6 }
 0x555   :  { %v558_v39 = vpop.f32.mrf.mxu0 }
 0x556   :  { %v562_v40 = vrot.slane %v558_v39, 4 }
 0x558   :  { %v564_v41 = vadd.f32 %v562_v40, %v3467_v29 }
 0x55a   :  { %2799 = vtanh.f32 %v564_v41  ;;  %v2688_v44 = vmul.f32 -1.442695, %v564_v41 }
 0x55b   :  { %2801 = vpow2.f32 %v2689_v43 }
 0x55c   :  { %2803 = vpow2.f32 %v2688_v44 }
 0x560   :  { %v2800_v42 = vpop.eup %2799 }
 0x561   :  { %619 = vrot.lane.b32.xlu2 %v2800_v42, %s3260_s6  ;;  %v2802_v45 = vpop.eup %2801 }
 0x562   :  { %v637_v46 = vadd.f32 1.0, %v2802_v45  ;;  %v2804_v47 = vpop.eup %2803 }
 0x563   :  { %v597_v48 = vadd.f32 1.0, %v2804_v47 }
 0x564   :  { %2805 = vrcp.f32 %v637_v46  ;;  %v649_v57 = vand.u32 2147483648, %v637_v46  ;;  %vm643_vm4 = vweird.f32 %v637_v46  ;;  %v647_v58 = vand.u32 2147483647, %v637_v46 }
 0x565   :  { %2807 = vrcp.f32 %v597_v48  ;;  %v609_v2 = vand.u32 2147483648, %v597_v48  ;;  %vm603_vm8 = vweird.f32 %v597_v48  ;;  %v607_v9 = vand.u32 2147483647, %v597_v48 }
 0x566   :  { %v650_v61 = vor.u32 1.1754944e-38, %v649_v57  ;;  %vm648_vm6 = vcmp.eq.f32.partialorder %v647_v58, 8.507059e+37 }
 0x567   :  { %v610_v16 = vor.u32 1.1754944e-38, %v609_v2  ;;  %vm608_vm11 = vcmp.eq.f32.partialorder %v607_v9, 8.507059e+37 }
 0x56a   :  { %v2806_v49 = vpop.eup %2805 }
 0x56b   :  { %v639_v50 = vmul.f32 %v2806_v49, %v637_v46  ;;  %v2808_v51 = vpop.eup %2807  ;;  %vm644_vm3 = vweird.f32 %v2806_v49 }
 0x56c   :  { %v599_v53 = vmul.f32 %v2808_v51, %v597_v48  ;;  %vm645_vm5 = vmor %vm643_vm4, %vm644_vm3  ;;  %vm604_vm7 = vweird.f32 %v2808_v51 }
 0x56d   :  { %v640_v52 = vsub.f32 1.0, %v639_v50  ;;  %vm605_vm10 = vmor %vm603_vm8, %vm604_vm7 }
 0x56e   :  { %v600_v55 = vsub.f32 1.0, %v599_v53 }
 0x56f   :  { %v641_v54 = vmul.f32 %v2806_v49, %v640_v52 }
 0x570   :  { %v601_v59 = vmul.f32 %v2808_v51, %v600_v55 }
 0x571   :  { %v642_v56 = vadd.f32 %v2806_v49, %v641_v54 }
 0x572   :  { %v602_v62 = vadd.f32 %v2808_v51, %v601_v59 }
 0x573   :  { %v646_v60 = vsel %vm645_vm5, %v2806_v49, %v642_v56 }
 0x574   :  { %v651_v0 = vsel %vm648_vm6, %v650_v61, %v646_v60  ;;  %v606_v10 = vsel %vm605_vm10, %v2808_v51, %v602_v62 }
 0x575   :  { %v611_v19 = vsel %vm608_vm11, %v610_v16, %v606_v10  ;;  %v657_v5 = vmul.f32 %v655_v26, %v651_v0 }
 0x576   :  { %v617_v32 = vmul.f32 %v615_v31, %v611_v19 }
 0x5b5   :  { %v660_v63 = vpop.permute.xlu1 %659 }
 0x5b6   :  { %v662_v6 = vmul.f32 %v660_v63, %v651_v0 }
 0x5b8   :  { %664 = vrot.lane.b32.xlu0 %v662_v6, %s3261_s3 }
 0x5bb   :  { %v620_v20 = vpop.permute.xlu2 %619 }
 0x5bc   :  { %v622_v23 = vmul.f32 %v620_v20, %v611_v19 }
 0x5be   :  { %624 = vrot.lane.b32.xlu1 %v622_v23, %s3261_s3 }
 0x62a   :  { %v665_v28 = vpop.permute.xlu0 %664 }
 0x62b   :  { %v3541_v13 = vadd.f32 %v665_v28, %v657_v5 }
 0x62d   :  { %2809 = vtanh.f32 %v3541_v13  ;;  %v802_v20 = vrot.slane %v3541_v13, 2 }
 0x630   :  { %v625_v33 = vpop.permute.xlu1 %624 }
 0x631   :  { %v3545_v34 = vadd.f32 %v625_v33, %v617_v32 }
 0x633   :  { %v2810_v35 = vpop.eup %2809  ;;  %2811 = vtanh.f32 %v3545_v34  ;;  %v762_v31 = vrot.slane %v3545_v34, 6 }
 0x634   :  { %670 = vrot.lane.b32.xlu2 %v2810_v35, %s3260_s6 }
 0x639   :  { %v2812_v36 = vpop.eup %2811 }
 0x63a   :  { %630 = vrot.lane.b32.xlu0 %v2812_v36, %s3260_s6 }
 0x68e   :  { %v671_v14 = vpop.permute.xlu2 %670 }
 0x68f   :  { %v3550_v37 = vmul.f32 %v671_v14, %v651_v0 }
 0x691   :  { %v715_v39 = vrot.slane %v3550_v37, 2 }
 0x693   :  { %716 = vrot.lane.b32.xlu1 %v715_v39, %s3261_s3 }
 0x6ac   :  { %v631_v22 = vpop.permute.xlu0 %630 }
 0x6ad   :  { %v3554_v40 = vmul.f32 %v631_v22, %v611_v19 }
 0x6af   :  { %v686_v41 = vrot.slane %v3554_v40, 4 }
 0x6b1   :  { %687 = vrot.lane.b32.xlu2 %v686_v41, %s3261_s3 }
 0x705   :  { %v717_v42 = vpop.permute.xlu1 %716 }
 0x706   :  { %2691 = vmatmul.msk.f32.vlgmr.msra.gmra.mxu3 %vm186_vm0, %v717_v42 }
 0x707   :  { %1316 = vmatpush.msra.mxu3 %v3396_v4 }
 0x709   :  { %1317 = vmatpush.msra.mxu3 %v3401_v8 }
 0x70b   :  { %v688_v43 = vpop.permute.xlu2 %687  ;;  %1318 = vmatpush.msra.mxu3 %v3407_v12 }
 0x70c   :  { %2690 = vmatmul.msk.f32.vlgmr.msra.gmra.mxu2 %vm186_vm0, %v688_v43 }
 0x70d   :  { %1287 = vmatpush.msra.mxu2 %v3391_v1  ;;  %1319 = vmatpush.msra.mxu3 %v3410_v15 }
 0x70f   :  { %1288 = vmatpush.msra.mxu2 %v3394_v3 }
 0x711   :  { %1289 = vmatpush.msra.mxu2 %v3399_v7 }
 0x713   :  { %1290 = vmatpush.msra.mxu2 %v3405_v11 }
 0x789   :  { %v737_v44 = vpop.f32.mrf.mxu3 }
 0x78a   :  { %v740_v4 = vadd.f32 %v737_v44, %v3463_v25 }
 0x78c   :  { %2813 = vtanh.f32 %v740_v4  ;;  %v2693_v3 = vmul.f32 -1.442695, %v740_v4 }
 0x78f   :  { %v708_v8 = vpop.f32.mrf.mxu2 }
 0x790   :  { %v712_v45 = vrot.slane %v708_v8, 2  ;;  %v3597_v8 = vadd.f32 %v3461_v24, %v3534_v38 }
 0x792   :  { %v2814_v46 = vpop.eup %2813  ;;  %v714_v12 = vadd.f32 %v712_v45, %v3467_v29 }
 0x793   :  { %806 = vrot.lane.b32.xlu0 %v2814_v46, %s3260_s6 }
 0x794   :  { %2815 = vtanh.f32 %v714_v12  ;;  %v2692_v7 = vmul.f32 -1.442695, %v714_v12 }
 0x795   :  { %2817 = vpow2.f32 %v2693_v3 }
 0x796   :  { %2819 = vpow2.f32 %v2692_v7 }
 0x79a   :  { %v2816_v1 = vpop.eup %2815 }
 0x79b   :  { %766 = vrot.lane.b32.xlu1 %v2816_v1, %s3260_s6  ;;  %v2818_v15 = vpop.eup %2817 }
 0x79c   :  { %v784_v11 = vadd.f32 1.0, %v2818_v15  ;;  %v2820_v25 = vpop.eup %2819 }
 0x79d   :  { %v744_v47 = vadd.f32 1.0, %v2820_v25 }
 0x79e   :  { %2821 = vrcp.f32 %v784_v11  ;;  %v796_v55 = vand.u32 2147483648, %v784_v11  ;;  %vm790_vm13 = vweird.f32 %v784_v11  ;;  %v794_v56 = vand.u32 2147483647, %v784_v11 }
 0x79f   :  { %2823 = vrcp.f32 %v744_v47  ;;  %v756_v0 = vand.u32 2147483648, %v744_v47  ;;  %vm750_vm2 = vweird.f32 %v744_v47  ;;  %v754_v2 = vand.u32 2147483647, %v744_v47 }
 0x7a0   :  { %v797_v59 = vor.u32 1.1754944e-38, %v796_v55  ;;  %vm795_vm15 = vcmp.eq.f32.partialorder %v794_v56, 8.507059e+37 }
 0x7a1   :  { %v757_v9 = vor.u32 1.1754944e-38, %v756_v0  ;;  %vm755_vm4 = vcmp.eq.f32.partialorder %v754_v2, 8.507059e+37 }
 0x7a4   :  { %v2822_v48 = vpop.eup %2821 }
 0x7a5   :  { %v786_v49 = vmul.f32 %v2822_v48, %v784_v11  ;;  %v2824_v29 = vpop.eup %2823  ;;  %vm791_vm12 = vweird.f32 %v2822_v48 }
 0x7a6   :  { %v746_v52 = vmul.f32 %v2824_v29, %v744_v47  ;;  %vm792_vm14 = vmor %vm790_vm13, %vm791_vm12  ;;  %vm751_vm1 = vweird.f32 %v2824_v29 }
 0x7a7   :  { %v787_v50 = vsub.f32 1.0, %v786_v49  ;;  %vm752_vm3 = vmor %vm750_vm2, %vm751_vm1 }
 0x7a8   :  { %v747_v54 = vsub.f32 1.0, %v746_v52 }
 0x7a9   :  { %v788_v51 = vmul.f32 %v2822_v48, %v787_v50 }
 0x7aa   :  { %v748_v58 = vmul.f32 %v2824_v29, %v747_v54 }
 0x7ab   :  { %v789_v53 = vadd.f32 %v2822_v48, %v788_v51 }
 0x7ac   :  { %v749_v63 = vadd.f32 %v2824_v29, %v748_v58 }
 0x7ad   :  { %v793_v57 = vsel %vm792_vm14, %v2822_v48, %v789_v53 }
 0x7ae   :  { %v798_v61 = vsel %vm795_vm15, %v797_v59, %v793_v57  ;;  %v753_v6 = vsel %vm752_vm3, %v2824_v29, %v749_v63 }
 0x7af   :  { %v758_v16 = vsel %vm755_vm4, %v757_v9, %v753_v6  ;;  %v804_v23 = vmul.f32 %v802_v20, %v798_v61 }
 0x7b0   :  { %v764_v32 = vmul.f32 %v762_v31, %v758_v16 }
 0x805   :  { %v807_v60 = vpop.permute.xlu0 %806 }
 0x806   :  { %v809_v62 = vmul.f32 %v807_v60, %v798_v61 }
 0x808   :  { %811 = vrot.lane.b32.xlu2 %v809_v62, %s3261_s3 }
 0x80d   :  { %v767_v10 = vpop.permute.xlu1 %766 }
 0x80e   :  { %v769_v19 = vmul.f32 %v767_v10, %v758_v16 }
 0x810   :  { %771 = vrot.lane.b32.xlu0 %v769_v19, %s3261_s3 }
 0x862   :  { %v812_v26 = vpop.permute.xlu2 %811 }
 0x863   :  { %v3575_v5 = vadd.f32 %v812_v26, %v804_v23 }
 0x865   :  { %2825 = vtanh.f32 %v3575_v5 }
 0x86b   :  { %v2826_v28 = vpop.eup %2825 }
 0x86c   :  { %817 = vrot.lane.b32.xlu1 %v2826_v28, %s3260_s6 }
 0x882   :  { %v772_v33 = vpop.permute.xlu0 %771 }
 0x883   :  { %v3580_v35 = vadd.f32 %v772_v33, %v764_v32 }
 0x885   :  { %2827 = vtanh.f32 %v3580_v35  ;;  %v908_v26 = vrot.slane %v3580_v35, 6 }
 0x88b   :  { %v2828_v36 = vpop.eup %2827 }
 0x88c   :  { %777 = vrot.lane.b32.xlu2 %v2828_v36, %s3260_s6 }
 0x8de   :  { %v818_v13 = vpop.permute.xlu1 %817 }
 0x8df   :  { %v3584_v14 = vmul.f32 %v818_v13, %v798_v61 }
 0x8e1   :  { %859 = vrot.lane.b32.xlu0 %v3584_v14, %s3261_s3 }
 0x8e6   :  { %v778_v39 = vpop.permute.xlu2 %777 }
 0x8e7   :  { %v3588_v22 = vmul.f32 %v778_v39, %v758_v16  ;;  %v948_v16 = vrot.slane %v3575_v5, 2 }
 0x8e9   :  { %v833_v34 = vrot.slane %v3588_v22, 6 }
 0x8eb   :  { %834 = vrot.lane.b32.xlu1 %v833_v34, %s3261_s3 }
 0x953   :  { %v860_v41 = vpop.permute.xlu0 %859 }
 0x954   :  { %2695 = vmatmul.msk.f32.vlgmr.msra.gmra.mxu1 %vm186_vm0, %v860_v41 }
 0x95d   :  { %v835_v42 = vpop.permute.xlu1 %834 }
 0x95e   :  { %2694 = vmatmul.msk.f32.vlgmr.msra.gmra.mxu0 %vm186_vm0, %v835_v42 }
 0x9d1   :  { %v880_v43 = vpop.f32.mrf.mxu1 }
 0x9d2   :  { %v884_v44 = vrot.slane %v880_v43, 2 }
 0x9d4   :  { %v886_v4 = vadd.f32 %v884_v44, %v3456_v21 }
 0x9d6   :  { %2829 = vtanh.f32 %v886_v4  ;;  %v2697_v3 = vmul.f32 -1.442695, %v886_v4 }
 0x9db   :  { %v855_v45 = vpop.f32.mrf.mxu0 }
 0x9dc   :  { %v2830_v46 = vpop.eup %2829  ;;  %v858_v12 = vadd.f32 %v855_v45, %v3597_v8 }
 0x9dd   :  { %952 = vrot.lane.b32.xlu2 %v2830_v46, %s3260_s6 }
 0x9de   :  { %2831 = vtanh.f32 %v858_v12  ;;  %v2696_v24 = vmul.f32 -1.442695, %v858_v12 }
 0x9df   :  { %2833 = vpow2.f32 %v2697_v3 }
 0x9e4   :  { %v2832_v1 = vpop.eup %2831 }
 0x9e5   :  { %912 = vrot.lane.b32.xlu0 %v2832_v1, %s3260_s6  ;;  %v2834_v7 = vpop.eup %2833 }
 0x9e6   :  { %v930_v15 = vadd.f32 1.0, %v2834_v7 }
 0x9e8   :  { %2835 = vrcp.f32 %v930_v15  ;;  %v942_v49 = vand.u32 2147483648, %v930_v15  ;;  %vm936_vm6 = vweird.f32 %v930_v15  ;;  %v940_v50 = vand.u32 2147483647, %v930_v15 }
 0x9e9   :  { %2837 = vpow2.f32 %v2696_v24 }
 0x9ea   :  { %v943_v52 = vor.u32 1.1754944e-38, %v942_v49  ;;  %vm941_vm8 = vcmp.eq.f32.partialorder %v940_v50, 8.507059e+37 }
 0x9ee   :  { %v2836_v11 = vpop.eup %2835 }
 0x9ef   :  { %v932_v25 = vmul.f32 %v2836_v11, %v930_v15  ;;  %vm937_vm5 = vweird.f32 %v2836_v11  ;;  %v2838_v29 = vpop.eup %2837 }
 0x9f0   :  { %vm938_vm7 = vmor %vm936_vm6, %vm937_vm5  ;;  %v890_v53 = vadd.f32 1.0, %v2838_v29 }
 0x9f1   :  { %v933_v47 = vsub.f32 1.0, %v932_v25 }
 0x9f2   :  { %2839 = vrcp.f32 %v890_v53  ;;  %v902_v62 = vand.u32 2147483648, %v890_v53  ;;  %vm896_vm11 = vweird.f32 %v890_v53  ;;  %v900_v63 = vand.u32 2147483647, %v890_v53 }
 0x9f3   :  { %v934_v38 = vmul.f32 %v2836_v11, %v933_v47 }
 0x9f4   :  { %v903_v2 = vor.u32 1.1754944e-38, %v902_v62  ;;  %vm901_vm13 = vcmp.eq.f32.partialorder %v900_v63, 8.507059e+37 }
 0x9f5   :  { %v935_v48 = vadd.f32 %v2836_v11, %v934_v38 }
 0x9f7   :  { %v939_v51 = vsel %vm938_vm7, %v2836_v11, %v935_v48 }
 0x9f8   :  { %v944_v54 = vsel %vm941_vm8, %v943_v52, %v939_v51  ;;  %v2840_v57 = vpop.eup %2839 }
 0x9f9   :  { %v892_v58 = vmul.f32 %v2840_v57, %v890_v53  ;;  %vm897_vm10 = vweird.f32 %v2840_v57  ;;  %v950_v19 = vmul.f32 %v948_v16, %v944_v54 }
 0x9fa   :  { %vm898_vm12 = vmor %vm896_vm11, %vm897_vm10 }
 0x9fb   :  { %v893_v59 = vsub.f32 1.0, %v892_v58 }
 0x9fd   :  { %v894_v60 = vmul.f32 %v2840_v57, %v893_v59 }
 0x9ff   :  { %v895_v61 = vadd.f32 %v2840_v57, %v894_v60 }
 0xa01   :  { %v899_v0 = vsel %vm898_vm12, %v2840_v57, %v895_v61 }
 0xa02   :  { %v904_v9 = vsel %vm901_vm13, %v903_v2, %v899_v0 }
 0xa03   :  { %v910_v28 = vmul.f32 %v908_v26, %v904_v9 }
 0xa37   :  { %v953_v55 = vpop.permute.xlu2 %952 }
 0xa38   :  { %v955_v56 = vmul.f32 %v953_v55, %v944_v54 }
 0xa3a   :  { %957 = vrot.lane.b32.xlu1 %v955_v56, %s3261_s3 }
 0xa57   :  { %v913_v6 = vpop.permute.xlu0 %912 }
 0xa58   :  { %v915_v10 = vmul.f32 %v913_v6, %v904_v9 }
 0xa5a   :  { %917 = vrot.lane.b32.xlu2 %v915_v10, %s3261_s3 }
 0xaac   :  { %v958_v20 = vpop.permute.xlu1 %957 }
 0xaad   :  { %v3605_v23 = vadd.f32 %v958_v20, %v950_v19 }
 0xaaf   :  { %2841 = vtanh.f32 %v3605_v23  ;;  %v1093_v19 = vrot.slane %v3605_v23, 2 }
 0xab4   :  { %v918_v31 = vpop.permute.xlu2 %917 }
 0xab5   :  { %v2842_v32 = vpop.eup %2841  ;;  %v3609_v33 = vadd.f32 %v918_v31, %v910_v28 }
 0xab6   :  { %963 = vrot.lane.b32.xlu0 %v2842_v32, %s3260_s6 }
 0xab7   :  { %2843 = vtanh.f32 %v3609_v33  ;;  %v1053_v31 = vrot.slane %v3609_v33, 6 }
 0xabd   :  { %v2844_v36 = vpop.eup %2843 }
 0xabe   :  { %923 = vrot.lane.b32.xlu1 %v2844_v36, %s3260_s6 }
 0xb28   :  { %v964_v5 = vpop.permute.xlu0 %963 }
 0xb29   :  { %v3614_v13 = vmul.f32 %v964_v5, %v944_v54 }
 0xb2b   :  { %v1003_v39 = vrot.slane %v3614_v13, 6 }
 0xb2d   :  { %1004 = vrot.lane.b32.xlu2 %v1003_v39, %s3261_s3 }
 0xb30   :  { %v924_v35 = vpop.permute.xlu1 %923 }
 0xb31   :  { %v926_v34 = vmul.f32 %v924_v35, %v904_v9 }
 0xb33   :  { %968 = vrot.lane.b32.xlu0 %v926_v34, %s3261_s3 }
 0xb87   :  { %v1005_v41 = vpop.permute.xlu2 %1004 }
 0xb88   :  { %2699 = vmatmul.msk.f32.vlgmr.msrb.gmra.mxu3 %vm186_vm0, %v1005_v41 }
 0xba5   :  { %v3620_v42 = vpop.permute.xlu0 %968 }
 0xba6   :  { %2698 = vmatmul.msk.f32.vlgmr.msrb.gmra.mxu2 %vm186_vm0, %v3620_v42 }
 0xc0b   :  { %v1025_v43 = vpop.f32.mrf.mxu3 }
 0xc0c   :  { %v1029_v44 = vrot.slane %v1025_v43, 4 }
 0xc0e   :  { %v1031_v4 = vadd.f32 %v1029_v44, %v3456_v21 }
 0xc10   :  { %2845 = vtanh.f32 %v1031_v4  ;;  %v2701_v7 = vmul.f32 -1.442695, %v1031_v4 }
 0xc16   :  { %v2846_v45 = vpop.eup %2845 }
 0xc17   :  { %1097 = vrot.lane.b32.xlu1 %v2846_v45, %s3260_s6 }
 0xc29   :  { %v996_v46 = vpop.f32.mrf.mxu2 }
 0xc2a   :  { %v1000_v12 = vrot.slane %v996_v46, 6 }
 0xc2c   :  { %v1002_v1 = vadd.f32 %v1000_v12, %v3597_v8 }
 0xc2e   :  { %2847 = vtanh.f32 %v1002_v1  ;;  %v2700_v15 = vmul.f32 -1.442695, %v1002_v1 }
 0xc2f   :  { %2849 = vpow2.f32 %v2701_v7 }
 0xc30   :  { %2851 = vpow2.f32 %v2700_v15 }
 0xc34   :  { %v2848_v3 = vpop.eup %2847 }
 0xc35   :  { %1057 = vrot.lane.b32.xlu2 %v2848_v3, %s3260_s6  ;;  %v2850_v11 = vpop.eup %2849 }
 0xc36   :  { %v1075_v25 = vadd.f32 1.0, %v2850_v11  ;;  %v2852_v47 = vpop.eup %2851 }
 0xc37   :  { %v1035_v24 = vadd.f32 1.0, %v2852_v47 }
 0xc38   :  { %2853 = vrcp.f32 %v1075_v25  ;;  %v1087_v54 = vand.u32 2147483648, %v1075_v25  ;;  %vm1081_vm15 = vweird.f32 %v1075_v25  ;;  %v1085_v55 = vand.u32 2147483647, %v1075_v25 }
 0xc39   :  { %2855 = vrcp.f32 %v1035_v24  ;;  %v1047_v62 = vand.u32 2147483648, %v1035_v24  ;;  %vm1041_vm4 = vweird.f32 %v1035_v24  ;;  %v1045_v0 = vand.u32 2147483647, %v1035_v24 }
 0xc3a   :  { %v1088_v58 = vor.u32 1.1754944e-38, %v1087_v54  ;;  %vm1086_vm2 = vcmp.eq.f32.partialorder %v1085_v55, 8.507059e+37 }
 0xc3b   :  { %v1048_v6 = vor.u32 1.1754944e-38, %v1047_v62  ;;  %vm1046_vm6 = vcmp.eq.f32.partialorder %v1045_v0, 8.507059e+37 }
 0xc3e   :  { %v2854_v38 = vpop.eup %2853 }
 0xc3f   :  { %v1077_v48 = vmul.f32 %v2854_v38, %v1075_v25  ;;  %v2856_v49 = vpop.eup %2855  ;;  %vm1082_vm14 = vweird.f32 %v2854_v38 }
 0xc40   :  { %v1037_v29 = vmul.f32 %v2856_v49, %v1035_v24  ;;  %vm1083_vm1 = vmor %vm1081_vm15, %vm1082_vm14  ;;  %vm1042_vm3 = vweird.f32 %v2856_v49 }
 0xc41   :  { %v1078_v50 = vsub.f32 1.0, %v1077_v48  ;;  %vm1043_vm5 = vmor %vm1041_vm4, %vm1042_vm3 }
 0xc42   :  { %v1038_v52 = vsub.f32 1.0, %v1037_v29 }
 0xc43   :  { %v1079_v51 = vmul.f32 %v2854_v38, %v1078_v50 }
 0xc44   :  { %v1039_v56 = vmul.f32 %v2856_v49, %v1038_v52 }
 0xc45   :  { %v1080_v53 = vadd.f32 %v2854_v38, %v1079_v51 }
 0xc46   :  { %v1040_v59 = vadd.f32 %v2856_v49, %v1039_v56 }
 0xc47   :  { %v1084_v57 = vsel %vm1083_vm1, %v2854_v38, %v1080_v53 }
 0xc48   :  { %v1089_v61 = vsel %vm1086_vm2, %v1088_v58, %v1084_v57  ;;  %v1044_v2 = vsel %vm1043_vm5, %v2856_v49, %v1040_v59 }
 0xc49   :  { %v1049_v9 = vsel %vm1046_vm6, %v1048_v6, %v1044_v2  ;;  %v1095_v20 = vmul.f32 %v1093_v19, %v1089_v61 }
 0xc4a   :  { %v1055_v32 = vmul.f32 %v1053_v31, %v1049_v9 }
 0xc89   :  { %v1098_v60 = vpop.permute.xlu1 %1097 }
 0xc8a   :  { %v1100_v63 = vmul.f32 %v1098_v60, %v1089_v61 }
 0xc8c   :  { %1102 = vrot.lane.b32.xlu0 %v1100_v63, %s3261_s3 }
 0xc8f   :  { %v1058_v10 = vpop.permute.xlu2 %1057 }
 0xc90   :  { %v1060_v16 = vmul.f32 %v1058_v10, %v1049_v9 }
 0xc92   :  { %1062 = vrot.lane.b32.xlu1 %v1060_v16, %s3261_s3 }
 0xcfe   :  { %v1103_v26 = vpop.permute.xlu0 %1102 }
 0xcff   :  { %v3631_v28 = vadd.f32 %v1103_v26, %v1095_v20 }
 0xd01   :  { %2857 = vtanh.f32 %v3631_v28 }
 0xd04   :  { %v1063_v36 = vpop.permute.xlu1 %1062 }
 0xd05   :  { %v3635_v5 = vadd.f32 %v1063_v36, %v1055_v32  ;;  %v1241_v32 = vrot.slane %v3631_v28, 2 }
 0xd07   :  { %v2858_v39 = vpop.eup %2857  ;;  %2859 = vtanh.f32 %v3635_v5 }
 0xd08   :  { %1108 = vrot.lane.b32.xlu2 %v2858_v39, %s3260_s6 }
 0xd0d   :  { %v2860_v35 = vpop.eup %2859 }
 0xd0e   :  { %1068 = vrot.lane.b32.xlu0 %v2860_v35, %s3260_s6 }
 0xd62   :  { %v1109_v23 = vpop.permute.xlu2 %1108 }
 0xd63   :  { %v3640_v34 = vmul.f32 %v1109_v23, %v1089_v61 }
 0xd65   :  { %v1151_v41 = vrot.slane %v3640_v34, 4 }
 0xd67   :  { %1152 = vrot.lane.b32.xlu1 %v1151_v41, %s3261_s3  ;;  %v1201_v41 = vrot.slane %v3635_v5, 6 }
 0xd80   :  { %v1069_v33 = vpop.permute.xlu0 %1068 }
 0xd81   :  { %v3644_v43 = vmul.f32 %v1069_v33, %v1049_v9 }
 0xd83   :  { %v1122_v44 = vrot.slane %v3644_v43, 2 }
 0xd85   :  { %1123 = vrot.lane.b32.xlu2 %v1122_v44, %s3261_s3 }
 0xdd9   :  { %v1153_v4 = vpop.permute.xlu1 %1152 }
 0xdda   :  { %2703 = vmatmul.msk.f32.vlgmr.msrb.gmra.mxu1 %vm186_vm0, %v1153_v4 }
 0xddf   :  { %v1124_v45 = vpop.permute.xlu2 %1123 }
 0xde0   :  { %2702 = vmatmul.msk.f32.vlgmr.msrb.gmra.mxu0 %vm186_vm0, %v1124_v45 }
 0xe57   :  { %v1173_v46 = vpop.f32.mrf.mxu1 }
 0xe58   :  { %v1177_v12 = vrot.slane %v1173_v46, 6 }
 0xe5a   :  { %v1179_v1 = vadd.f32 %v1177_v12, %v3456_v21 }
 0xe5c   :  { %2861 = vtanh.f32 %v1179_v1  ;;  %v2705_v47 = vmul.f32 -1.442695, %v1179_v1 }
 0xe5d   :  { %v1144_v3 = vpop.f32.mrf.mxu0 }
 0xe5e   :  { %v1148_v7 = vrot.slane %v1144_v3, 4 }
 0xe60   :  { %v1150_v15 = vadd.f32 %v1148_v7, %v3597_v8 }
 0xe62   :  { %v2862_v11 = vpop.eup %2861  ;;  %2863 = vtanh.f32 %v1150_v15  ;;  %v2704_v24 = vmul.f32 -1.442695, %v1150_v15 }
 0xe63   :  { %1245 = vrot.lane.b32.xlu0 %v2862_v11, %s3260_s6  ;;  %2865 = vpow2.f32 %v2705_v47 }
 0xe64   :  { %2867 = vpow2.f32 %v2704_v24 }
 0xe68   :  { %v2864_v25 = vpop.eup %2863 }
 0xe69   :  { %1205 = vrot.lane.b32.xlu1 %v2864_v25, %s3260_s6  ;;  %v2866_v38 = vpop.eup %2865 }
 0xe6a   :  { %v1223_v48 = vadd.f32 1.0, %v2866_v38  ;;  %v2868_v49 = vpop.eup %2867 }
 0xe6b   :  { %v1183_v50 = vadd.f32 1.0, %v2868_v49 }
 0xe6c   :  { %2869 = vrcp.f32 %v1223_v48  ;;  %v1235_v58 = vand.u32 2147483648, %v1223_v48  ;;  %vm1229_vm8 = vweird.f32 %v1223_v48  ;;  %v1233_v59 = vand.u32 2147483647, %v1223_v48 }
 0xe6d   :  { %2871 = vrcp.f32 %v1183_v50  ;;  %v1195_v6 = vand.u32 2147483648, %v1183_v50  ;;  %vm1189_vm13 = vweird.f32 %v1183_v50  ;;  %v1193_v10 = vand.u32 2147483647, %v1183_v50 }
 0xe6e   :  { %v1236_v62 = vor.u32 1.1754944e-38, %v1235_v58  ;;  %vm1234_vm11 = vcmp.eq.f32.partialorder %v1233_v59, 8.507059e+37 }
 0xe6f   :  { %v1196_v19 = vor.u32 1.1754944e-38, %v1195_v6  ;;  %vm1194_vm15 = vcmp.eq.f32.partialorder %v1193_v10, 8.507059e+37 }
 0xe72   :  { %v2870_v29 = vpop.eup %2869 }
 0xe73   :  { %v1225_v51 = vmul.f32 %v2870_v29, %v1223_v48  ;;  %v2872_v52 = vpop.eup %2871  ;;  %vm1230_vm7 = vweird.f32 %v2870_v29 }
 0xe74   :  { %v1185_v54 = vmul.f32 %v2872_v52, %v1183_v50  ;;  %vm1231_vm10 = vmor %vm1229_vm8, %vm1230_vm7  ;;  %vm1190_vm12 = vweird.f32 %v2872_v52 }
 0xe75   :  { %v1226_v53 = vsub.f32 1.0, %v1225_v51  ;;  %vm1191_vm14 = vmor %vm1189_vm13, %vm1190_vm12  ;;  %vm678_vm12 = vcmask 259076   ;;  %vm534_vm13 = vcmask 521476  }
 0xe76   :  { %v1186_v56 = vsub.f32 1.0, %v1185_v54 }
 0xe77   :  { %v1227_v55 = vmul.f32 %v2870_v29, %v1226_v53 }
 0xe78   :  { %v1187_v60 = vmul.f32 %v2872_v52, %v1186_v56 }
 0xe79   :  { %v1228_v57 = vadd.f32 %v2870_v29, %v1227_v55 }
 0xe7a   :  { %v1188_v63 = vadd.f32 %v2872_v52, %v1187_v60 }
 0xe7b   :  { %v1232_v61 = vsel %vm1231_vm10, %v2870_v29, %v1228_v57  ;;  %vm528_vm10 = vcmask 257026  }
 0xe7c   :  { %v1237_v2 = vsel %vm1234_vm11, %v1236_v62, %v1232_v61  ;;  %v1192_v16 = vsel %vm1191_vm14, %v2872_v52, %v1188_v63  ;;  %vm684_vm11 = vcmask 519426   ;;  %vm825_vm14 = vcmask 261126  }
 0xe7d   :  { %v1197_v26 = vsel %vm1194_vm15, %v1196_v19, %v1192_v16  ;;  %v1243_v36 = vmul.f32 %v1241_v32, %v1237_v2  ;;  %vm387_vm15 = vcmask 523526  }
 0xe7e   :  { %v1203_v33 = vmul.f32 %v1201_v41, %v1197_v26 }
 0xed5   :  { %v1246_v0 = vpop.permute.xlu0 %1245 }
 0xed6   :  { %v1248_v9 = vmul.f32 %v1246_v0, %v1237_v2 }
 0xed8   :  { %1250 = vrot.lane.b32.xlu2 %v1248_v9, %s3261_s3 }
 0xedb   :  { %v1206_v20 = vpop.permute.xlu1 %1205 }
 0xedc   :  { %v1208_v31 = vmul.f32 %v1206_v20, %v1197_v26 }
 0xede   :  { %1210 = vrot.lane.b32.xlu0 %v1208_v31, %s3261_s3 }
 0xf32   :  { %v1251_v39 = vpop.permute.xlu2 %1250 }
 0xf33   :  { %v3657_v35 = vadd.f32 %v1251_v39, %v1243_v36 }
 0xf35   :  { %2873 = vtanh.f32 %v3657_v35 }
 0xf3b   :  { %v2874_v23 = vpop.eup %2873 }
 0xf3c   :  { %1256 = vrot.lane.b32.xlu1 %v2874_v23, %s3260_s6  ;;  %v1386_v23 = vrot.slane %v3657_v35, 2 }
 0xf50   :  { %v1211_v44 = vpop.permute.xlu0 %1210 }
 0xf51   :  { %v3662_v4 = vadd.f32 %v1211_v44, %v1203_v33 }
 0xf53   :  { %2875 = vtanh.f32 %v3662_v4 }
 0xf59   :  { %v2876_v45 = vpop.eup %2875 }
 0xf5a   :  { %1216 = vrot.lane.b32.xlu2 %v2876_v45, %s3260_s6  ;;  %v1346_v45 = vrot.slane %v3662_v4, 6 }
 0xfae   :  { %v1257_v28 = vpop.permute.xlu1 %1256 }
 0xfaf   :  { %v3666_v46 = vmul.f32 %v1257_v28, %v1237_v2 }
 0xfb1   :  { %v1299_v12 = vrot.slane %v3666_v46, 2 }
 0xfb3   :  { %1300 = vrot.lane.b32.xlu0 %v1299_v12, %s3261_s3 }
 0xfb4   :  { %v1217_v1 = vpop.permute.xlu2 %1216 }
 0xfb5   :  { %v3670_v3 = vmul.f32 %v1217_v1, %v1197_v26 }
 0xfb7   :  { %v1270_v5 = vrot.slane %v3670_v3, 4 }
 0xfb9   :  { %1271 = vrot.lane.b32.xlu1 %v1270_v5, %s3261_s3 }
0x1025   :  { %v1301_v7 = vpop.permute.xlu0 %1300 }
0x1026   :  { %2707 = vmatmul.msk.f32.vlgmr.msra.gmra.mxu3 %vm186_vm0, %v1301_v7  ;;  %v1422_v7 = vld [vmem:[%s4046_s7 + $0x28] sm:$0xff] }
0x102b   :  { %v1272_v15 = vpop.permute.xlu1 %1271 }
0x102c   :  { %2706 = vmatmul.msk.f32.vlgmr.msra.gmra.mxu2 %vm186_vm0, %v1272_v15  ;;  %v1464_v15 = vld [vmem:[#allocation14 + $0x28] sm:$0xff] }
0x10a9   :  { %v1321_v11 = vpop.f32.mrf.mxu3 }
0x10aa   :  { %v1324_v25 = vadd.f32 %v1321_v11, %v3456_v21  ;;  %v3724_v11 = vld [vmem:[#allocation12 + $0x18] sm:$0xff] }
0x10ab   :  { %1514 = vmatpush.msrb.mxu2 %v3724_v11 }
0x10ac   :  { %2877 = vtanh.f32 %v1324_v25  ;;  %v2709_v50 = vmul.f32 -1.442695, %v1324_v25  ;;  %v3726_v25 = vld [vmem:[#allocation12 + $0x10] sm:$0xff] }
0x10ad   :  { %1515 = vmatpush.msrb.mxu2 %v3726_v25 }
0x10af   :  { %v1292_v47 = vpop.f32.mrf.mxu2 }
0x10b0   :  { %v1296_v24 = vrot.slane %v1292_v47, 2  ;;  %v1421_v47 = vld [vmem:[%s4046_s7 + $0x20] sm:$0xff] }
0x10b2   :  { %v2878_v38 = vpop.eup %2877  ;;  %v1298_v48 = vadd.f32 %v1296_v24, %v3597_v8 }
0x10b3   :  { %1390 = vrot.lane.b32.xlu2 %v2878_v38, %s3260_s6 }
0x10b4   :  { %2879 = vtanh.f32 %v1298_v48  ;;  %v2708_v54 = vmul.f32 -1.442695, %v1298_v48 }
0x10b5   :  { %2881 = vpow2.f32 %v2709_v50 }
0x10ba   :  { %v2880_v49 = vpop.eup %2879 }
0x10bb   :  { %1350 = vrot.lane.b32.xlu0 %v2880_v49, %s3260_s6  ;;  %v2882_v29 = vpop.eup %2881 }
0x10bc   :  { %v1368_v51 = vadd.f32 1.0, %v2882_v29 }
0x10be   :  { %2883 = vrcp.f32 %v1368_v51  ;;  %v1380_v8 = vand.u32 2147483648, %v1368_v51  ;;  %vm1374_vm2 = vweird.f32 %v1368_v51  ;;  %v1378_v57 = vand.u32 2147483647, %v1368_v51 }
0x10bf   :  { %2885 = vpow2.f32 %v2708_v54  ;;  %v1419_v54 = vld [vmem:[%s4046_s7 + $0x10] sm:$0xff] }
0x10c0   :  { %v1381_v60 = vor.u32 1.1754944e-38, %v1380_v8  ;;  %vm1379_vm4 = vcmp.eq.f32.partialorder %v1378_v57, 8.507059e+37  ;;  %v1460_v8 = vld [vmem:[#allocation14 + $0x8] sm:$0xff]  ;;  %v1417_v57 = vld [vmem:[%s4046_s7] sm:$0xff] }
0x10c4   :  { %v2884_v52 = vpop.eup %2883 }
0x10c5   :  { %v1370_v53 = vmul.f32 %v2884_v52, %v1368_v51  ;;  %vm1375_vm1 = vweird.f32 %v2884_v52  ;;  %v2886_v58 = vpop.eup %2885 }
0x10c6   :  { %vm1376_vm3 = vmor %vm1374_vm2, %vm1375_vm1  ;;  %v1328_v61 = vadd.f32 1.0, %v2886_v58  ;;  %vm831_vm1 = vcmask 517376   ;;  %v1459_v58 = vld [vmem:[#allocation14] sm:$0xff] }
0x10c7   :  { %v1371_v21 = vsub.f32 1.0, %v1370_v53  ;;  %v1462_v53 = vld [vmem:[#allocation14 + $0x18] sm:$0xff] }
0x10c8   :  { %2887 = vrcp.f32 %v1328_v61  ;;  %v1340_v19 = vand.u32 2147483648, %v1328_v61  ;;  %vm1334_vm6 = vweird.f32 %v1328_v61  ;;  %v1338_v20 = vand.u32 2147483647, %v1328_v61 }
0x10c9   :  { %v1372_v55 = vmul.f32 %v2884_v52, %v1371_v21  ;;  %v3744_v21 = vld [vmem:[#allocation12 + $0x8] sm:$0xff] }
0x10ca   :  { %v1341_v31 = vor.u32 1.1754944e-38, %v1340_v19  ;;  %vm1339_vm8 = vcmp.eq.f32.partialorder %v1338_v20, 8.507059e+37  ;;  %1516 = vmatpush.msrb.mxu2 %v3744_v21 }
0x10cb   :  { %v1373_v56 = vadd.f32 %v2884_v52, %v1372_v55  ;;  %v1461_v55 = vld [vmem:[#allocation14 + $0x10] sm:$0xff] }
0x10cd   :  { %v1377_v59 = vsel %vm1376_vm3, %v2884_v52, %v1373_v56  ;;  %v1420_v52 = vld [vmem:[%s4046_s7 + $0x18] sm:$0xff]  ;;  %v1418_v56 = vld [vmem:[%s4046_s7 + $0x8] sm:$0xff] }
0x10ce   :  { %v1382_v62 = vsel %vm1379_vm4, %v1381_v60, %v1377_v59  ;;  %v2888_v2 = vpop.eup %2887  ;;  %v3761_v59 = vld [vmem:[#allocation15 + $0x18] sm:$0xff]  ;;  %v3763_v60 = vld [vmem:[#allocation15 + $0x10] sm:$0xff] }
0x10cf   :  { %v1330_v6 = vmul.f32 %v2888_v2, %v1328_v61  ;;  %vm1335_vm5 = vweird.f32 %v2888_v2  ;;  %v1388_v41 = vmul.f32 %v1386_v23, %v1382_v62  ;;  %1535 = vmatpush.msrb.mxu3 %v3761_v59  ;;  %v3768_v61 = vld [vmem:[#allocation15 + $0x8] sm:$0xff] }
0x10d0   :  { %vm1336_vm7 = vmor %vm1334_vm6, %vm1335_vm5 }
0x10d1   :  { %v1331_v9 = vsub.f32 1.0, %v1330_v6  ;;  %1536 = vmatpush.msrb.mxu3 %v3763_v60 }
0x10d3   :  { %v1332_v10 = vmul.f32 %v2888_v2, %v1331_v9  ;;  %1537 = vmatpush.msrb.mxu3 %v3768_v61  ;;  %v3815_v9 = vld [vmem:[%s4048_s9] ss:$0 sm:$0xff] }
0x10d5   :  { %v1333_v16 = vadd.f32 %v2888_v2, %v1332_v10  ;;  %v2763_v10 = vld [vmem:[%s4051_s12] ss:$0 sm:$0xff] }
0x10d7   :  { %v1337_v26 = vsel %vm1336_vm7, %v2888_v2, %v1333_v16 }
0x10d8   :  { %v1342_v36 = vsel %vm1339_vm8, %v1341_v31, %v1337_v26 }
0x10d9   :  { %v1348_v28 = vmul.f32 %v1346_v45, %v1342_v36 }
0x110d   :  { %v1391_v63 = vpop.permute.xlu2 %1390 }
0x110e   :  { %v1393_v0 = vmul.f32 %v1391_v63, %v1382_v62  ;;  %v3785_v63 = vld [vmem:[#allocation15] sm:$0xff] }
0x110f   :  { %1538 = vmatpush.msrb.mxu3 %v3785_v63 }
0x1110   :  { %1395 = vrot.lane.b32.xlu1 %v1393_v0, %s3261_s3  ;;  %1539 = vmatmul.f32.vlgmr.msrb.gmra.mxu3 %v3259_v17 }
0x1111   :  { %1668 = vmatpush.msra.mxu3 %v3761_v59 }
0x1113   :  { %1669 = vmatpush.msra.mxu3 %v3763_v60 }
0x1115   :  { %1670 = vmatpush.msra.mxu3 %v3768_v61 }
0x1117   :  { %1671 = vmatpush.msra.mxu3 %v3785_v63 }
0x1119   :  { %1808 = vmatpush.msrb.mxu3 %v3761_v59 }
0x111b   :  { %1809 = vmatpush.msrb.mxu3 %v3763_v60 }
0x111d   :  { %1810 = vmatpush.msrb.mxu3 %v3768_v61 }
0x111f   :  { %1811 = vmatpush.msrb.mxu3 %v3785_v63 }
0x112d   :  { %v1351_v32 = vpop.permute.xlu0 %1350 }
0x112e   :  { %v1353_v39 = vmul.f32 %v1351_v32, %v1342_v36 }
0x1130   :  { %1355 = vrot.lane.b32.xlu2 %v1353_v39, %s3261_s3 }
0x1138   :  { %525 = vrot.lane.b32.xlu2 %v3518_v30, %s3261_s3 }
0x1140   :  { %973 = vrot.lane.b32.xlu2 %v3614_v13, %s3260_s6 }
0x1148   :  { %681 = vrot.lane.b32.xlu2 %v3550_v37, %s3260_s6 }
0x1182   :  { %v1396_v33 = vpop.permute.xlu1 %1395 }
0x1183   :  { %v1398_v44 = vadd.f32 %v1396_v33, %v1388_v41 }
0x1185   :  { %2889 = vtanh.f32 %v1398_v44 }
0x118a   :  { %v1356_v12 = vpop.permute.xlu2 %1355 }
0x118b   :  { %v2890_v1 = vpop.eup %2889  ;;  %v1358_v5 = vadd.f32 %v1356_v12, %v1348_v28 }
0x118c   :  { %1401 = vrot.lane.b32.xlu0 %v2890_v1, %s3260_s6 }
0x118d   :  { %2891 = vtanh.f32 %v1358_v5 }
0x1192   :  { %v526_v30 = vpop.permute.xlu2 %525 }
0x1193   :  { %v2892_v13 = vpop.eup %2891  ;;  %529 = vst.msk [vmem:[#allocation2] sm:$0xc] %vm528_vm10, %v526_v30  ;;  %v1540_v39 = vpop.f32.mrf.mxu3 }
0x1194   :  { %675 = vrot.lane.b32.xlu0 %v3554_v40, %s3261_s3  ;;  %1361 = vrot.lane.b32.xlu1 %v2892_v13, %s3260_s6  ;;  %v1544_v23 = vrot.slane %v1540_v39, 2 }
0x119a   :  { %v974_v37 = vpop.permute.xlu2 %973 }
0x119c   :  { %1118 = vrot.lane.b32.xlu0 %v3640_v34, %s3260_s6  ;;  %822 = vrot.lane.b32.xlu1 %v3588_v22, %s3261_s3 }
0x11a2   :  { %v682_v35 = vpop.permute.xlu2 %681 }
0x11a3   :  { %685 = vst.msk [vmem:[#allocation2 + $0x8] sm:$0xc] %vm684_vm11, %v682_v35 }
0x11a4   :  { %384 = vrot.lane.b32.xlu0 %v3482_v18, %s3260_s6  ;;  %1266 = vrot.lane.b32.xlu1 %v3666_v46, %s3260_s6  ;;  %v1466_v46 = vld [vmem:[#allocation14 + $0x38] sm:$0xff] }
0x11a5   :  { %1479 = vmatpush.msra.mxu1 %v1466_v46 }
0x11ac   :  { %828 = vrot.lane.b32.xlu0 %v3584_v14, %s3260_s6  ;;  %531 = vrot.lane.b32.xlu1 %v3514_v27, %s3260_s6  ;;  %v1424_v14 = vld [vmem:[%s4046_s7 + $0x38] sm:$0xff]  ;;  %v1423_v27 = vld [vmem:[%s4046_s7 + $0x30] sm:$0xff] }
0x11ad   :  { %1444 = vmatpush.msra.mxu0 %v1424_v14 }
0x11af   :  { %1445 = vmatpush.msra.mxu0 %v1423_v27 }
0x11b1   :  { %1446 = vmatpush.msra.mxu0 %v1422_v7 }
0x11b3   :  { %1447 = vmatpush.msra.mxu0 %v1421_v47 }
0x11b4   :  { %1113 = vrot.lane.b32.xlu1 %v3644_v43, %s3261_s3  ;;  %v1465_v43 = vld [vmem:[#allocation14 + $0x30] sm:$0xff] }
0x11b5   :  { %1480 = vmatpush.msra.mxu1 %v1465_v43  ;;  %1448 = vmatpush.msra.mxu0 %v1420_v52 }
0x11b7   :  { %1481 = vmatpush.msra.mxu1 %v1464_v15  ;;  %1449 = vmatpush.msra.mxu0 %v1419_v54 }
0x11b9   :  { %1450 = vmatpush.msra.mxu0 %v1418_v56 }
0x11bb   :  { %1451 = vmatpush.msra.mxu0 %v1417_v57 }
0x11bd   :  { %1918 = vmatpush.msrb.mxu0 %v3724_v11 }
0x11bf   :  { %1919 = vmatpush.msrb.mxu0 %v3726_v25 }
0x11c1   :  { %1920 = vmatpush.msrb.mxu0 %v3744_v21 }
0x11fe   :  { %v1402_v40 = vpop.permute.xlu0 %1401 }
0x11ff   :  { %v1404_v22 = vmul.f32 %v1402_v40, %v1382_v62 }
0x1201   :  { %1411 = vrot.lane.b32.xlu2 %v1404_v22, %s3260_s6 }
0x1206   :  { %v676_v34 = vpop.permute.xlu0 %675  ;;  %v1362_v4 = vpop.permute.xlu1 %1361 }
0x1207   :  { %679 = vst.msk [vmem:[#allocation2] sm:$0x30] %vm678_vm12, %v676_v34  ;;  %v1364_v18 = vmul.f32 %v1362_v4, %v1342_v36 }
0x1209   :  { %1261 = vrot.lane.b32.xlu2 %v3670_v3, %s3261_s3  ;;  %1406 = vrot.lane.b32.xlu0 %v1364_v18, %s3261_s3  ;;  %v1463_v3 = vld [vmem:[#allocation14 + $0x20] sm:$0xff] }
0x120a   :  { %1482 = vmatpush.msra.mxu1 %v1463_v3 }
0x120c   :  { %1483 = vmatpush.msra.mxu1 %v1462_v53 }
0x120e   :  { %v1119_v24 = vpop.permute.xlu0 %1118  ;;  %v823_v38 = vpop.permute.xlu1 %822  ;;  %1484 = vmatpush.msra.mxu1 %v1461_v55 }
0x120f   :  { %1121 = vst.msk [vmem:[#allocation2] sm:$0x30] %vm534_vm13, %v1119_v24 }
0x1210   :  { %826 = vst.msk [vmem:[#allocation2] sm:$0xc0] %vm825_vm14, %v823_v38  ;;  %1485 = vmatpush.msra.mxu1 %v1460_v8 }
0x1211   :  { %976 = vst.msk [vmem:[#allocation2] sm:$0xc0] %vm387_vm15, %v974_v37 }
0x1212   :  { %1486 = vmatpush.msra.mxu1 %v1459_v58 }
0x1214   :  { %1948 = vmatpush.msrb.mxu1 %v3761_v59 }
0x1216   :  { %v385_v48 = vpop.permute.xlu0 %384  ;;  %v1267_v49 = vpop.permute.xlu1 %1266  ;;  %1949 = vmatpush.msrb.mxu1 %v3763_v60 }
0x1217   :  { %388 = vst.msk [vmem:[#allocation2 + $0x8] sm:$0xc0] %vm387_vm15, %v385_v48 }
0x1218   :  { %1269 = vst.msk [vmem:[#allocation2] sm:$0xc] %vm684_vm11, %v1267_v49  ;;  %1950 = vmatpush.msrb.mxu1 %v3768_v61 }
0x121a   :  { %1951 = vmatpush.msrb.mxu1 %v3785_v63 }
0x121e   :  { %v829_v50 = vpop.permute.xlu0 %828  ;;  %v532_v29 = vpop.permute.xlu1 %531 }
0x121f   :  { %832 = vst.msk [vmem:[#allocation2 + $0x8] sm:$0x3] %vm831_vm1, %v829_v50 }
0x1220   :  { %971 = vst.msk [vmem:[#allocation2 + $0x8] sm:$0x3] %vm381_vm9, %v3620_v42  ;;  %v3749_v42 = vld [vmem:[#allocation12] sm:$0xff]  ;;  %vm1429_vm9 = vcmask 523264  }
0x1221   :  { %535 = vst.msk [vmem:[#allocation2 + $0x8] sm:$0x30] %vm534_vm13, %v532_v29  ;;  %1517 = vmatpush.msrb.mxu2 %v3749_v42  ;;  %1921 = vmatpush.msrb.mxu0 %v3749_v42 }
0x1222   :  { %1518 = vmatmul.f32.vlgmr.msrb.gmra.mxu2 %v3259_v17 }
0x1223   :  { %1638 = vmatpush.msra.mxu2 %v3724_v11 }
0x1225   :  { %1639 = vmatpush.msra.mxu2 %v3726_v25 }
0x1226   :  { %v1114_v51 = vpop.permute.xlu1 %1113 }
0x1227   :  { %1116 = vst.msk [vmem:[#allocation2 + $0x8] sm:$0xc] %vm528_vm10, %v1114_v51  ;;  %1640 = vmatpush.msra.mxu2 %v3744_v21 }
0x1229   :  { %1641 = vmatpush.msra.mxu2 %v3749_v42 }
0x122b   :  { %1778 = vmatpush.msrb.mxu2 %v3724_v11 }
0x122d   :  { %1779 = vmatpush.msrb.mxu2 %v3726_v25 }
0x122f   :  { %1780 = vmatpush.msrb.mxu2 %v3744_v21 }
0x1231   :  { %1781 = vmatpush.msrb.mxu2 %v3749_v42 }
0x125b   :  { %v1412_v62 = vpop.permute.xlu2 %1411 }
0x125c   :  { %1414 = vst.msk [vmem:[#allocation2] sm:$0x3] %vm831_vm1, %v1412_v62 }
0x1263   :  { %v1262_v0 = vpop.permute.xlu2 %1261  ;;  %v1415_v2 = vld [vmem:[#allocation2] sm:$0xff] }
0x1264   :  { %1264 = vst.msk [vmem:[#allocation2 + $0x8] sm:$0x30] %vm678_vm12, %v1262_v0  ;;  %2710 = vmatmul.msk.f32.vlgmr.msra.gmra.mxu0 %vm1429_vm9, %v1415_v2  ;;  %2712 = vmatmul.msk.f32.vlgmr.msra.gmra.mxu1 %vm1429_vm9, %v1415_v2 }
0x1265   :  { %2190 = vmatpush.msra.mxu0 %v3724_v11  ;;  %2220 = vmatpush.msra.mxu1 %v3761_v59 }
0x1267   :  { %2191 = vmatpush.msra.mxu0 %v3726_v25  ;;  %2221 = vmatpush.msra.mxu1 %v3763_v60 }
0x1269   :  { %2192 = vmatpush.msra.mxu0 %v3744_v21  ;;  %2222 = vmatpush.msra.mxu1 %v3768_v61 }
0x126b   :  { %2193 = vmatpush.msra.mxu0 %v3749_v42  ;;  %2223 = vmatpush.msra.mxu1 %v3785_v63 }
0x127b   :  { %v1407_v17 = vpop.permute.xlu0 %1406 }
0x127c   :  { %1409 = vst.msk [vmem:[#allocation2 + $0x8] sm:$0xc0] %vm825_vm14, %v1407_v17 }
0x1283   :  { %v1416_v6 = vld [vmem:[#allocation2 + $0x8] sm:$0xff] }
0x1284   :  { %2711 = vmatmul.msk.f32.gmra.mxu0 %vm1429_vm9, %v1416_v6  ;;  %2713 = vmatmul.msk.f32.gmra.mxu1 %vm1429_vm9, %v1416_v6 }
0x12a5   :  { %v1519_v16 = vpop.f32.mrf.mxu2 }
0x12e1   :  { %v1453_v19 = vpop.f32.mrf.mxu0  ;;  %v1488_v20 = vpop.f32.mrf.mxu1 }
0x12e2   :  { %v3821_v26 = vadd.f32 %v3815_v9, %v1453_v19  ;;  %v3823_v31 = vadd.f32 %v2763_v10, %v1488_v20 }
0x12e4   :  { %v1522_v32 = vadd.f32 %v1519_v16, %v3821_v26 }
0x12e6   :  { %2893 = vtanh.f32 %v1522_v32  ;;  %v2714_v28 = vmul.f32 -1.442695, %v1522_v32 }
0x12ec   :  { %v2894_v36 = vpop.eup %2893 }
0x12ed   :  { %1569 = vrot.lane.b32.xlu1 %v2894_v36, %s3260_s6 }
0x1301   :  { %v1491_v41 = vpop.f32.mrf.mxu1 }
0x1302   :  { %v3827_v33 = vadd.f32 %v2763_v10, %v1491_v41 }
0x1304   :  { %v1546_v44 = vadd.f32 %v1544_v23, %v3827_v33 }
0x1306   :  { %2895 = vtanh.f32 %v1546_v44  ;;  %v2715_v12 = vmul.f32 -1.442695, %v1546_v44 }
0x1307   :  { %2897 = vpow2.f32 %v2714_v28 }
0x1308   :  { %2899 = vpow2.f32 %v2715_v12 }
0x130c   :  { %v2896_v45 = vpop.eup %2895 }
0x130d   :  { %1606 = vrot.lane.b32.xlu2 %v2896_v45, %s3260_s6  ;;  %v2898_v1 = vpop.eup %2897 }
0x130e   :  { %v1550_v5 = vadd.f32 1.0, %v2898_v1  ;;  %v2900_v30 = vpop.eup %2899 }
0x130f   :  { %v1587_v13 = vadd.f32 1.0, %v2900_v30 }
0x1310   :  { %2901 = vrcp.f32 %v1550_v5  ;;  %v1562_v46 = vand.u32 2147483648, %v1550_v5  ;;  %vm1556_vm3 = vweird.f32 %v1550_v5  ;;  %v1560_v27 = vand.u32 2147483647, %v1550_v5 }
0x1311   :  { %2903 = vrcp.f32 %v1587_v13  ;;  %v1599_v48 = vand.u32 2147483648, %v1587_v13  ;;  %vm1593_vm7 = vweird.f32 %v1587_v13  ;;  %v1597_v49 = vand.u32 2147483647, %v1587_v13 }
0x1312   :  { %v1563_v15 = vor.u32 1.1754944e-38, %v1562_v46  ;;  %vm1561_vm5 = vcmp.eq.f32.partialorder %v1560_v27, 8.507059e+37 }
0x1313   :  { %v1600_v29 = vor.u32 1.1754944e-38, %v1599_v48  ;;  %vm1598_vm10 = vcmp.eq.f32.partialorder %v1597_v49, 8.507059e+37 }
0x1316   :  { %v2902_v37 = vpop.eup %2901 }
0x1317   :  { %v1552_v35 = vmul.f32 %v2902_v37, %v1550_v5  ;;  %v2904_v22 = vpop.eup %2903  ;;  %vm1557_vm2 = vweird.f32 %v2902_v37 }
0x1318   :  { %v1589_v4 = vmul.f32 %v2904_v22, %v1587_v13  ;;  %vm1558_vm4 = vmor %vm1556_vm3, %vm1557_vm2  ;;  %vm1594_vm6 = vweird.f32 %v2904_v22 }
0x1319   :  { %v1553_v40 = vsub.f32 1.0, %v1552_v35  ;;  %vm1595_vm8 = vmor %vm1593_vm7, %vm1594_vm6 }
0x131a   :  { %v1590_v14 = vsub.f32 1.0, %v1589_v4 }
0x131b   :  { %v1554_v34 = vmul.f32 %v2902_v37, %v1553_v40 }
0x131c   :  { %v1591_v7 = vmul.f32 %v2904_v22, %v1590_v14 }
0x131d   :  { %v1555_v18 = vadd.f32 %v2902_v37, %v1554_v34 }
0x131e   :  { %v1592_v38 = vadd.f32 %v2904_v22, %v1591_v7 }
0x131f   :  { %v1559_v43 = vsel %vm1558_vm4, %v2902_v37, %v1555_v18 }
0x1320   :  { %v1564_v3 = vsel %vm1561_vm5, %v1563_v15, %v1559_v43  ;;  %v1596_v50 = vsel %vm1595_vm8, %v2904_v22, %v1592_v38 }
0x1321   :  { %v1601_v52 = vsel %vm1598_vm10, %v1600_v29, %v1596_v50  ;;  %v1567_v54 = vmul.f32 0.0, %v1564_v3 }
0x1322   :  { %v1604_v8 = vmul.f32 0.0, %v1601_v52 }
0x135f   :  { %v1570_v47 = vpop.permute.xlu1 %1569 }
0x1360   :  { %v1572_v24 = vmul.f32 %v1570_v47, %v1564_v3 }
0x1362   :  { %1574 = vrot.lane.b32.xlu0 %v1572_v24, %s3261_s3 }
0x1367   :  { %v1607_v51 = vpop.permute.xlu2 %1606 }
0x1368   :  { %v1609_v53 = vmul.f32 %v1607_v51, %v1601_v52 }
0x136a   :  { %1611 = vrot.lane.b32.xlu1 %v1609_v53, %s3261_s3 }
0x13d4   :  { %v1575_v55 = vpop.permute.xlu0 %1574 }
0x13d5   :  { %v3833_v56 = vadd.f32 %v1575_v55, %v1567_v54 }
0x13d7   :  { %2905 = vtanh.f32 %v3833_v56  ;;  %v1701_v55 = vrot.slane %v3833_v56, 6 }
0x13dc   :  { %v1612_v57 = vpop.permute.xlu1 %1611 }
0x13dd   :  { %v2906_v58 = vpop.eup %2905  ;;  %v3836_v62 = vadd.f32 %v1612_v57, %v1604_v8 }
0x13de   :  { %1580 = vrot.lane.b32.xlu2 %v2906_v58, %s3260_s6 }
0x13df   :  { %2907 = vtanh.f32 %v3836_v62 }
0x13e5   :  { %v2908_v0 = vpop.eup %2907 }
0x13e6   :  { %1617 = vrot.lane.b32.xlu0 %v2908_v0, %s3260_s6 }
0x1438   :  { %v1581_v2 = vpop.permute.xlu2 %1580 }
0x1439   :  { %v1583_v17 = vmul.f32 %v1581_v2, %v1564_v3  ;;  %v1741_v2 = vrot.slane %v3836_v62, 2 }
0x143b   :  { %1622 = vrot.lane.b32.xlu1 %v1583_v17, %s3261_s3 }
0x1458   :  { %v1618_v6 = vpop.permute.xlu0 %1617 }
0x1459   :  { %v1620_v10 = vmul.f32 %v1618_v6, %v1601_v52 }
0x145b   :  { %v1651_v16 = vrot.slane %v1620_v10, 6 }
0x145d   :  { %1652 = vrot.lane.b32.xlu2 %v1651_v16, %s3261_s3 }
0x14ad   :  { %v1623_v19 = vpop.permute.xlu1 %1622 }
0x14ae   :  { %2716 = vmatmul.msk.f32.vlgmr.msra.gmra.mxu2 %vm186_vm0, %v1623_v19 }
0x14af   :  { %2055 = vmatpush.msra.mxu2 %v3724_v11 }
0x14b1   :  { %2056 = vmatpush.msra.mxu2 %v3726_v25 }
0x14b3   :  { %2057 = vmatpush.msra.mxu2 %v3744_v21 }
0x14b5   :  { %2058 = vmatpush.msra.mxu2 %v3749_v42 }
0x14b7   :  { %v1653_v20 = vpop.permute.xlu2 %1652 }
0x14b8   :  { %2717 = vmatmul.msk.f32.vlgmr.msra.gmra.mxu3 %vm186_vm0, %v1653_v20 }
0x14b9   :  { %2081 = vmatpush.msra.mxu3 %v3761_v59 }
0x14bb   :  { %2082 = vmatpush.msra.mxu3 %v3763_v60 }
0x14bd   :  { %2083 = vmatpush.msra.mxu3 %v3768_v61 }
0x14bf   :  { %2084 = vmatpush.msra.mxu3 %v3785_v63 }
0x1531   :  { %v1643_v32 = vpop.f32.mrf.mxu2 }
0x1532   :  { %v1647_v36 = vrot.slane %v1643_v32, 6 }
0x1534   :  { %v1649_v39 = vadd.f32 %v1647_v36, %v3821_v26 }
0x1536   :  { %2909 = vtanh.f32 %v1649_v39  ;;  %v2718_v12 = vmul.f32 -1.442695, %v1649_v39 }
0x153b   :  { %v1673_v23 = vpop.f32.mrf.mxu3 }
0x153c   :  { %v2910_v41 = vpop.eup %2909  ;;  %v1677_v44 = vrot.slane %v1673_v23, 4 }
0x153d   :  { %1705 = vrot.lane.b32.xlu0 %v2910_v41, %s3260_s6 }
0x153e   :  { %v1679_v45 = vadd.f32 %v1677_v44, %v3827_v33 }
0x1540   :  { %2911 = vtanh.f32 %v1679_v45  ;;  %v2719_v5 = vmul.f32 -1.442695, %v1679_v45 }
0x1541   :  { %2913 = vpow2.f32 %v2718_v12 }
0x1542   :  { %2915 = vpow2.f32 %v2719_v5 }
0x1546   :  { %v2912_v28 = vpop.eup %2911 }
0x1547   :  { %1745 = vrot.lane.b32.xlu1 %v2912_v28, %s3260_s6  ;;  %v2914_v1 = vpop.eup %2913 }
0x1548   :  { %v1683_v30 = vadd.f32 1.0, %v2914_v1  ;;  %v2916_v13 = vpop.eup %2915 }
0x1549   :  { %v1723_v35 = vadd.f32 1.0, %v2916_v13 }
0x154a   :  { %2917 = vrcp.f32 %v1683_v30  ;;  %v1695_v46 = vand.u32 2147483648, %v1683_v30  ;;  %vm1689_vm12 = vweird.f32 %v1683_v30  ;;  %v1693_v27 = vand.u32 2147483647, %v1683_v30 }
0x154b   :  { %2919 = vrcp.f32 %v1723_v35  ;;  %v1735_v49 = vand.u32 2147483648, %v1723_v35  ;;  %vm1729_vm1 = vweird.f32 %v1723_v35  ;;  %v1733_v50 = vand.u32 2147483647, %v1723_v35 }
0x154c   :  { %v1696_v15 = vor.u32 1.1754944e-38, %v1695_v46  ;;  %vm1694_vm14 = vcmp.eq.f32.partialorder %v1693_v27, 8.507059e+37 }
0x154d   :  { %v1736_v51 = vor.u32 1.1754944e-38, %v1735_v49  ;;  %vm1734_vm2 = vcmp.eq.f32.partialorder %v1733_v50, 8.507059e+37 }
0x1550   :  { %v2918_v37 = vpop.eup %2917 }
0x1551   :  { %v1685_v40 = vmul.f32 %v2918_v37, %v1683_v30  ;;  %v2920_v34 = vpop.eup %2919  ;;  %vm1690_vm11 = vweird.f32 %v2918_v37 }
0x1552   :  { %v1725_v18 = vmul.f32 %v2920_v34, %v1723_v35  ;;  %vm1691_vm13 = vmor %vm1689_vm12, %vm1690_vm11  ;;  %vm1730_vm15 = vweird.f32 %v2920_v34 }
0x1553   :  { %v1686_v22 = vsub.f32 1.0, %v1685_v40  ;;  %vm1731_vm9 = vmor %vm1729_vm1, %vm1730_vm15 }
0x1554   :  { %v1726_v43 = vsub.f32 1.0, %v1725_v18 }
0x1555   :  { %v1687_v4 = vmul.f32 %v2918_v37, %v1686_v22 }
0x1556   :  { %v1727_v47 = vmul.f32 %v2920_v34, %v1726_v43 }
0x1557   :  { %v1688_v14 = vadd.f32 %v2918_v37, %v1687_v4 }
0x1558   :  { %v1728_v48 = vadd.f32 %v2920_v34, %v1727_v47 }
0x1559   :  { %v1692_v7 = vsel %vm1691_vm13, %v2918_v37, %v1688_v14 }
0x155a   :  { %v1697_v3 = vsel %vm1694_vm14, %v1696_v15, %v1692_v7  ;;  %v1732_v29 = vsel %vm1731_vm9, %v2920_v34, %v1728_v48 }
0x155b   :  { %v1737_v53 = vsel %vm1734_vm2, %v1736_v51, %v1732_v29  ;;  %v1703_v8 = vmul.f32 %v1701_v55, %v1697_v3 }
0x155c   :  { %v1743_v17 = vmul.f32 %v1741_v2, %v1737_v53 }
0x15af   :  { %v1706_v24 = vpop.permute.xlu0 %1705 }
0x15b0   :  { %v1708_v38 = vmul.f32 %v1706_v24, %v1697_v3 }
0x15b2   :  { %1710 = vrot.lane.b32.xlu2 %v1708_v38, %s3261_s3 }
0x15b9   :  { %v1746_v52 = vpop.permute.xlu1 %1745 }
0x15ba   :  { %v1748_v54 = vmul.f32 %v1746_v52, %v1737_v53 }
0x15bc   :  { %1750 = vrot.lane.b32.xlu0 %v1748_v54, %s3261_s3 }
0x160c   :  { %v1711_v57 = vpop.permute.xlu2 %1710 }
0x160d   :  { %v3860_v58 = vadd.f32 %v1711_v57, %v1703_v8 }
0x160f   :  { %2921 = vtanh.f32 %v3860_v58  ;;  %v1841_v2 = vrot.slane %v3860_v58, 6 }
0x1615   :  { %v2922_v0 = vpop.eup %2921 }
0x1616   :  { %1716 = vrot.lane.b32.xlu1 %v2922_v0, %s3260_s6 }
0x162e   :  { %v1751_v6 = vpop.permute.xlu0 %1750 }
0x162f   :  { %v3865_v10 = vadd.f32 %v1751_v6, %v1743_v17 }
0x1631   :  { %2923 = vtanh.f32 %v3865_v10 }
0x1637   :  { %v2924_v16 = vpop.eup %2923 }
0x1638   :  { %1756 = vrot.lane.b32.xlu2 %v2924_v16, %s3260_s6 }
0x1688   :  { %v1717_v56 = vpop.permute.xlu1 %1716 }
0x1689   :  { %v1719_v19 = vmul.f32 %v1717_v56, %v1697_v3  ;;  %v1881_v56 = vrot.slane %v3865_v10, 2 }
0x168b   :  { %v1761_v20 = vrot.slane %v1719_v19, 2 }
0x168d   :  { %1762 = vrot.lane.b32.xlu0 %v1761_v20, %s3261_s3 }
0x1692   :  { %v1757_v32 = vpop.permute.xlu2 %1756 }
0x1693   :  { %v1759_v36 = vmul.f32 %v1757_v32, %v1737_v53 }
0x1695   :  { %v1791_v39 = vrot.slane %v1759_v36, 4 }
0x1697   :  { %1792 = vrot.lane.b32.xlu1 %v1791_v39, %s3261_s3 }
0x16ff   :  { %v1763_v62 = vpop.permute.xlu0 %1762 }
0x1700   :  { %2720 = vmatmul.msk.f32.vlgmr.msrb.gmra.mxu2 %vm186_vm0, %v1763_v62 }
0x1701   :  { %2330 = vmatpush.msrb.mxu2 %v3724_v11 }
0x1703   :  { %2331 = vmatpush.msrb.mxu2 %v3726_v25 }
0x1705   :  { %2332 = vmatpush.msrb.mxu2 %v3744_v21 }
0x1707   :  { %2333 = vmatpush.msrb.mxu2 %v3749_v42 }
0x1709   :  { %v1793_v23 = vpop.permute.xlu1 %1792 }
0x170a   :  { %2721 = vmatmul.msk.f32.vlgmr.msrb.gmra.mxu3 %vm186_vm0, %v1793_v23 }
0x170b   :  { %2360 = vmatpush.msrb.mxu3 %v3761_v59 }
0x170d   :  { %2361 = vmatpush.msrb.mxu3 %v3763_v60 }
0x170f   :  { %2362 = vmatpush.msrb.mxu3 %v3768_v61 }
0x1711   :  { %2363 = vmatpush.msrb.mxu3 %v3785_v63 }
0x1783   :  { %v1783_v41 = vpop.f32.mrf.mxu2 }
0x1784   :  { %v1787_v44 = vrot.slane %v1783_v41, 4 }
0x1786   :  { %v1789_v45 = vadd.f32 %v1787_v44, %v3821_v26 }
0x1788   :  { %2925 = vtanh.f32 %v1789_v45  ;;  %v2722_v13 = vmul.f32 -1.442695, %v1789_v45 }
0x178d   :  { %v1813_v28 = vpop.f32.mrf.mxu3 }
0x178e   :  { %v2926_v12 = vpop.eup %2925  ;;  %v1817_v1 = vrot.slane %v1813_v28, 6 }
0x178f   :  { %1845 = vrot.lane.b32.xlu2 %v2926_v12, %s3260_s6  ;;  %v3909_v12 = vpop.f32.mrf.mxu0 }
0x1790   :  { %v1819_v5 = vadd.f32 %v1817_v1, %v3827_v33 }
0x1792   :  { %2927 = vtanh.f32 %v1819_v5  ;;  %v2723_v4 = vmul.f32 -1.442695, %v1819_v5 }
0x1793   :  { %2929 = vpow2.f32 %v2722_v13 }
0x1798   :  { %v2928_v30 = vpop.eup %2927 }
0x1799   :  { %1885 = vrot.lane.b32.xlu0 %v2928_v30, %s3260_s6  ;;  %v2930_v37 = vpop.eup %2929 }
0x179a   :  { %v1823_v35 = vadd.f32 1.0, %v2930_v37 }
0x179c   :  { %2931 = vrcp.f32 %v1823_v35  ;;  %v1835_v46 = vand.u32 2147483648, %v1823_v35  ;;  %vm1829_vm4 = vweird.f32 %v1823_v35  ;;  %v1833_v27 = vand.u32 2147483647, %v1823_v35 }
0x179d   :  { %2933 = vpow2.f32 %v2723_v4 }
0x179e   :  { %v1836_v7 = vor.u32 1.1754944e-38, %v1835_v46  ;;  %vm1834_vm6 = vcmp.eq.f32.partialorder %v1833_v27, 8.507059e+37 }
0x17a2   :  { %v2932_v40 = vpop.eup %2931 }
0x17a3   :  { %v1825_v22 = vmul.f32 %v2932_v40, %v1823_v35  ;;  %vm1830_vm3 = vweird.f32 %v2932_v40  ;;  %v2934_v15 = vpop.eup %2933 }
0x17a4   :  { %vm1831_vm5 = vmor %vm1829_vm4, %vm1830_vm3  ;;  %v1863_v38 = vadd.f32 1.0, %v2934_v15 }
0x17a5   :  { %v1826_v34 = vsub.f32 1.0, %v1825_v22 }
0x17a6   :  { %2935 = vrcp.f32 %v1863_v38  ;;  %v1875_v52 = vand.u32 2147483648, %v1863_v38  ;;  %vm1869_vm8 = vweird.f32 %v1863_v38  ;;  %v1873_v53 = vand.u32 2147483647, %v1863_v38 }
0x17a7   :  { %v1827_v18 = vmul.f32 %v2932_v40, %v1826_v34 }
0x17a8   :  { %v1876_v55 = vor.u32 1.1754944e-38, %v1875_v52  ;;  %vm1874_vm11 = vcmp.eq.f32.partialorder %v1873_v53, 8.507059e+37 }
0x17a9   :  { %v1828_v14 = vadd.f32 %v2932_v40, %v1827_v18 }
0x17ab   :  { %v1832_v43 = vsel %vm1831_vm5, %v2932_v40, %v1828_v14 }
0x17ac   :  { %v1837_v3 = vsel %vm1834_vm6, %v1836_v7, %v1832_v43  ;;  %v2936_v48 = vpop.eup %2935 }
0x17ad   :  { %v1865_v49 = vmul.f32 %v2936_v48, %v1863_v38  ;;  %vm1870_vm7 = vweird.f32 %v2936_v48  ;;  %v1843_v17 = vmul.f32 %v1841_v2, %v1837_v3 }
0x17ae   :  { %vm1871_vm10 = vmor %vm1869_vm8, %vm1870_vm7 }
0x17af   :  { %v1866_v50 = vsub.f32 1.0, %v1865_v49 }
0x17b1   :  { %v1867_v29 = vmul.f32 %v2936_v48, %v1866_v50 }
0x17b3   :  { %v1868_v51 = vadd.f32 %v2936_v48, %v1867_v29 }
0x17b5   :  { %v1872_v54 = vsel %vm1871_vm10, %v2936_v48, %v1868_v51 }
0x17b6   :  { %v1877_v8 = vsel %vm1874_vm11, %v1876_v55, %v1872_v54 }
0x17b7   :  { %v1883_v20 = vmul.f32 %v1881_v56, %v1877_v8 }
0x17e9   :  { %v1846_v47 = vpop.permute.xlu2 %1845 }
0x17ea   :  { %v1848_v24 = vmul.f32 %v1846_v47, %v1837_v3 }
0x17ec   :  { %1850 = vrot.lane.b32.xlu1 %v1848_v24, %s3261_s3 }
0x180b   :  { %v1886_v57 = vpop.permute.xlu0 %1885 }
0x180c   :  { %v1888_v0 = vmul.f32 %v1886_v57, %v1877_v8 }
0x180e   :  { %1890 = vrot.lane.b32.xlu2 %v1888_v0, %s3261_s3 }
0x185e   :  { %v1851_v6 = vpop.permute.xlu1 %1850 }
0x185f   :  { %v3888_v16 = vadd.f32 %v1851_v6, %v1843_v17 }
0x1861   :  { %2937 = vtanh.f32 %v3888_v16  ;;  %v1978_v53 = vrot.slane %v3888_v16, 6 }
0x1867   :  { %v2938_v19 = vpop.eup %2937 }
0x1868   :  { %1856 = vrot.lane.b32.xlu0 %v2938_v19, %s3260_s6  ;;  %v1891_v32 = vpop.permute.xlu2 %1890 }
0x1869   :  { %v3893_v36 = vadd.f32 %v1891_v32, %v1883_v20 }
0x186b   :  { %2939 = vtanh.f32 %v3893_v36  ;;  %v2018_v57 = vrot.slane %v3893_v36, 2 }
0x1871   :  { %v2940_v39 = vpop.eup %2939 }
0x1872   :  { %1896 = vrot.lane.b32.xlu1 %v2940_v39, %s3260_s6 }
0x18da   :  { %v1857_v58 = vpop.permute.xlu0 %1856 }
0x18db   :  { %v1859_v62 = vmul.f32 %v1857_v58, %v1837_v3 }
0x18dd   :  { %v1901_v23 = vrot.slane %v1859_v62, 4  ;;  %v3933_v62 = vadd.f32 %v3815_v9, %v3909_v12 }
0x18df   :  { %1902 = vrot.lane.b32.xlu2 %v1901_v23, %s3261_s3 }
0x18e4   :  { %v1897_v41 = vpop.permute.xlu1 %1896 }
0x18e5   :  { %v1899_v44 = vmul.f32 %v1897_v41, %v1877_v8 }
0x18e7   :  { %v1931_v10 = vrot.slane %v1899_v44, 2 }
0x18e9   :  { %1932 = vrot.lane.b32.xlu0 %v1931_v10, %s3261_s3 }
0x1939   :  { %v1903_v45 = vpop.permute.xlu2 %1902 }
0x193a   :  { %2724 = vmatmul.msk.f32.vlgmr.msrb.gmra.mxu0 %vm186_vm0, %v1903_v45 }
0x193b   :  { %2470 = vmatpush.msrb.mxu0 %v3724_v11 }
0x193d   :  { %2471 = vmatpush.msrb.mxu0 %v3726_v25 }
0x193f   :  { %2472 = vmatpush.msrb.mxu0 %v3744_v21 }
0x1941   :  { %2473 = vmatpush.msrb.mxu0 %v3749_v42 }
0x195b   :  { %v1933_v28 = vpop.permute.xlu0 %1932 }
0x195c   :  { %2725 = vmatmul.msk.f32.vlgmr.msrb.gmra.mxu1 %vm186_vm0, %v1933_v28 }
0x195d   :  { %2500 = vmatpush.msrb.mxu1 %v3761_v59 }
0x195f   :  { %2501 = vmatpush.msrb.mxu1 %v3763_v60 }
0x1961   :  { %2502 = vmatpush.msrb.mxu1 %v3768_v61 }
0x1963   :  { %2503 = vmatpush.msrb.mxu1 %v3785_v63 }
0x19b7   :  { %v1923_v11 = vpop.f32.mrf.mxu0 }
0x19b8   :  { %v1927_v1 = vrot.slane %v1923_v11, 2 }
0x19ba   :  { %v1929_v25 = vadd.f32 %v1927_v1, %v3821_v26 }
0x19bc   :  { %2941 = vtanh.f32 %v1929_v25  ;;  %v2726_v60 = vmul.f32 -1.442695, %v1929_v25 }
0x19c2   :  { %v2942_v21 = vpop.eup %2941 }
0x19c3   :  { %1982 = vrot.lane.b32.xlu1 %v2942_v21, %s3260_s6 }
0x19d9   :  { %v1953_v42 = vpop.f32.mrf.mxu1 }
0x19da   :  { %v1956_v5 = vadd.f32 %v1953_v42, %v3827_v33 }
0x19dc   :  { %2943 = vtanh.f32 %v1956_v5  ;;  %v2727_v61 = vmul.f32 -1.442695, %v1956_v5 }
0x19dd   :  { %2945 = vpow2.f32 %v2726_v60 }
0x19de   :  { %2947 = vpow2.f32 %v2727_v61 }
0x19e2   :  { %v2944_v59 = vpop.eup %2943 }
0x19e3   :  { %2022 = vrot.lane.b32.xlu2 %v2944_v59, %s3260_s6  ;;  %v2946_v63 = vpop.eup %2945 }
0x19e4   :  { %v1960_v30 = vadd.f32 1.0, %v2946_v63  ;;  %v2948_v13 = vpop.eup %2947 }
0x19e5   :  { %v2000_v26 = vadd.f32 1.0, %v2948_v13 }
0x19e6   :  { %2949 = vrcp.f32 %v1960_v30  ;;  %v1972_v14 = vand.u32 2147483648, %v1960_v30  ;;  %vm1966_vm13 = vweird.f32 %v1960_v30  ;;  %v1970_v46 = vand.u32 2147483647, %v1960_v30 }
0x19e7   :  { %2951 = vrcp.f32 %v2000_v26  ;;  %v2012_v38 = vand.u32 2147483648, %v2000_v26  ;;  %vm2006_vm9 = vweird.f32 %v2000_v26  ;;  %v2010_v48 = vand.u32 2147483647, %v2000_v26 }
0x19e8   :  { %v1973_v7 = vor.u32 1.1754944e-38, %v1972_v14  ;;  %vm1971_vm15 = vcmp.eq.f32.partialorder %v1970_v46, 8.507059e+37 }
0x19e9   :  { %v2013_v50 = vor.u32 1.1754944e-38, %v2012_v38  ;;  %vm2011_vm3 = vcmp.eq.f32.partialorder %v2010_v48, 8.507059e+37 }
0x19ec   :  { %v2950_v37 = vpop.eup %2949 }
0x19ed   :  { %v1962_v35 = vmul.f32 %v2950_v37, %v1960_v30  ;;  %v2952_v22 = vpop.eup %2951  ;;  %vm1967_vm12 = vweird.f32 %v2950_v37 }
0x19ee   :  { %v2002_v33 = vmul.f32 %v2952_v22, %v2000_v26  ;;  %vm1968_vm14 = vmor %vm1966_vm13, %vm1967_vm12  ;;  %vm2007_vm1 = vweird.f32 %v2952_v22 }
0x19ef   :  { %v1963_v40 = vsub.f32 1.0, %v1962_v35  ;;  %vm2008_vm2 = vmor %vm2006_vm9, %vm2007_vm1 }
0x19f0   :  { %v2003_v18 = vsub.f32 1.0, %v2002_v33 }
0x19f1   :  { %v1964_v34 = vmul.f32 %v2950_v37, %v1963_v40 }
0x19f2   :  { %v2004_v43 = vmul.f32 %v2952_v22, %v2003_v18 }
0x19f3   :  { %v1965_v4 = vadd.f32 %v2950_v37, %v1964_v34 }
0x19f4   :  { %v2005_v24 = vadd.f32 %v2952_v22, %v2004_v43 }
0x19f5   :  { %v1969_v27 = vsel %vm1968_vm14, %v2950_v37, %v1965_v4 }
0x19f6   :  { %v1974_v47 = vsel %vm1971_vm15, %v1973_v7, %v1969_v27  ;;  %v2009_v49 = vsel %vm2008_vm2, %v2952_v22, %v2005_v24 }
0x19f7   :  { %v2014_v51 = vsel %vm2011_vm3, %v2013_v50, %v2009_v49  ;;  %v1980_v54 = vmul.f32 %v1978_v53, %v1974_v47 }
0x19f8   :  { %v2020_v0 = vmul.f32 %v2018_v57, %v2014_v51 }
0x1a35   :  { %v1983_v15 = vpop.permute.xlu1 %1982 }
0x1a36   :  { %v1985_v3 = vmul.f32 %v1983_v15, %v1974_v47 }
0x1a38   :  { %1987 = vrot.lane.b32.xlu0 %v1985_v3, %s3261_s3 }
0x1a3d   :  { %v2023_v29 = vpop.permute.xlu2 %2022 }
0x1a3e   :  { %v2025_v52 = vmul.f32 %v2023_v29, %v2014_v51 }
0x1a40   :  { %2027 = vrot.lane.b32.xlu1 %v2025_v52, %s3261_s3 }
0x1aaa   :  { %v1988_v55 = vpop.permute.xlu0 %1987 }
0x1aab   :  { %v3918_v8 = vadd.f32 %v1988_v55, %v1980_v54 }
0x1aad   :  { %2953 = vtanh.f32 %v3918_v8  ;;  %v2114_v24 = vrot.slane %v3918_v8, 6 }
0x1ab2   :  { %v2028_v2 = vpop.permute.xlu1 %2027 }
0x1ab3   :  { %v2954_v17 = vpop.eup %2953  ;;  %v3922_v6 = vadd.f32 %v2028_v2, %v2020_v0 }
0x1ab4   :  { %1993 = vrot.lane.b32.xlu2 %v2954_v17, %s3260_s6 }
0x1ab5   :  { %2955 = vtanh.f32 %v3922_v6  ;;  %v2154_v29 = vrot.slane %v3922_v6, 2 }
0x1abb   :  { %v2956_v56 = vpop.eup %2955 }
0x1abc   :  { %2033 = vrot.lane.b32.xlu0 %v2956_v56, %s3260_s6 }
0x1b0e   :  { %v1994_v16 = vpop.permute.xlu2 %1993 }
0x1b0f   :  { %v1996_v19 = vmul.f32 %v1994_v16, %v1974_v47 }
0x1b11   :  { %v2038_v20 = vrot.slane %v1996_v19, 6 }
0x1b13   :  { %2039 = vrot.lane.b32.xlu1 %v2038_v20, %s3261_s3 }
0x1b2e   :  { %v2034_v32 = vpop.permute.xlu0 %2033 }
0x1b2f   :  { %v2036_v39 = vmul.f32 %v2034_v32, %v2014_v51 }
0x1b31   :  { %2065 = vrot.lane.b32.xlu2 %v2036_v39, %s3261_s3 }
0x1b85   :  { %v2040_v36 = vpop.permute.xlu1 %2039 }
0x1b86   :  { %2728 = vmatmul.msk.f32.vlgmr.msra.gmra.mxu2 %vm186_vm0, %v2040_v36 }
0x1b8b   :  { %v2066_v58 = vpop.permute.xlu2 %2065 }
0x1b8c   :  { %2729 = vmatmul.msk.f32.vlgmr.msra.gmra.mxu3 %vm186_vm0, %v2066_v58 }
0x1c09   :  { %v2060_v23 = vpop.f32.mrf.mxu2 }
0x1c0a   :  { %v2063_v41 = vadd.f32 %v2060_v23, %v3933_v62 }
0x1c0c   :  { %2957 = vtanh.f32 %v2063_v41  ;;  %v2730_v1 = vmul.f32 -1.442695, %v2063_v41 }
0x1c0f   :  { %v2086_v44 = vpop.f32.mrf.mxu3 }
0x1c10   :  { %v2090_v10 = vrot.slane %v2086_v44, 2 }
0x1c12   :  { %v2958_v45 = vpop.eup %2957  ;;  %v2092_v28 = vadd.f32 %v2090_v10, %v3823_v31 }
0x1c13   :  { %2118 = vrot.lane.b32.xlu0 %v2958_v45, %s3260_s6 }
0x1c14   :  { %2959 = vtanh.f32 %v2092_v28  ;;  %v2731_v25 = vmul.f32 -1.442695, %v2092_v28 }
0x1c15   :  { %2961 = vpow2.f32 %v2730_v1 }
0x1c16   :  { %2963 = vpow2.f32 %v2731_v25 }
0x1c1a   :  { %v2960_v11 = vpop.eup %2959 }
0x1c1b   :  { %2158 = vrot.lane.b32.xlu1 %v2960_v11, %s3260_s6  ;;  %v2962_v9 = vpop.eup %2961 }
0x1c1c   :  { %v2096_v12 = vadd.f32 1.0, %v2962_v9  ;;  %v2964_v21 = vpop.eup %2963 }
0x1c1d   :  { %v2136_v42 = vadd.f32 1.0, %v2964_v21 }
0x1c1e   :  { %2965 = vrcp.f32 %v2096_v12  ;;  %v2108_v37 = vand.u32 2147483648, %v2096_v12  ;;  %vm2102_vm5 = vweird.f32 %v2096_v12  ;;  %v2106_v35 = vand.u32 2147483647, %v2096_v12 }
0x1c1f   :  { %2967 = vrcp.f32 %v2136_v42  ;;  %v2148_v46 = vand.u32 2147483648, %v2136_v42  ;;  %vm2142_vm10 = vweird.f32 %v2136_v42  ;;  %v2146_v27 = vand.u32 2147483647, %v2136_v42 }
0x1c20   :  { %v2109_v34 = vor.u32 1.1754944e-38, %v2108_v37  ;;  %vm2107_vm7 = vcmp.eq.f32.partialorder %v2106_v35, 8.507059e+37 }
0x1c21   :  { %v2149_v7 = vor.u32 1.1754944e-38, %v2148_v46  ;;  %vm2147_vm12 = vcmp.eq.f32.partialorder %v2146_v27, 8.507059e+37 }
0x1c24   :  { %v2966_v5 = vpop.eup %2965 }
0x1c25   :  { %v2098_v59 = vmul.f32 %v2966_v5, %v2096_v12  ;;  %v2968_v61 = vpop.eup %2967  ;;  %vm2103_vm4 = vweird.f32 %v2966_v5 }
0x1c26   :  { %v2138_v30 = vmul.f32 %v2968_v61, %v2136_v42  ;;  %vm2104_vm6 = vmor %vm2102_vm5, %vm2103_vm4  ;;  %vm2143_vm8 = vweird.f32 %v2968_v61 }
0x1c27   :  { %v2099_v60 = vsub.f32 1.0, %v2098_v59  ;;  %vm2144_vm11 = vmor %vm2142_vm10, %vm2143_vm8 }
0x1c28   :  { %v2139_v26 = vsub.f32 1.0, %v2138_v30 }
0x1c29   :  { %v2100_v63 = vmul.f32 %v2966_v5, %v2099_v60 }
0x1c2a   :  { %v2140_v22 = vmul.f32 %v2968_v61, %v2139_v26 }
0x1c2b   :  { %v2101_v13 = vadd.f32 %v2966_v5, %v2100_v63 }
0x1c2c   :  { %v2141_v14 = vadd.f32 %v2968_v61, %v2140_v22 }
0x1c2d   :  { %v2105_v40 = vsel %vm2104_vm6, %v2966_v5, %v2101_v13 }
0x1c2e   :  { %v2110_v4 = vsel %vm2107_vm7, %v2109_v34, %v2105_v40  ;;  %v2145_v43 = vsel %vm2144_vm11, %v2968_v61, %v2141_v14 }
0x1c2f   :  { %v2150_v47 = vsel %vm2147_vm12, %v2149_v7, %v2145_v43  ;;  %v2116_v38 = vmul.f32 %v2114_v24, %v2110_v4 }
0x1c30   :  { %v2156_v51 = vmul.f32 %v2154_v29, %v2150_v47 }
0x1c85   :  { %v2119_v33 = vpop.permute.xlu0 %2118 }
0x1c86   :  { %v2121_v18 = vmul.f32 %v2119_v33, %v2110_v4 }
0x1c88   :  { %2123 = vrot.lane.b32.xlu2 %v2121_v18, %s3261_s3 }
0x1c8d   :  { %v2159_v15 = vpop.permute.xlu1 %2158 }
0x1c8e   :  { %v2161_v3 = vmul.f32 %v2159_v15, %v2150_v47 }
0x1c90   :  { %2163 = vrot.lane.b32.xlu0 %v2161_v3, %s3261_s3 }
0x1ce2   :  { %v2124_v48 = vpop.permute.xlu2 %2123 }
0x1ce3   :  { %v3942_v49 = vadd.f32 %v2124_v48, %v2116_v38 }
0x1ce5   :  { %2969 = vtanh.f32 %v3942_v49  ;;  %v2253_v46 = vrot.slane %v3942_v49, 6 }
0x1ceb   :  { %v2970_v50 = vpop.eup %2969 }
0x1cec   :  { %2129 = vrot.lane.b32.xlu1 %v2970_v50, %s3260_s6 }
0x1d02   :  { %v2164_v52 = vpop.permute.xlu0 %2163 }
0x1d03   :  { %v3947_v53 = vadd.f32 %v2164_v52, %v2156_v51 }
0x1d05   :  { %2971 = vtanh.f32 %v3947_v53  ;;  %v2293_v15 = vrot.slane %v3947_v53, 2 }
0x1d0b   :  { %v2972_v54 = vpop.eup %2971 }
0x1d0c   :  { %2169 = vrot.lane.b32.xlu2 %v2972_v54, %s3260_s6 }
0x1d5e   :  { %v2130_v55 = vpop.permute.xlu1 %2129 }
0x1d5f   :  { %v2132_v8 = vmul.f32 %v2130_v55, %v2110_v4 }
0x1d61   :  { %2174 = vrot.lane.b32.xlu0 %v2132_v8, %s3261_s3 }
0x1d66   :  { %v2170_v57 = vpop.permute.xlu2 %2169 }
0x1d67   :  { %v2172_v0 = vmul.f32 %v2170_v57, %v2150_v47 }
0x1d69   :  { %v2203_v2 = vrot.slane %v2172_v0, 6 }
0x1d6b   :  { %2204 = vrot.lane.b32.xlu1 %v2203_v2, %s3261_s3 }
0x1dd3   :  { %v2175_v17 = vpop.permute.xlu0 %2174 }
0x1dd4   :  { %2732 = vmatmul.msk.f32.vlgmr.msra.gmra.mxu0 %vm186_vm0, %v2175_v17 }
0x1ddd   :  { %v2205_v6 = vpop.permute.xlu1 %2204 }
0x1dde   :  { %2733 = vmatmul.msk.f32.vlgmr.msra.gmra.mxu1 %vm186_vm0, %v2205_v6 }
0x1e51   :  { %v2195_v56 = vpop.f32.mrf.mxu0 }
0x1e52   :  { %v2199_v16 = vrot.slane %v2195_v56, 6 }
0x1e54   :  { %v2201_v19 = vadd.f32 %v2199_v16, %v3933_v62 }
0x1e56   :  { %2973 = vtanh.f32 %v2201_v19  ;;  %v2734_v23 = vmul.f32 -1.442695, %v2201_v19 }
0x1e5b   :  { %v2225_v20 = vpop.f32.mrf.mxu1 }
0x1e5c   :  { %v2974_v32 = vpop.eup %2973  ;;  %v2229_v39 = vrot.slane %v2225_v20, 4 }
0x1e5d   :  { %2257 = vrot.lane.b32.xlu2 %v2974_v32, %s3260_s6 }
0x1e5e   :  { %v2231_v36 = vadd.f32 %v2229_v39, %v3823_v31 }
0x1e60   :  { %2975 = vtanh.f32 %v2231_v36  ;;  %v2735_v11 = vmul.f32 -1.442695, %v2231_v36 }
0x1e61   :  { %2977 = vpow2.f32 %v2734_v23 }
0x1e66   :  { %v2976_v58 = vpop.eup %2975 }
0x1e67   :  { %2297 = vrot.lane.b32.xlu0 %v2976_v58, %s3260_s6  ;;  %v2978_v41 = vpop.eup %2977 }
0x1e68   :  { %v2235_v44 = vadd.f32 1.0, %v2978_v41 }
0x1e6a   :  { %2979 = vrcp.f32 %v2235_v44  ;;  %v2247_v9 = vand.u32 2147483648, %v2235_v44  ;;  %vm2241_vm14 = vweird.f32 %v2235_v44  ;;  %v2245_v12 = vand.u32 2147483647, %v2235_v44 }
0x1e6b   :  { %2981 = vpow2.f32 %v2735_v11 }
0x1e6c   :  { %v2248_v42 = vor.u32 1.1754944e-38, %v2247_v9  ;;  %vm2246_vm1 = vcmp.eq.f32.partialorder %v2245_v12, 8.507059e+37 }
0x1e70   :  { %v2980_v10 = vpop.eup %2979 }
0x1e71   :  { %v2237_v45 = vmul.f32 %v2980_v10, %v2235_v44  ;;  %vm2242_vm13 = vweird.f32 %v2980_v10  ;;  %v2982_v5 = vpop.eup %2981 }
0x1e72   :  { %vm2243_vm15 = vmor %vm2241_vm14, %vm2242_vm13  ;;  %v2275_v63 = vadd.f32 1.0, %v2982_v5 }
0x1e73   :  { %v2238_v28 = vsub.f32 1.0, %v2237_v45 }
0x1e74   :  { %2983 = vrcp.f32 %v2275_v63  ;;  %v2287_v40 = vand.u32 2147483648, %v2275_v63  ;;  %vm2281_vm2 = vweird.f32 %v2275_v63  ;;  %v2285_v22 = vand.u32 2147483647, %v2275_v63 }
0x1e75   :  { %v2239_v1 = vmul.f32 %v2980_v10, %v2238_v28 }
0x1e76   :  { %v2288_v33 = vor.u32 1.1754944e-38, %v2287_v40  ;;  %vm2286_vm4 = vcmp.eq.f32.partialorder %v2285_v22, 8.507059e+37 }
0x1e77   :  { %v2240_v25 = vadd.f32 %v2980_v10, %v2239_v1 }
0x1e79   :  { %v2244_v21 = vsel %vm2243_vm15, %v2980_v10, %v2240_v25 }
0x1e7a   :  { %v2249_v60 = vsel %vm2246_vm1, %v2248_v42, %v2244_v21  ;;  %v2984_v30 = vpop.eup %2983 }
0x1e7b   :  { %v2277_v13 = vmul.f32 %v2984_v30, %v2275_v63  ;;  %vm2282_vm9 = vweird.f32 %v2984_v30  ;;  %v2255_v27 = vmul.f32 %v2253_v46, %v2249_v60 }
0x1e7c   :  { %vm2283_vm3 = vmor %vm2281_vm2, %vm2282_vm9 }
0x1e7d   :  { %v2278_v26 = vsub.f32 1.0, %v2277_v13 }
0x1e7f   :  { %v2279_v37 = vmul.f32 %v2984_v30, %v2278_v26 }
0x1e81   :  { %v2280_v35 = vadd.f32 %v2984_v30, %v2279_v37 }
0x1e83   :  { %v2284_v34 = vsel %vm2283_vm3, %v2984_v30, %v2280_v35 }
0x1e84   :  { %v2289_v18 = vsel %vm2286_vm4, %v2288_v33, %v2284_v34 }
0x1e85   :  { %v2295_v3 = vmul.f32 %v2293_v15, %v2289_v18 }
0x1eb7   :  { %v2258_v59 = vpop.permute.xlu2 %2257 }
0x1eb8   :  { %v2260_v61 = vmul.f32 %v2258_v59, %v2249_v60 }
0x1eba   :  { %2262 = vrot.lane.b32.xlu1 %v2260_v61, %s3261_s3 }
0x1ed9   :  { %v2298_v4 = vpop.permute.xlu0 %2297 }
0x1eda   :  { %v2300_v14 = vmul.f32 %v2298_v4, %v2289_v18 }
0x1edc   :  { %2302 = vrot.lane.b32.xlu2 %v2300_v14, %s3261_s3 }
0x1f2c   :  { %v2263_v43 = vpop.permute.xlu1 %2262 }
0x1f2d   :  { %v3962_v7 = vadd.f32 %v2263_v43, %v2255_v27 }
0x1f2f   :  { %2985 = vtanh.f32 %v3962_v7  ;;  %v2393_v22 = vrot.slane %v3962_v7, 6 }
0x1f35   :  { %v2986_v47 = vpop.eup %2985 }
0x1f36   :  { %v2303_v24 = vpop.permute.xlu2 %2302  ;;  %2268 = vrot.lane.b32.xlu0 %v2986_v47, %s3260_s6 }
0x1f37   :  { %v3967_v38 = vadd.f32 %v2303_v24, %v2295_v3 }
0x1f39   :  { %2987 = vtanh.f32 %v3967_v38 }
0x1f3f   :  { %v2988_v48 = vpop.eup %2987 }
0x1f40   :  { %2308 = vrot.lane.b32.xlu1 %v2988_v48, %s3260_s6 }
0x1fa8   :  { %v2269_v49 = vpop.permute.xlu0 %2268 }
0x1fa9   :  { %v2271_v50 = vmul.f32 %v2269_v49, %v2249_v60 }
0x1fab   :  { %v2313_v29 = vrot.slane %v2271_v50, 2 }
0x1fad   :  { %2314 = vrot.lane.b32.xlu2 %v2313_v29, %s3261_s3 }
0x1fb2   :  { %v2309_v51 = vpop.permute.xlu1 %2308 }
0x1fb3   :  { %v2311_v52 = vmul.f32 %v2309_v51, %v2289_v18  ;;  %v2433_v18 = vrot.slane %v3967_v38, 2 }
0x1fb5   :  { %v2343_v53 = vrot.slane %v2311_v52, 4 }
0x1fb7   :  { %2344 = vrot.lane.b32.xlu0 %v2343_v53, %s3261_s3 }
0x2007   :  { %v2315_v54 = vpop.permute.xlu2 %2314 }
0x2008   :  { %2736 = vmatmul.msk.f32.vlgmr.msrb.gmra.mxu2 %vm186_vm0, %v2315_v54 }
0x2029   :  { %v2345_v55 = vpop.permute.xlu0 %2344 }
0x202a   :  { %2737 = vmatmul.msk.f32.vlgmr.msrb.gmra.mxu3 %vm186_vm0, %v2345_v55 }
0x208b   :  { %v2335_v8 = vpop.f32.mrf.mxu2 }
0x208c   :  { %v2339_v57 = vrot.slane %v2335_v8, 4 }
0x208e   :  { %v2341_v0 = vadd.f32 %v2339_v57, %v3933_v62 }
0x2090   :  { %2989 = vtanh.f32 %v2341_v0  ;;  %v2738_v19 = vmul.f32 -1.442695, %v2341_v0 }
0x2096   :  { %v2990_v2 = vpop.eup %2989 }
0x2097   :  { %2397 = vrot.lane.b32.xlu1 %v2990_v2, %s3260_s6 }
0x20ad   :  { %v2365_v17 = vpop.f32.mrf.mxu3 }
0x20ae   :  { %v2369_v6 = vrot.slane %v2365_v17, 6 }
0x20b0   :  { %v2371_v56 = vadd.f32 %v2369_v6, %v3823_v31 }
0x20b2   :  { %2991 = vtanh.f32 %v2371_v56  ;;  %v2739_v32 = vmul.f32 -1.442695, %v2371_v56 }
0x20b3   :  { %2993 = vpow2.f32 %v2738_v19 }
0x20b4   :  { %2995 = vpow2.f32 %v2739_v32 }
0x20b8   :  { %v2992_v16 = vpop.eup %2991 }
0x20b9   :  { %2437 = vrot.lane.b32.xlu2 %v2992_v16, %s3260_s6  ;;  %v2994_v20 = vpop.eup %2993 }
0x20ba   :  { %v2375_v39 = vadd.f32 1.0, %v2994_v20  ;;  %v2996_v36 = vpop.eup %2995 }
0x20bb   :  { %v2415_v23 = vadd.f32 1.0, %v2996_v36 }
0x20bc   :  { %2997 = vrcp.f32 %v2375_v39  ;;  %v2387_v1 = vand.u32 2147483648, %v2375_v39  ;;  %vm2381_vm6 = vweird.f32 %v2375_v39  ;;  %v2385_v25 = vand.u32 2147483647, %v2375_v39 }
0x20bd   :  { %2999 = vrcp.f32 %v2415_v23  ;;  %v2427_v63 = vand.u32 2147483648, %v2415_v23  ;;  %vm2421_vm11 = vweird.f32 %v2415_v23  ;;  %v2425_v30 = vand.u32 2147483647, %v2415_v23 }
0x20be   :  { %v2388_v21 = vor.u32 1.1754944e-38, %v2387_v1  ;;  %vm2386_vm8 = vcmp.eq.f32.partialorder %v2385_v25, 8.507059e+37 }
0x20bf   :  { %v2428_v26 = vor.u32 1.1754944e-38, %v2427_v63  ;;  %vm2426_vm13 = vcmp.eq.f32.partialorder %v2425_v30, 8.507059e+37 }
0x20c2   :  { %v2998_v58 = vpop.eup %2997 }
0x20c3   :  { %v2377_v41 = vmul.f32 %v2998_v58, %v2375_v39  ;;  %v3000_v10 = vpop.eup %2999  ;;  %vm2382_vm5 = vweird.f32 %v2998_v58 }
0x20c4   :  { %v2417_v28 = vmul.f32 %v3000_v10, %v2415_v23  ;;  %vm2383_vm7 = vmor %vm2381_vm6, %vm2382_vm5  ;;  %vm2422_vm10 = vweird.f32 %v3000_v10  ;;  %vm2653_vm6 = vcmask 25600  }
0x20c5   :  { %v2378_v44 = vsub.f32 1.0, %v2377_v41  ;;  %vm2423_vm12 = vmor %vm2421_vm11, %vm2422_vm10 }
0x20c6   :  { %v2418_v9 = vsub.f32 1.0, %v2417_v28 }
0x20c7   :  { %v2379_v45 = vmul.f32 %v2998_v58, %v2378_v44 }
0x20c8   :  { %v2419_v42 = vmul.f32 %v3000_v10, %v2418_v9 }
0x20c9   :  { %v2380_v11 = vadd.f32 %v2998_v58, %v2379_v45 }
0x20ca   :  { %v2420_v61 = vadd.f32 %v3000_v10, %v2419_v42 }
0x20cb   :  { %v2384_v12 = vsel %vm2383_vm7, %v2998_v58, %v2380_v11 }
0x20cc   :  { %v2389_v5 = vsel %vm2386_vm8, %v2388_v21, %v2384_v12  ;;  %v2424_v13 = vsel %vm2423_vm12, %v3000_v10, %v2420_v61 }
0x20cd   :  { %v2429_v35 = vsel %vm2426_vm13, %v2428_v26, %v2424_v13  ;;  %v2395_v34 = vmul.f32 %v2393_v22, %v2389_v5 }
0x20ce   :  { %v2435_v46 = vmul.f32 %v2433_v18, %v2429_v35  ;;  %v2590_v18 = vld [vmem:[%s4052_s13 + $0x8] sm:$0xff] }
0x2109   :  { %v2398_v59 = vpop.permute.xlu1 %2397 }
0x210a   :  { %v2400_v60 = vmul.f32 %v2398_v59, %v2389_v5 }
0x210c   :  { %2402 = vrot.lane.b32.xlu0 %v2400_v60, %s3261_s3 }
0x2113   :  { %v2438_v37 = vpop.permute.xlu2 %2437 }
0x2114   :  { %v2440_v40 = vmul.f32 %v2438_v37, %v2429_v35 }
0x2116   :  { %2442 = vrot.lane.b32.xlu1 %v2440_v40, %s3261_s3 }
0x217e   :  { %v2403_v33 = vpop.permute.xlu0 %2402 }
0x217f   :  { %v3982_v4 = vadd.f32 %v2403_v33, %v2395_v34  ;;  %v2592_v34 = vld [vmem:[%s4052_s13 + $0x18] sm:$0xff]  ;;  %v2591_v33 = vld [vmem:[%s4052_s13 + $0x10] sm:$0xff] }
0x2180   :  { %2640 = vmatpush.msra.mxu3 %v2592_v34 }
0x2181   :  { %3001 = vtanh.f32 %v3982_v4  ;;  %v2530_v60 = vrot.slane %v3982_v4, 6  ;;  %v2596_v4 = vld [vmem:[%s4052_s13 + $0x38] sm:$0xff] }
0x2182   :  { %2614 = vmatpush.msra.mxu2 %v2596_v4  ;;  %2641 = vmatpush.msra.mxu3 %v2591_v33 }
0x2184   :  { %2642 = vmatpush.msra.mxu3 %v2590_v18 }
0x2187   :  { %v3002_v14 = vpop.eup %3001 }
0x2188   :  { %2408 = vrot.lane.b32.xlu2 %v3002_v14, %s3260_s6  ;;  %v2443_v27 = vpop.permute.xlu1 %2442  ;;  %v2589_v14 = vld [vmem:[%s4052_s13] sm:$0xff] }
0x2189   :  { %v3987_v43 = vadd.f32 %v2443_v27, %v2435_v46  ;;  %2643 = vmatpush.msra.mxu3 %v2589_v14 }
0x218b   :  { %3003 = vtanh.f32 %v3987_v43  ;;  %v2570_v26 = vrot.slane %v3987_v43, 2 }
0x2191   :  { %v3004_v15 = vpop.eup %3003 }
0x2192   :  { %2448 = vrot.lane.b32.xlu0 %v3004_v15, %s3260_s6 }
0x21e2   :  { %v2409_v7 = vpop.permute.xlu2 %2408 }
0x21e3   :  { %v2411_v47 = vmul.f32 %v2409_v7, %v2389_v5 }
0x21e5   :  { %v2453_v3 = vrot.slane %v2411_v47, 4  ;;  %v2595_v47 = vld [vmem:[%s4052_s13 + $0x30] sm:$0xff] }
0x21e6   :  { %2615 = vmatpush.msra.mxu2 %v2595_v47 }
0x21e7   :  { %2454 = vrot.lane.b32.xlu1 %v2453_v3, %s3261_s3  ;;  %v2594_v3 = vld [vmem:[%s4052_s13 + $0x28] sm:$0xff] }
0x21e8   :  { %2616 = vmatpush.msra.mxu2 %v2594_v3 }
0x2204   :  { %v2449_v24 = vpop.permute.xlu0 %2448 }
0x2205   :  { %v2451_v48 = vmul.f32 %v2449_v24, %v2429_v35  ;;  %v2593_v24 = vld [vmem:[%s4052_s13 + $0x20] sm:$0xff]  ;;  %s2662_s13 = sshll.u32 %s4054_s15, 4  ;;  %s2663_s13 = int_to_ptr.hbm [resolvable:$true] %s2662_s13 }
0x2206   :  { %2617 = vmatpush.msra.mxu2 %v2593_v24 }
0x2207   :  { %v2483_v38 = vrot.slane %v2451_v48, 2 }
0x2209   :  { %2484 = vrot.lane.b32.xlu2 %v2483_v38, %s3261_s3 }
0x2259   :  { %v2455_v49 = vpop.permute.xlu1 %2454 }
0x225a   :  { %2740 = vmatmul.msk.f32.vlgmr.msrb.gmra.mxu0 %vm186_vm0, %v2455_v49  ;;  %v2764_v49 = vld [vmem:[%s4053_s14] ss:$0 sm:$0xff] }
0x2263   :  { %v2485_v50 = vpop.permute.xlu2 %2484 }
0x2264   :  { %2741 = vmatmul.msk.f32.vlgmr.msrb.gmra.mxu1 %vm186_vm0, %v2485_v50 }
0x22d7   :  { %v2475_v29 = vpop.f32.mrf.mxu0 }
0x22d8   :  { %v2479_v51 = vrot.slane %v2475_v29, 2 }
0x22da   :  { %v2481_v52 = vadd.f32 %v2479_v51, %v3933_v62 }
0x22dc   :  { %3005 = vtanh.f32 %v2481_v52  ;;  %v2742_v57 = vmul.f32 -1.442695, %v2481_v52 }
0x22e1   :  { %v2505_v53 = vpop.f32.mrf.mxu1 }
0x22e2   :  { %v3006_v54 = vpop.eup %3005  ;;  %v2508_v55 = vadd.f32 %v2505_v53, %v3823_v31 }
0x22e3   :  { %2534 = vrot.lane.b32.xlu0 %v3006_v54, %s3260_s6 }
0x22e4   :  { %3007 = vtanh.f32 %v2508_v55  ;;  %v2743_v0 = vmul.f32 -1.442695, %v2508_v55 }
0x22e5   :  { %3009 = vpow2.f32 %v2742_v57 }
0x22e6   :  { %3011 = vpow2.f32 %v2743_v0 }
0x22ea   :  { %v3008_v8 = vpop.eup %3007 }
0x22eb   :  { %2574 = vrot.lane.b32.xlu1 %v3008_v8, %s3260_s6  ;;  %v3010_v2 = vpop.eup %3009 }
0x22ec   :  { %v2512_v17 = vadd.f32 1.0, %v3010_v2  ;;  %v3012_v6 = vpop.eup %3011 }
0x22ed   :  { %v2552_v62 = vadd.f32 1.0, %v3012_v6 }
0x22ee   :  { %3013 = vrcp.f32 %v2512_v17  ;;  %v2524_v58 = vand.u32 2147483648, %v2512_v17  ;;  %vm2518_vm15 = vweird.f32 %v2512_v17  ;;  %v2522_v23 = vand.u32 2147483647, %v2512_v17 }
0x22ef   :  { %3015 = vrcp.f32 %v2552_v62  ;;  %v2564_v25 = vand.u32 2147483648, %v2552_v62  ;;  %vm2558_vm3 = vweird.f32 %v2552_v62  ;;  %v2562_v9 = vand.u32 2147483647, %v2552_v62 }
0x22f0   :  { %v2525_v10 = vor.u32 1.1754944e-38, %v2524_v58  ;;  %vm2523_vm9 = vcmp.eq.f32.partialorder %v2522_v23, 8.507059e+37 }
0x22f1   :  { %v2565_v21 = vor.u32 1.1754944e-38, %v2564_v25  ;;  %vm2563_vm5 = vcmp.eq.f32.partialorder %v2562_v9, 8.507059e+37 }
0x22f4   :  { %v3014_v56 = vpop.eup %3013 }
0x22f5   :  { %v2514_v16 = vmul.f32 %v3014_v56, %v2512_v17  ;;  %v3016_v31 = vpop.eup %3015  ;;  %vm2519_vm14 = vweird.f32 %v3014_v56 }
0x22f6   :  { %v2554_v32 = vmul.f32 %v3016_v31, %v2552_v62  ;;  %vm2520_vm1 = vmor %vm2518_vm15, %vm2519_vm14  ;;  %vm2559_vm2 = vweird.f32 %v3016_v31 }
0x22f7   :  { %v2515_v19 = vsub.f32 1.0, %v2514_v16  ;;  %vm2560_vm4 = vmor %vm2558_vm3, %vm2559_vm2 }
0x22f8   :  { %v2555_v36 = vsub.f32 1.0, %v2554_v32 }
0x22f9   :  { %v2516_v20 = vmul.f32 %v3014_v56, %v2515_v19 }
0x22fa   :  { %v2556_v44 = vmul.f32 %v3016_v31, %v2555_v36 }
0x22fb   :  { %v2517_v39 = vadd.f32 %v3014_v56, %v2516_v20 }
0x22fc   :  { %v2557_v1 = vadd.f32 %v3016_v31, %v2556_v44 }
0x22fd   :  { %v2521_v41 = vsel %vm2520_vm1, %v3014_v56, %v2517_v39 }
0x22fe   :  { %v2526_v28 = vsel %vm2523_vm9, %v2525_v10, %v2521_v41  ;;  %v2561_v12 = vsel %vm2560_vm4, %v3016_v31, %v2557_v1 }
0x22ff   :  { %v2566_v42 = vsel %vm2563_vm5, %v2565_v21, %v2561_v12  ;;  %v2532_v61 = vmul.f32 %v2530_v60, %v2526_v28 }
0x2300   :  { %v2572_v37 = vmul.f32 %v2570_v26, %v2566_v42 }
0x2355   :  { %v2535_v45 = vpop.permute.xlu0 %2534 }
0x2356   :  { %v2537_v11 = vmul.f32 %v2535_v45, %v2526_v28 }
0x2358   :  { %2539 = vrot.lane.b32.xlu2 %v2537_v11, %s3261_s3 }
0x235d   :  { %v2575_v5 = vpop.permute.xlu1 %2574 }
0x235e   :  { %v2577_v59 = vmul.f32 %v2575_v5, %v2566_v42 }
0x2360   :  { %2579 = vrot.lane.b32.xlu0 %v2577_v59, %s3261_s3 }
0x23b2   :  { %v2540_v63 = vpop.permute.xlu2 %2539 }
0x23b3   :  { %v2542_v30 = vadd.f32 %v2540_v63, %v2532_v61 }
0x23b5   :  { %3017 = vtanh.f32 %v2542_v30 }
0x23bb   :  { %v3018_v13 = vpop.eup %3017 }
0x23bc   :  { %2545 = vrot.lane.b32.xlu1 %v3018_v13, %s3260_s6 }
0x23d2   :  { %v2580_v35 = vpop.permute.xlu0 %2579 }
0x23d3   :  { %v2582_v40 = vadd.f32 %v2580_v35, %v2572_v37 }
0x23d5   :  { %3019 = vtanh.f32 %v2582_v40 }
0x23db   :  { %v3020_v22 = vpop.eup %3019 }
0x23dc   :  { %2585 = vrot.lane.b32.xlu2 %v3020_v22, %s3260_s6 }
0x242e   :  { %v2546_v46 = vpop.permute.xlu1 %2545 }
0x242f   :  { %v2548_v27 = vmul.f32 %v2546_v46, %v2526_v28 }
0x2431   :  { %v2623_v43 = vrot.slane %v2548_v27, 6 }
0x2433   :  { %2624 = vrot.lane.b32.xlu1 %v2623_v43, %s3261_s3 }
0x2436   :  { %v2586_v15 = vpop.permute.xlu2 %2585 }
0x2437   :  { %v2588_v7 = vmul.f32 %v2586_v15, %v2566_v42 }
0x2439   :  { %2598 = vrot.lane.b32.xlu0 %v2588_v7, %s3261_s3 }
0x24a5   :  { %v2625_v48 = vpop.permute.xlu1 %2624 }
0x24a6   :  { %2745 = vmatmul.msk.f32.vlgmr.msra.gmra.mxu3 %vm186_vm0, %v2625_v48 }
0x24ab   :  { %v2599_v38 = vpop.permute.xlu0 %2598 }
0x24ac   :  { %2744 = vmatmul.msk.f32.vlgmr.msra.gmra.mxu2 %vm186_vm0, %v2599_v38 }
0x2529   :  { %v2645_v50 = vpop.f32.mrf.mxu3 }
0x252f   :  { %v2619_v29 = vpop.f32.mrf.mxu2 }
0x2530   :  { %v2646_v51 = vadd.f32 %v2645_v50, %v2619_v29 }
0x2532   :  { %v2652_v52 = vadd.f32 %v2764_v49, %v2646_v51 }
0x2534   :  { %2654 = vst.msk [vmem:[#allocation17] sm:$0x3] %vm2653_vm6, %v2652_v52 }
0x2535   :  { %2665 = dma.vmem_to_hbm [thread:$0]  %s2661_s17, 32, %s2663_s13, [#allocation5]  }
0x2536   :  { %3247 = dma.done.wait [#allocation5], 32  }
0x2537   :  { %3248 = vsyncadd [#allocation5], 4294967264 }
0x2538   :  { %2670 = vsyncpa [#allocation4], 1 }
0x2539   :  { %2671 = vsyncpa [#allocation7], 1 }
0x253a   :  { %2672 = vsyncpa [#allocation10], 1 }
0x253b   :  { %2673 = vsyncpa [#allocation13], 1 }
0x253c   :  { %2674 = vsyncpa [#allocation16], 1 }
0x253d   :  { %2675 = vsyncpa [#allocation5], 1 }

</bundles_post_ra>
